<compile_context>
chip_gen: v6e
topology: v6e:2x2x1
jax: 0.10.0
libtpu: 0.0.40
codegen_flags: <defaults>
</compile_context>

<pallas_src>
import math

import jax
import jax.numpy as jnp
from jax.experimental import pallas as pl
from jax.experimental.pallas import tpu as pltpu


def _round_up(x, m):
    return ((x + m - 1) // m) * m


def _cdiv(a, b):
    return -(-a // b)


def _sublane_multiple(dtype):
    return {4: 8, 2: 16, 1: 32}[jnp.dtype(dtype).itemsize]


def _plan_rows(rows, max_tile, sub):
    """Load-balanced row tiling: big blocks, but >= 2 grid steps when possible
    so the ("parallel",) axis can shard across v7x's two TensorCores."""
    max_tile = max(_round_up(max_tile, sub), sub)
    steps = _cdiv(rows, max_tile)
    if steps < 2 and rows >= 2 * sub:
        steps = 2
    tile = _round_up(_cdiv(rows, steps), sub)
    return tile, _cdiv(rows, tile)      # every grid step has >= 1 valid row


def _folded_kernel(dist_ref, expand_ref, offset_ref, coeff_ref, out_ref):
    # dist_ref:   (T, F)    f32   F consecutive distances per folded row
    # expand_ref: (F, F*G)  f32   0/1, expand[f, f*G + g] = 1     (resident)
    # offset_ref: (1, F*G)  f32   gaussian centers tiled F times  (resident)
    # coeff_ref:  (1, 1)    f32                                   (resident)
    # out_ref:    (T, F*G)  lane-dense output block (F*G % 128 == 0)
    #
    # Lane-expand the distances on the otherwise-idle MXU.  Each column of
    # `expand` holds a single 1, so the product is exact; HIGHEST precision
    # keeps the full f32 mantissa through the MXU.
    d = jnp.dot(dist_ref[...], expand_ref[...],
                preferred_element_type=jnp.float32,
                precision=jax.lax.Precision.HIGHEST)
    d = d - offset_ref[...]
    out_ref[...] = jnp.exp(coeff_ref[...] * d * d).astype(out_ref.dtype)


def _row_kernel(dist_ref, offset_ref, coeff_ref, out_ref):
    # dist_ref: (T, 1) f32 ; offset_ref: (1, G) f32 (resident)
    # coeff_ref: (1, 1) f32 (resident) ; out_ref: (T, G)
    d = dist_ref[...] - offset_ref[...]
    out_ref[...] = jnp.exp(coeff_ref[...] * d * d).astype(out_ref.dtype)


def gaussian_smearing(dist, offset, coeff, *, out_dtype=jnp.float32,
                      folded_rows_per_block=512, rows_per_block=8192,
                      small_n_threshold=1024):
    """dist: any shape; returns (dist.size, num_gaussians) in `out_dtype`."""
    dist_flat = dist.reshape(-1).astype(jnp.float32)
    offset = offset.astype(jnp.float32)
    n = dist_flat.shape[0]
    g = offset.shape[0]

    if n == 0:
        return jnp.zeros((0, g), out_dtype)

    coeff_arr = jnp.asarray(coeff, jnp.float32).reshape(1, 1)

    # Tiny-N fast path: fixed pallas_call + per-step overhead would dominate.
    if n < small_n_threshold:
        d = dist_flat[:, None] - offset[None, :]
        return jnp.exp(coeff_arr * d * d).astype(out_dtype)

    sub = _sublane_multiple(out_dtype)
    compiler_params = pltpu.CompilerParams(
        dimension_semantics=("parallel",),
        # Fits double-buffered blocks comfortably: raises v5e's 16 MiB scoped
        # default, stays within v7x's 32-of-64 MiB budget.
        vmem_limit_bytes=32 * 1024 * 1024,
    )

    # Fold factor: smallest F with (F * g) % 128 == 0 (g=50 -> F=64 -> 3200
    # lanes = 25 full vregs).  Fold only when it divides n exactly so no
    # pad/slice epilogue is ever needed.
    fold = 128 // math.gcd(g, 128)
    use_fold = fold > 1 and n % fold == 0 and fold * g <= 8192

    if use_fold:
        rows, width = n // fold, fold * g
        tile, steps = _plan_rows(rows, folded_rows_per_block, sub)

        dist_folded = dist_flat.reshape(rows, fold)              # free reshape
        offset_tiled = jnp.tile(offset, (fold,)).reshape(1, width)
        lanes = jnp.arange(width, dtype=jnp.int32)
        expand = (lanes[None, :] // g ==
                  jnp.arange(fold, dtype=jnp.int32)[:, None]).astype(jnp.float32)

        out = pl.pallas_call(
            _folded_kernel,
            out_shape=jax.ShapeDtypeStruct((rows, width), out_dtype),
            grid_spec=pltpu.PrefetchScalarGridSpec(
                num_scalar_prefetch=0,
                grid=(steps,),
                in_specs=[
                    pl.BlockSpec((tile, fold), lambda i: (i, 0)),
                    pl.BlockSpec((fold, width), lambda i: (0, 0)),  # resident
                    pl.BlockSpec((1, width), lambda i: (0, 0)),     # resident
                    pl.BlockSpec((1, 1), lambda i: (0, 0)),         # resident
                ],
                out_specs=pl.BlockSpec((tile, width), lambda i: (i, 0)),
            ),
            compiler_params=compiler_params,
        )(dist_folded, expand, offset_tiled, coeff_arr)
        # Contiguous buffer: reshaping back to the (N, G) contract is free.
        return out.reshape(n, g)

    # Fallback (n % fold != 0): plain (N, G) row blocks with a ragged last
    # block handled by Pallas (no pad, no trailing slice).
    tile, steps = _plan_rows(n, rows_per_block, sub)
    return pl.pallas_call(
        _row_kernel,
        out_shape=jax.ShapeDtypeStruct((n, g), out_dtype),
        grid_spec=pltpu.PrefetchScalarGridSpec(
            num_scalar_prefetch=0,
            grid=(steps,),
            in_specs=[
                pl.BlockSpec((tile, 1), lambda i: (i, 0)),
                pl.BlockSpec((1, g), lambda i: (0, 0)),             # resident
                pl.BlockSpec((1, 1), lambda i: (0, 0)),             # resident
            ],
            out_specs=pl.BlockSpec((tile, g), lambda i: (i, 0)),
        ),
        compiler_params=compiler_params,
    )(dist_flat.reshape(n, 1), offset.reshape(1, g), coeff_arr)


def make_gaussian_smearing_params(start=0.0, stop=10.0, num_gaussians=50):
    offset = jnp.linspace(start, stop, num_gaussians, dtype=jnp.float32)
    step = float(offset[1] - offset[0])
    coeff = -0.5 / step ** 2
    return offset, coeff


if __name__ == "__main__":
    start, stop, num_gaussians = 0.0, 10.0, 50
    offset, coeff = make_gaussian_smearing_params(start, stop, num_gaussians)

    key = jax.random.PRNGKey(0)

    def reference(d):
        dd = d.reshape(-1, 1) - offset.reshape(1, -1)
        return jnp.exp(coeff * dd * dd)

    # n=200  -> tiny-N fused-jnp fast path
    # n=2048 -> lane-dense folded Pallas path (2048 % 64 == 0)
    # n=2051 -> ragged row-block Pallas path
    for n in (200, 2048, 2051):
        key, subkey = jax.random.split(key)
        dist = jax.random.uniform(subkey, (n,), jnp.float32,
                                  minval=0.0, maxval=10.0)
        out = jax.block_until_ready(gaussian_smearing(dist, offset, coeff))
        ref = reference(dist)
        assert out.shape == (n, num_gaussians)
        assert out.dtype == jnp.float32
        err = float(jnp.max(jnp.abs(out - ref)))
        assert jnp.allclose(out, ref, rtol=5e-4, atol=1e-6), (n, err)

    print("KERNEL_OK")
</pallas_src>

<mosaic_0001>
module attributes {stable_mosaic.version = 11 : i64} {
  func.func @_folded_kernel(%arg0: i32, %arg1: memref<16x64xf32, #tpu.memory_space<vmem>>, %arg2: memref<64x3200xf32, #tpu.memory_space<vmem>>, %arg3: memref<1x3200xf32, #tpu.memory_space<vmem>>, %arg4: memref<1x1xf32, #tpu.memory_space<vmem>>, %arg5: memref<16x3200xf32, #tpu.memory_space<vmem>>) attributes {dimension_semantics = [#tpu.dimension_semantics<parallel>], iteration_bounds = array<i64: 2>, scalar_prefetch = 0 : i64, scratch_operands = 0 : i64, tpu.core_type = #tpu.core_type<tc>, window_params = [{transform_indices = @transform_0, window_bounds = array<i64: 16, 64>}, {pipeline_mode = #tpu.pipeline_mode<synchronous>, transform_indices = @transform_1, window_bounds = array<i64: 64, 3200>}, {pipeline_mode = #tpu.pipeline_mode<synchronous>, transform_indices = @transform_2, window_bounds = array<i64: 1, 3200>}, {pipeline_mode = #tpu.pipeline_mode<synchronous>, transform_indices = @transform_3, window_bounds = array<i64: 1, 1>}, {transform_indices = @transform_4, window_bounds = array<i64: 16, 3200>}]} {
    %c0 = arith.constant 0 : index
    %c0_0 = arith.constant 0 : index
    %0 = vector.load %arg1[%c0, %c0_0] : memref<16x64xf32, #tpu.memory_space<vmem>>, vector<16x64xf32>
    %c0_1 = arith.constant 0 : index
    %c0_2 = arith.constant 0 : index
    %1 = vector.load %arg2[%c0_1, %c0_2] : memref<64x3200xf32, #tpu.memory_space<vmem>>, vector<64x3200xf32>
    %cst = arith.constant dense<0.000000e+00> : vector<16x3200xf32>
    %2 = tpu.matmul %0, %1, %cst {dimension_numbers = #tpu.dot_dimension_numbers<[1], [0], [0], [1], [0, 0, 1, 1], [], []>, precision = #tpu.contract_precision<fp32>} : vector<16x64xf32>, vector<64x3200xf32>, vector<16x3200xf32> -> vector<16x3200xf32>
    %c0_3 = arith.constant 0 : index
    %c0_4 = arith.constant 0 : index
    %3 = vector.load %arg3[%c0_3, %c0_4] : memref<1x3200xf32, #tpu.memory_space<vmem>>, vector<1x3200xf32>
    %4 = vector.broadcast %3 : vector<1x3200xf32> to vector<16x3200xf32>
    %5 = arith.subf %2, %4 : vector<16x3200xf32>
    %c0_5 = arith.constant 0 : index
    %c0_6 = arith.constant 0 : index
    %6 = vector.load %arg4[%c0_5, %c0_6] : memref<1x1xf32, #tpu.memory_space<vmem>>, vector<1x1xf32>
    %7 = vector.broadcast %6 : vector<1x1xf32> to vector<16x3200xf32>
    %8 = arith.mulf %7, %5 : vector<16x3200xf32>
    %9 = arith.mulf %8, %5 : vector<16x3200xf32>
    %10 = math.exp %9 : vector<16x3200xf32>
    %c0_7 = arith.constant 0 : index
    %c0_8 = arith.constant 0 : index
    %11 = vector.load %arg5[%c0_7, %c0_8] : memref<16x3200xf32, #tpu.memory_space<vmem>>, vector<16x3200xf32>
    tpu.vector_store %arg5[%c0_7, %c0_8], %10 {strides = array<i32>} : memref<16x3200xf32, #tpu.memory_space<vmem>>, vector<16x3200xf32>,
    return
  }
  func.func @transform_0(%arg0: i32) -> (i32, i32) {
    %c0_i32 = arith.constant 0 : i32
    %c0_i32_0 = arith.constant 0 : i32
    return %arg0, %c0_i32 : i32, i32
  }
  func.func @transform_1(%arg0: i32) -> (i32, i32) {
    %c0_i32 = arith.constant 0 : i32
    %c0_i32_0 = arith.constant 0 : i32
    %c0_i32_1 = arith.constant 0 : i32
    return %c0_i32, %c0_i32_0 : i32, i32
  }
  func.func @transform_2(%arg0: i32) -> (i32, i32) {
    %c0_i32 = arith.constant 0 : i32
    %c0_i32_0 = arith.constant 0 : i32
    %c0_i32_1 = arith.constant 0 : i32
    return %c0_i32, %c0_i32_0 : i32, i32
  }
  func.func @transform_3(%arg0: i32) -> (i32, i32) {
    %c0_i32 = arith.constant 0 : i32
    %c0_i32_0 = arith.constant 0 : i32
    %c0_i32_1 = arith.constant 0 : i32
    return %c0_i32, %c0_i32_0 : i32, i32
  }
  func.func @transform_4(%arg0: i32) -> (i32, i32) {
    %c0_i32 = arith.constant 0 : i32
    %c0_i32_0 = arith.constant 0 : i32
    return %arg0, %c0_i32 : i32, i32
  }
}

</mosaic_0001>

<bundles_post_ra>
// kernel: tpu_custom_call.1
= control target key start
LH: loop header
LB: loop body
LE: loop exit
PB: predicated region body
PF: predicated region fallthrough
CT: control target
= control target key end

     0   :  { %s14648_s0 = inlined_call_operand.hbm [shape: f32[32,64], index: 0, kind: input, shape index: {}]   ;;  %s14649_s1 = inlined_call_operand.hbm [shape: f32[64,3200], index: 1, kind: input, shape index: {}]   ;;  %s14650_s2 = inlined_call_operand.hbm [shape: f32[1,3200], index: 2, kind: input, shape index: {}]   ;;  %s14651_s3 = inlined_call_operand.<no memory space> [shape: f32[1,1], index: 3, kind: input, shape index: {}]   ;;  %s14652_s4 = inlined_call_operand.hbm [shape: f32[32,3200], index: 4, kind: output, shape index: {}]  }
   0x1   :  { %v9_v0 = vstv %s14651_s3 }
   0x2   :  { %10 = vst [vmem:[#allocation2] sm:$0x1] %v9_v0 }
   0x3   :  { %11 = vsyncpa [#allocation4], 0 }
   0x4   :  { %13 = vsyncpa [#allocation4 + $0x1], 0 }
   0x5   :  { %14 = vsyncpa [#allocation7], 0 }
   0x6   :  { %15 = vsyncpa [#allocation5], 0 }
   0x7   :  { %17 = vsyncpa [#allocation5 + $0x1], 0  ;;  %s10502_s17 = smov 0   ;;  %s10504_s18 = smov 0  }
   0x8   :  { %s10506_s19 = smov 0   ;;  %s10508_s20 = smov 0  }
   0x9 LB: > { %s10523_s3 = sadd.s32 4294967295, %s10460_s20   ;;  %s9938_s21 = sadd.s32 4294967294, %s10460_s20   ;;  %s10460_s20 = sphi %s10508_s20, %s15238_s20   ;;  %s10456_s19 = sphi %s10506_s19, %s15237_s19   ;;  %s10452_s18 = sphi %s10504_s18, %s15236_s18   ;;  %s10448_s17 = sphi %s10502_s17, %s15235_s17  }
   0xa   : > { %p43_p0 = scmp.ne.s32.totalorder %s10452_s18, %s10448_s17  ;;  %p14653_p1 = scmp.eq.s32.totalorder %s10523_s3, 0 }
   0xb   : > { %p136_p3 = scmp.eq.s32.totalorder %s9938_s21, 1  ;;  %p9939_p5 = scmp.ge.s32.totalorder %s10460_s20, 1 }
   0xc   : > { %p10532_p4 = por %p14653_p1, %p43_p0  ;;  %p143_p7 = scmp.lt.s32.totalorder %s10460_s20, 3 }
   0xd   : > { %p10537_p6 = por %p136_p3, %p43_p0  ;;  %s10462_s25 = smov [#allocation6]  }
   0xe   : > { %s14826_s22 = scalar_select %p10532_p4, 1, 0 }
   0xf   : > { %s14827_s23 = scalar_select %p10537_p6, 1, 0 }
  0x10   : > { %p10542_p8 = pnand %p9939_p5, %p143_p7  ;;  %s155_s26 = sshll.u32 %s10462_s25, 4  ;;  %s156_s26 = int_to_ptr.vmem [resolvable:$true] %s155_s26 }
  0x11   : > { %s10463_s28 = smov [#allocation8]   ;;  %s10323_s30 = scalar_lea.vmem %s156_s26, 25600 }
  0x12   : > { %s14828_s24 = scalar_select %p10542_p8, 1, 0 }
  0x13   : > { %p10146_p9 = pneg %p10542_p8  ;;  %s169_s29 = sshll.u32 %s10463_s28, 4  ;;  %s170_s29 = int_to_ptr.vmem [resolvable:$true] %s169_s29 }
  0x14   : > { %p10324_p13 = scmp.ne.s32.totalorder %s156_s26, %s10323_s30  ;;  %p10331_p5 = scmp.lt.s32.totalorder %s156_s26, %s156_s26 }
  0x15   : > { %p10551_p11 = pnand %p10146_p9, %p14653_p1  ;;  %p10332_p7 = scmp.lt.s32.totalorder %s10323_s30, %s10323_s30 }
  0x17   : > { %p10314_p12 = pneg %p10551_p11  ;;  %p10333_p10 = por %p10332_p7, %p10331_p5 }
  0x19   : > { %p10326_p0 = pnand %p10324_p13, %p10314_p12 }
  0x1b   : > { %p10327_p3 = pneg %p10326_p0 }
  0x1d   : > { %p10334_p9 = pnand %p10333_p10, %p10327_p3 }
  0x1f   : > { %10337 = shalt.err (!%p10334_p9)
}
  0x20   : > { %s10464_s5 = smov 3200   ;;  %s10465_s6 = smov 200  }
  0x21   : > { %10149 = dma.hbm_to_vmem [thread:$0]  (!%p10551_p11), %s14649_s1, 25600, %s156_s26, [#allocation7], %s10464_s5, %s10464_s5, %s10465_s6  }
  0x22   : > { %s10349_s9 = scalar_lea.vmem %s170_s29, 400  ;;  %s10356_s10 = scalar_lea.vmem %s170_s29, 416 }
  0x23   : > { %p10350_p1 = scmp.ne.s32.totalorder %s170_s29, %s10349_s9  ;;  %p10357_p2 = scmp.lt.s32.totalorder %s170_s29, %s170_s29 }
  0x24   : > { %p10358_p5 = scmp.lt.s32.totalorder %s10356_s10, %s10349_s9 }
  0x25   : > { %p10352_p13 = pnand %p10350_p1, %p10314_p12 }
  0x26   : > { %p10359_p10 = por %p10358_p5, %p10357_p2 }
  0x27   : > { %p10353_p0 = pneg %p10352_p13 }
  0x29   : > { %p10360_p3 = pnand %p10359_p10, %p10353_p0 }
  0x2b   : > { %10363 = shalt.err (!%p10360_p3)
}
  0x2c   : > { %10152 = dma.hbm_to_vmem [thread:$0]  (!%p10551_p11), %s14650_s2, 400, %s170_s29, [#allocation7]  }
  0x2d   : > { %s10574_s13 = sadd.s32 1, %s10460_s20   ;;  %s30_s14 = sadd.s32 1, %s10456_s19 }
  0x2e   : > { %s27_s15 = ssub.s32 %s10460_s20, %s10574_s13  ;;  %p37_p1 = scmp.ne.s32.totalorder %s10456_s19, %s10452_s18 }
  0x2f   : > { %p28_p2 = scmp.eq.s32.totalorder %s27_s15, 0  ;;  %p38_p12 = scmp.eq.s32.totalorder %s10460_s20, 0 }
  0x30   : > { %p14830_p7 = scmp.eq.s32.totalorder %s10523_s3, 1  ;;  %p10163_p13 = scmp.lt.s32.totalorder %s10460_s20, 2 }
  0x31   : > { %s10590_s21 = scalar_select %p28_p2, %s10456_s19, %s30_s14  }
  0x32   : > { %p10584_p9 = por %p14830_p7, %p37_p1  ;;  %p39_p0 = por %p38_p12, %p37_p1 }
  0x33   : > { %s183_s25 = sand.u32 1, %s10456_s19   ;;  %s9957_s27 = sshll.u32 %s10460_s20, 8 }
  0x34   : > { %s14831_s16 = scalar_select %p10584_p9, 1, 0 }
  0x35   : > { %s9943_s26 = sshll.u32 %s183_s25, 4  ;;  %s10597_s30 = scalar_lea.hbm %s14648_s0, %s9957_s27 }
  0x36   : > { %s187_s5 = scalar_lea.vmem [#allocation3], %s9943_s26  ;;  %p10601_p11 = pnand %p10163_p13, %p39_p0 }
  0x37   : > { %s194_s6 = sshll.u32 %s187_s5, 4  ;;  %s10605_s8 = scalar_lea.sflag [#allocation4], %s183_s25  ;;  %s10599_s6 = int_to_ptr.vmem [resolvable:$true] %s194_s6 }
  0x38   : > { %s10364_s9 = scalar_lea.hbm %s10597_s30, 256  ;;  %p10366_p10 = pneg %p10601_p11 }
  0x39   : > { %p10365_p5 = scmp.ne.s32.totalorder %s10597_s30, %s10364_s9  ;;  %s10369_s12 = scalar_lea.hbm %s14648_s0, 512 }
  0x3a   : > { %p10370_p2 = scmp.lt.s32.totalorder %s10597_s30, %s14648_s0  ;;  %p10371_p12 = scmp.lt.s32.totalorder %s10369_s12, %s10364_s9 }
  0x3b   : > { %p10367_p3 = pnand %p10366_p10, %p10365_p5 }
  0x3c   : > { %p10372_p7 = por %p10371_p12, %p10370_p2 }
  0x3d   : > { %p10368_p1 = pneg %p10367_p3 }
  0x3f   : > { %p10373_p13 = pnand %p10372_p7, %p10368_p1 }
  0x41   : > { %10376 = shalt.err (!%p10373_p13)
}
  0x42   : > { %s10377_s25 = scalar_lea.vmem %s10599_s6, 256  ;;  %s10466_s26 = smov [#allocation3]  }
  0x43   : > { %p10378_p0 = scmp.ne.s32.totalorder %s10599_s6, %s10377_s25  ;;  %s10382_s27 = sshll.u32 %s10466_s26, 4  ;;  %s10383_s27 = int_to_ptr.vmem [resolvable:$false] %s10382_s27 }
  0x44   : > { %s10384_s28 = scalar_lea.vmem %s10383_s27, 512  ;;  %p10385_p3 = scmp.lt.s32.totalorder %s10599_s6, %s10383_s27 }
  0x45   : > { %p10380_p6 = pnand %p10378_p0, %p10366_p10  ;;  %p10386_p9 = scmp.lt.s32.totalorder %s10384_s28, %s10377_s25 }
  0x47   : > { %p10381_p5 = pneg %p10380_p6  ;;  %p10387_p4 = por %p10386_p9, %p10385_p3 }
  0x49   : > { %p10388_p8 = pnand %p10387_p4, %p10381_p5 }
  0x4b   : > { %10391 = shalt.err (!%p10388_p8)
}
  0x4c   : > { %s10467_s29 = smov 128   ;;  %s10468_s5 = smov 8  }
  0x4d   : > { %10156 = dma.hbm_to_vmem [thread:$0]  (!%p10601_p11), %s10597_s30, 256, %s10599_s6, %s10605_s8, %s10467_s29, %s10467_s29, %s10468_s5  }
  0x4e   : > { %p14833_p10 = scmp.ne.s32.totalorder %s14828_s24, 0 }
  0x50   : > { %206 = sbr.rel (%p14833_p10) target bundleno = 1111 (0x457), region = 36 }
  0x55   : > { %s10629_s9 = sand.u32 1, %s10452_s18   ;;  %p14834_p4 = scmp.ne.s32.totalorder %s14826_s22, 0 }
  0x56   : > { %s9947_s10 = sshll.u32 %s10629_s9, 4  ;;  %s209_s11 = scalar_lea.sflag [#allocation4], %s10629_s9 }
  0x57   : > { %s10633_s12 = scalar_lea.vmem [#allocation3], %s9947_s10 }
  0x58   : > { %10435 = dma.done.wait (%p14834_p4), %s209_s11, 256  }
  0x59   : > { %10437 = vsyncadd (%p14834_p4), %s209_s11, 4294967040  ;;  %p14835_p6 = scmp.eq.s32.totalorder %s10523_s3, 0 }
  0x5b   : > { %10439 = dma.done.wait (%p14835_p6), [#allocation7], 26000   ;;  %p14836_p8 = pmov %p14835_p6 }
  0x5c   : > { %v14678_v1 = vmov 0.0   ;;  %v425_v2 = vld [vmem:[#allocation6 + $0x580] sm:$0xff]  ;;  %v424_v3 = vld [vmem:[#allocation6 + $0x578] sm:$0xff]  ;;  %v399_v8 = vld [vmem:[#allocation6 + $0x4b0] sm:$0xff]  ;;  %vm449_vm0 = vcmask 523264   ;;  %s10132_s22 = smul.u32 400, %s10629_s9 }
  0x5d   : > { %10441 = vsyncadd (%p14836_p8), [#allocation7], 4294941296  ;;  %536 = vmatprep.mubr.f32.mxu0 %v14678_v1  ;;  %703 = vmatprep.mubr.f32.mxu1 %v14678_v1  ;;  %v400_v4 = vld [vmem:[#allocation6 + $0x4b8] sm:$0xff]  ;;  %v10645_v5 = vand.u32 4294901760, %v425_v2  ;;  %v10647_v6 = vand.u32 4294901760, %v424_v3  ;;  %v375_v9 = vld [vmem:[#allocation6 + $0x3f0] sm:$0xff] }
  0x5e   : > { %v10649_v7 = vand.u32 4294901760, %v400_v4  ;;  %v374_v10 = vld [vmem:[#allocation6 + $0x3e8] sm:$0xff]  ;;  %v10651_v11 = vand.u32 4294901760, %v399_v8  ;;  %v10653_v12 = vand.u32 4294901760, %v375_v9  ;;  %v349_v15 = vld [vmem:[#allocation6 + $0x320] sm:$0xff]  ;;  %v324_v21 = vld [vmem:[#allocation6 + $0x258] sm:$0xff] }
  0x5f   : > { %v10655_v13 = vand.u32 4294901760, %v374_v10  ;;  %v350_v14 = vld [vmem:[#allocation6 + $0x328] sm:$0xff]  ;;  %v325_v16 = vld [vmem:[#allocation6 + $0x260] sm:$0xff]  ;;  %473 = vmatprep.subr.mxu0 %v10645_v5  ;;  %v10660_v18 = vand.u32 4294901760, %v349_v15  ;;  %v10665_v20 = vsub.f32 %v425_v2, %v10645_v5  ;;  %v10667_v22 = vld [vmem:[#allocation6 + $0x198] sm:$0xff]  ;;  %v10672_v24 = vand.u32 4294901760, %v324_v21 }
  0x60   : > { %v10658_v17 = vand.u32 4294901760, %v350_v14  ;;  %v10662_v19 = vand.u32 4294901760, %v325_v16  ;;  %v10669_v23 = vld [vmem:[#allocation6 + $0x190] sm:$0xff]  ;;  %475 = vmatpush1.msra.mxu0 %v10647_v6  ;;  %v10675_v25 = vsub.f32 %v424_v3, %v10647_v6  ;;  %v10678_v26 = vand.u32 4294901760, %v10667_v22  ;;  %v10685_v29 = vld [vmem:[#allocation6 + $0xc8] sm:$0xff]  ;;  %v10709_v39 = vld [vmem:[#allocation6] sm:$0xff] }
  0x61   : > { %v10681_v27 = vsub.f32 %v400_v4, %v10649_v7  ;;  %v10683_v28 = vld [vmem:[#allocation6 + $0xd0] sm:$0xff]  ;;  %v10687_v30 = vld [vmem:[#allocation6 + $0x8] sm:$0xff]  ;;  %477 = vmatprep.subr.mxu0 %v10649_v7  ;;  %v577_v31 = vand.u32 4294901760, %v10665_v20  ;;  %v10692_v32 = vand.u32 4294901760, %v10669_v23  ;;  %v10695_v33 = vsub.f32 %v399_v8, %v10651_v11  ;;  %s12168_s24 = scalar_lea.vmem [#allocation9], %s10132_s22  ;;  %s10133_s30 = smul.u32 6400, %s10523_s3 }
  0x62   : > { %v10698_v34 = vand.u32 4294901760, %v10683_v28  ;;  %479 = vmatpush1.msra.mxu0 %v10651_v11  ;;  %v583_v35 = vand.u32 4294901760, %v10675_v25  ;;  %v10704_v37 = vsub.f32 %v375_v9, %v10653_v12  ;;  %v10707_v38 = vand.u32 4294901760, %v10685_v29  ;;  %v247_v52 = vld [vmem:[%s10633_s12] sm:$0xff]  ;;  %v248_v2 = vld [vmem:[%s10633_s12 + $0x8] sm:$0xff]  ;;  %s9846_s6 = sshll.u32 %s12168_s24, 4  ;;  %s14603_s6 = int_to_ptr.vmem [resolvable:$true] %s9846_s6 }
  0x63   : > { %v589_v36 = vand.u32 4294901760, %v10681_v27  ;;  %481 = vmatprep.subr.mxu0 %v10653_v12  ;;  %v578_v40 = vsub.f32 %v10665_v20, %v577_v31  ;;  %v595_v41 = vand.u32 4294901760, %v10695_v33  ;;  %v10717_v42 = vsub.f32 %v374_v10, %v10655_v13  ;;  %s14601_s14 = scalar_lea.hbm %s14652_s4, %s10133_s30  ;;  %s9832_s15 = scalar_lea.sflag [#allocation5], %s10629_s9 }
  0x64   : > { %v10720_v43 = vand.u32 4294901760, %v10687_v30  ;;  %483 = vmatpush1.msra.mxu0 %v10655_v13  ;;  %v584_v44 = vsub.f32 %v10675_v25, %v583_v35  ;;  %v601_v46 = vand.u32 4294901760, %v10704_v37  ;;  %v10731_v47 = vsub.f32 %v350_v14, %v10658_v17  ;;  %s10392_s25 = scalar_lea.vmem %s14603_s6, 6400  ;;  %p15232_p11 = scmp.ne.s32.totalorder %s14831_s16, 0 }
  0x65   : > { %v590_v45 = vsub.f32 %v10681_v27, %v589_v36  ;;  %485 = vmatprep.subr.mxu0 %v10658_v17  ;;  %v579_v48 = vand.u32 4294901760, %v578_v40  ;;  %v596_v49 = vsub.f32 %v10695_v33, %v595_v41  ;;  %v607_v50 = vand.u32 4294901760, %v10717_v42  ;;  %p10393_p9 = scmp.ne.s32.totalorder %s14603_s6, %s10392_s25  ;;  %s10471_s3 = smov [#allocation9]  }
  0x66   : > { %v10739_v51 = vand.u32 4294901760, %v10709_v39  ;;  %487 = vmatpush1.msra.mxu0 %v10660_v18  ;;  %v585_v53 = vand.u32 4294901760, %v584_v44  ;;  %v602_v55 = vsub.f32 %v10704_v37, %v601_v46  ;;  %v613_v56 = vand.u32 4294901760, %v10731_v47  ;;  %s10396_s26 = sshll.u32 %s10471_s3, 4  ;;  %s10397_s26 = int_to_ptr.vmem [resolvable:$false] %s10396_s26 }
  0x67   : > { %v591_v54 = vand.u32 4294901760, %v590_v45  ;;  %489 = vmatprep.subr.mxu0 %v10662_v19  ;;  %580 = vmatprep.subr.mxu1 %v579_v48  ;;  %v597_v57 = vand.u32 4294901760, %v596_v49  ;;  %v608_v58 = vsub.f32 %v10717_v42, %v607_v50  ;;  %v10752_v59 = vsub.f32 %v349_v15, %v10660_v18  ;;  %p10394_p1 = pnand %p10393_p9, %p15232_p11  ;;  %s10398_s27 = scalar_lea.vmem %s10397_s26, 12800 }
  0x68   : > { %v10755_v60 = vsub.f32 %v325_v16, %v10662_v19  ;;  %491 = vmatpush1.msra.mxu0 %v10672_v24  ;;  %586 = vmatpush1.msra.mxu1 %v585_v53  ;;  %v603_v61 = vand.u32 4294901760, %v602_v55  ;;  %v614_v62 = vsub.f32 %v10731_v47, %v613_v56  ;;  %v451_v63 = vsel %vm449_vm0, %v247_v52, 0  ;;  %p10399_p12 = scmp.lt.s32.totalorder %s14603_s6, %s10397_s26  ;;  %p10400_p7 = scmp.lt.s32.totalorder %s10398_s27, %s10392_s25 }
  0x69   : > { %v10763_v0 = vsub.f32 %v324_v21, %v10672_v24  ;;  %493 = vmatprep.subr.mxu0 %v10678_v26  ;;  %592 = vmatprep.subr.mxu1 %v591_v54  ;;  %v609_v3 = vand.u32 4294901760, %v608_v58  ;;  %v619_v4 = vand.u32 4294901760, %v10752_v59  ;;  %v10769_v9 = vand.u32 4294901760, %v451_v63  ;;  %p10395_p2 = pneg %p10394_p1 }
  0x6a   : > { %v625_v8 = vand.u32 4294901760, %v10755_v60  ;;  %495 = vmatpush1.msra.mxu0 %v10692_v32  ;;  %598 = vmatpush1.msra.mxu1 %v597_v57  ;;  %v615_v10 = vand.u32 4294901760, %v614_v62  ;;  %v10775_v15 = vsub.f32 %v10667_v22, %v10678_v26  ;;  %v10779_v16 = vsub.f32 %v10669_v23, %v10692_v32  ;;  %p10401_p13 = por %p10400_p7, %p10399_p12 }
  0x6b   : > { %v631_v14 = vand.u32 4294901760, %v10763_v0  ;;  %497 = vmatprep.subr.mxu0 %v10698_v34  ;;  %604 = vmatprep.subr.mxu1 %v603_v61  ;;  %v620_v21 = vsub.f32 %v10752_v59, %v619_v4  ;;  %v10789_v44 = vsub.f32 %v451_v63, %v10769_v9  ;;  %v454_v22 = vsel %vm449_vm0, %v248_v2, 0 }
  0x6c   : > { %v626_v40 = vsub.f32 %v10755_v60, %v625_v8  ;;  %499 = vmatpush1.msra.mxu0 %v10707_v38  ;;  %610 = vmatpush1.msra.mxu1 %v609_v3  ;;  %v637_v45 = vand.u32 4294901760, %v10775_v15  ;;  %v643_v48 = vand.u32 4294901760, %v10779_v16  ;;  %v10800_v49 = vsub.f32 %v10683_v28, %v10698_v34  ;;  %p10402_p0 = pnand %p10401_p13, %p10395_p2 }
  0x6d   : > { %14837 = vst [vmem:[#allocation13_spill] sm:$0xff] %v10789_v44  ;;  %v632_v23 = vsub.f32 %v10763_v0, %v631_v14  ;;  %501 = vmatprep.subr.mxu0 %v10720_v43  ;;  %616 = vmatprep.subr.mxu1 %v615_v10  ;;  %v621_v52 = vand.u32 4294901760, %v620_v21  ;;  %v10804_v54 = vand.u32 4294901760, %v10789_v44  ;;  %v10808_v55 = vsub.f32 %v10685_v29, %v10707_v38 }
  0x6e   : > { %v627_v53 = vand.u32 4294901760, %v626_v40  ;;  %503 = vmatpush1.msra.mxu0 %v10739_v51  ;;  %v638_v28 = vsub.f32 %v10775_v15, %v637_v45  ;;  %v644_v58 = vsub.f32 %v10779_v16, %v643_v48  ;;  %v649_v61 = vand.u32 4294901760, %v10800_v49 }
  0x6f   : > { %14838 = vst [vmem:[#allocation14_spill] sm:$0xff] %v10804_v54  ;;  %v633_v57 = vand.u32 4294901760, %v632_v23  ;;  %622 = vmatpush1.msra.mxu1 %v621_v52  ;;  %736 = vmatprep.subr.mxu0 %v10665_v20  ;;  %v540_v29 = vsub.f32 %v10789_v44, %v10804_v54  ;;  %v655_v62 = vand.u32 4294901760, %v10808_v55  ;;  %v10824_v63 = vsub.f32 %v10687_v30, %v10720_v43  ;;  %v426_v20 = vld [vmem:[#allocation6 + $0x588] sm:$0xff] }
  0x70   : > { %v10828_v2 = vsub.f32 %v10709_v39, %v10739_v51  ;;  %628 = vmatprep.subr.mxu1 %v627_v53  ;;  %v639_v3 = vand.u32 4294901760, %v638_v28  ;;  %v645_v10 = vand.u32 4294901760, %v644_v58  ;;  %v650_v21 = vsub.f32 %v10800_v49, %v649_v61 }
  0x71   : > { %v10833_v40 = vand.u32 4294901760, %v454_v22  ;;  %v10835_v23 = vand.u32 4294901760, %v540_v29  ;;  %634 = vmatpush1.msra.mxu1 %v633_v57  ;;  %v656_v30 = vsub.f32 %v10808_v55, %v655_v62  ;;  %v661_v52 = vand.u32 4294901760, %v10824_v63 }
  0x72   : > { %v667_v39 = vand.u32 4294901760, %v10828_v2  ;;  %640 = vmatprep.subr.mxu1 %v639_v3  ;;  %v651_v53 = vand.u32 4294901760, %v650_v21 }
  0x73   : > { %v10843_v28 = vsub.f32 %v454_v22, %v10833_v40  ;;  %542 = vmatmul.mubr.f32.vlgmr.msra.gmra.mxu0 %v10835_v23  ;;  %646 = vmatpush1.msra.mxu1 %v645_v10  ;;  %v657_v58 = vand.u32 4294901760, %v656_v30  ;;  %v662_v57 = vsub.f32 %v10824_v63, %v661_v52 }
  0x74   : > { %v668_v29 = vsub.f32 %v10828_v2, %v667_v39  ;;  %739 = vmatpush1.msra.mxu0 %v10675_v25  ;;  %652 = vmatprep.subr.mxu1 %v651_v53  ;;  %v427_v25 = vld [vmem:[#allocation6 + $0x590] sm:$0xff] }
  0x75   : > { %14839 = vst [vmem:[#allocation15_spill] sm:$0xff] %v10843_v28  ;;  %v10854_v3 = vand.u32 4294901760, %v10843_v28  ;;  %742 = vmatprep.subr.mxu0 %v10681_v27  ;;  %658 = vmatpush1.msra.mxu1 %v657_v58  ;;  %v663_v22 = vand.u32 4294901760, %v662_v57  ;;  %v10917_v27 = vand.u32 4294901760, %v426_v20 }
  0x76   : > { %v669_v10 = vand.u32 4294901760, %v668_v29  ;;  %745 = vmatpush1.msra.mxu0 %v10695_v33  ;;  %547 = vmatprep.mubr.f32.mxu0 %v14678_v1  ;;  %v10922_v33 = vand.u32 4294901760, %v427_v25  ;;  %v251_v29 = vld [vmem:[#allocation6 + $0x10] sm:$0xff] }
  0x77   : > { %14840 = vst [vmem:[#allocation16_spill] sm:$0xff] %v10854_v3  ;;  %748 = vmatprep.subr.mxu0 %v10704_v37  ;;  %664 = vmatprep.subr.mxu1 %v663_v22  ;;  %v551_v21 = vsub.f32 %v10843_v28, %v10854_v3  ;;  %v377_v37 = vld [vmem:[#allocation6 + $0x400] sm:$0xff] }
  0x78   : > { %751 = vmatpush1.msra.mxu0 %v10717_v42  ;;  %670 = vmatpush1.msra.mxu1 %v669_v10  ;;  %v376_v42 = vld [vmem:[#allocation6 + $0x3f8] sm:$0xff] }
  0x79   : > { %754 = vmatprep.subr.mxu0 %v10731_v47  ;;  %705 = vmatmul.mubr.f32.vlgmr.msra.gmra.mxu1 %v10769_v9  ;;  %v10869_v30 = vand.u32 4294901760, %v551_v21  ;;  %v351_v47 = vld [vmem:[#allocation6 + $0x330] sm:$0xff] }
  0x7a   : > { %757 = vmatpush1.msra.mxu0 %v10752_v59  ;;  %848 = vmatprep.subr.mxu1 %v10645_v5 }
  0x7b   : > { %760 = vmatprep.subr.mxu0 %v10755_v60  ;;  %850 = vmatpush1.msra.mxu1 %v10647_v6  ;;  %v326_v60 = vld [vmem:[#allocation6 + $0x268] sm:$0xff] }
  0x7c   : > { %763 = vmatpush1.msra.mxu0 %v10763_v0  ;;  %852 = vmatprep.subr.mxu1 %v10649_v7 }
  0x7d   : > { %766 = vmatprep.subr.mxu0 %v10775_v15  ;;  %854 = vmatpush1.msra.mxu1 %v10651_v11 }
  0x7e   : > { %769 = vmatpush1.msra.mxu0 %v10779_v16  ;;  %856 = vmatprep.subr.mxu1 %v10653_v12  ;;  %v10985_v16 = vand.u32 4294901760, %v326_v60 }
  0x7f   : > { %553 = vmatmul.mubr.f32.gmra.mxu0 %v10869_v30  ;;  %772 = vmatprep.subr.mxu0 %v10800_v49  ;;  %v277_v49 = vld [vmem:[#allocation6 + $0xe0] sm:$0xff] }
  0x80   : > { %775 = vmatpush1.msra.mxu0 %v10808_v55  ;;  %858 = vmatpush1.msra.mxu1 %v10655_v13  ;;  %v11018_v53 = vsub.f32 %v326_v60, %v10985_v16 }
  0x81   : > { %778 = vmatprep.subr.mxu0 %v10824_v63  ;;  %860 = vmatprep.subr.mxu1 %v10658_v17  ;;  %v276_v63 = vld [vmem:[#allocation6 + $0xd8] sm:$0xff] }
  0x82   : > { %781 = vmatpush1.msra.mxu0 %v10828_v2  ;;  %814 = vmatprep.mubr.f32.mxu0 %v14678_v1  ;;  %v11031_v10 = vand.u32 4294901760, %v276_v63 }
  0x83   : > { %862 = vmatpush1.msra.mxu1 %v10660_v18  ;;  %710 = vmatprep.mubr.f32.mxu1 %v14678_v1 }
  0x84   : > { %817 = vmatmul.mubr.f32.vlgmr.msra.gmra.mxu0 %v10789_v44  ;;  %864 = vmatprep.subr.mxu1 %v10662_v19  ;;  %v11064_v60 = vsub.f32 %v276_v63, %v11031_v10 }
  0x85   : > { %949 = vmatprep.subr.mxu0 %v577_v31  ;;  %712 = vmatmul.mubr.f32.gmra.mxu1 %v10833_v40  ;;  %v402_v31 = vld [vmem:[#allocation6 + $0x4c8] sm:$0xff] }
  0x86   : > { %866 = vmatpush1.msra.mxu1 %v10672_v24  ;;  %953 = vmatpush1.msra.mxu0 %v583_v35  ;;  %v401_v35 = vld [vmem:[#allocation6 + $0x4c0] sm:$0xff] }
  0x87   : > { %868 = vmatprep.subr.mxu1 %v10678_v26  ;;  %957 = vmatprep.subr.mxu0 %v589_v36  ;;  %v10930_v36 = vand.u32 4294901760, %v402_v31 }
  0x88   : > { %822 = vmatprep.mubr.f32.mxu0 %v14678_v1  ;;  %870 = vmatpush1.msra.mxu1 %v10692_v32 }
  0x89   : > { %961 = vmatpush1.msra.mxu0 %v595_v41  ;;  %872 = vmatprep.subr.mxu1 %v10698_v34  ;;  %v10938_v41 = vand.u32 4294901760, %v401_v35 }
  0x8a   : > { %825 = vmatmul.mubr.f32.gmra.mxu0 %v10843_v28  ;;  %965 = vmatprep.subr.mxu0 %v601_v46  ;;  %v10948_v46 = vand.u32 4294901760, %v377_v37 }
  0x8b   : > { %874 = vmatpush1.msra.mxu1 %v10707_v38  ;;  %969 = vmatpush1.msra.mxu0 %v607_v50  ;;  %v327_v50 = vld [vmem:[#allocation6 + $0x270] sm:$0xff] }
  0x8c   : > { %876 = vmatprep.subr.mxu1 %v10720_v43  ;;  %973 = vmatprep.subr.mxu0 %v613_v56  ;;  %v10956_v56 = vsub.f32 %v402_v31, %v10930_v36 }
  0x8d   : > { %878 = vmatpush1.msra.mxu1 %v10739_v51  ;;  %911 = vmatprep.mubr.f32.mxu1 %v14678_v1 }
  0x8e   : > { %977 = vmatpush1.msra.mxu0 %v619_v4  ;;  %915 = vmatmul.mubr.f32.vlgmr.msra.gmra.mxu1 %v10804_v54 }
  0x8f   : > { %981 = vmatprep.subr.mxu0 %v625_v8  ;;  %1074 = vmatprep.subr.mxu1 %v10645_v5  ;;  %v10936_v5 = vsub.f32 %v426_v20, %v10917_v27  ;;  %v302_v8 = vld [vmem:[#allocation6 + $0x1a8] sm:$0xff] }
  0x90   : > { %985 = vmatpush1.msra.mxu0 %v631_v14  ;;  %1076 = vmatpush1.msra.mxu1 %v10647_v6  ;;  %v352_v6 = vld [vmem:[#allocation6 + $0x338] sm:$0xff]  ;;  %v10978_v14 = vsub.f32 %v377_v37, %v10948_v46 }
  0x91   : > { %989 = vmatprep.subr.mxu0 %v637_v45  ;;  %1078 = vmatprep.subr.mxu1 %v10649_v7  ;;  %v10944_v7 = vsub.f32 %v427_v25, %v10922_v33  ;;  %v10964_v59 = vand.u32 4294901760, %v352_v6  ;;  %v1279_v0 = vand.u32 4294901760, %v10936_v5  ;;  %v1285_v45 = vand.u32 4294901760, %v10956_v56 }
  0x92   : > { %920 = vmatprep.mubr.f32.mxu1 %v14678_v1  ;;  %993 = vmatpush1.msra.mxu0 %v643_v48 }
  0x93   : > { %1080 = vmatpush1.msra.mxu1 %v10651_v11  ;;  %997 = vmatprep.subr.mxu0 %v649_v61  ;;  %v10953_v11 = vand.u32 4294901760, %v376_v42  ;;  %v1273_v4 = vand.u32 4294901760, %v10944_v7  ;;  %v1280_v48 = vsub.f32 %v10936_v5, %v1279_v0  ;;  %v10995_v55 = vsub.f32 %v352_v6, %v10964_v59 }
  0x94   : > { %924 = vmatmul.mubr.f32.gmra.mxu1 %v10854_v3  ;;  %1082 = vmatprep.subr.mxu1 %v10653_v12  ;;  %v10962_v12 = vsub.f32 %v401_v35, %v10938_v41  ;;  %v1286_v58 = vsub.f32 %v10956_v56, %v1285_v45 }
  0x95   : > { %1001 = vmatpush1.msra.mxu0 %v655_v62  ;;  %1084 = vmatpush1.msra.mxu1 %v10655_v13  ;;  %v10970_v13 = vand.u32 4294901760, %v351_v47  ;;  %v10983_v15 = vsub.f32 %v376_v42, %v10953_v11  ;;  %v11005_v62 = vand.u32 4294901760, %v302_v8  ;;  %v1281_v22 = vand.u32 4294901760, %v1280_v48 }
  0x96   : > { %1005 = vmatprep.subr.mxu0 %v661_v52  ;;  %1086 = vmatprep.subr.mxu1 %v10658_v17  ;;  %v10975_v17 = vand.u32 4294901760, %v327_v50  ;;  %v252_v52 = vld [vmem:[#allocation6 + $0x18] sm:$0xff]  ;;  %v14660_v21 = vand.u32 4294901760, %v10995_v55  ;;  %v11050_v42 = vand.u32 4294901760, %v251_v29 }
  0x97   : > { %1009 = vmatpush1.msra.mxu0 %v667_v39  ;;  %1042 = vmatprep.mubr.f32.mxu0 %v14678_v1  ;;  %v11000_v61 = vsub.f32 %v351_v47, %v10970_v13  ;;  %v1303_v57 = vand.u32 4294901760, %v10983_v15  ;;  %v11036_v25 = vand.u32 4294901760, %v252_v52  ;;  %v11040_v35 = vsub.f32 %v302_v8, %v11005_v62 }
  0x98   : > { %1088 = vmatpush1.msra.mxu1 %v10660_v18  ;;  %1044 = vmatmul.mubr.f32.vlgmr.msra.gmra.mxu0 %v10769_v9  ;;  %v301_v18 = vld [vmem:[#allocation6 + $0x1a0] sm:$0xff]  ;;  %v11013_v39 = vsub.f32 %v327_v50, %v10975_v17  ;;  %v1287_v47 = vand.u32 4294901760, %v1286_v58  ;;  %v14659_v8 = vand.u32 4294901760, %v11018_v53  ;;  %v11080_v58 = vsub.f32 %v251_v29, %v11050_v42 }
  0x99   : > { %1090 = vmatprep.subr.mxu1 %v10662_v19  ;;  %1169 = vmatprep.subr.mxu0 %v10922_v33  ;;  %v1291_v19 = vand.u32 4294901760, %v10962_v12  ;;  %v11009_v2 = vand.u32 4294901760, %v301_v18  ;;  %v14657_v31 = vand.u32 4294901760, %v11000_v61 }
  0x9a   : > { %1092 = vmatpush1.msra.mxu1 %v10672_v24  ;;  %1171 = vmatpush1.msra.mxu0 %v10917_v27  ;;  %v1274_v24 = vsub.f32 %v10944_v7, %v1273_v4  ;;  %v14658_v6 = vand.u32 4294901760, %v11013_v39  ;;  %v1328_v29 = vsub.f32 %v11018_v53, %v14659_v8 }
  0x9b   : > { %1094 = vmatprep.subr.mxu1 %v10678_v26  ;;  %1173 = vmatprep.subr.mxu0 %v10930_v36  ;;  %v1297_v26 = vand.u32 4294901760, %v10978_v14  ;;  %v11045_v37 = vsub.f32 %v301_v18, %v11009_v2  ;;  %v1316_v48 = vsub.f32 %v11000_v61, %v14657_v31 }
  0x9c   : > { %1049 = vmatprep.mubr.f32.mxu0 %v14678_v1  ;;  %1096 = vmatpush1.msra.mxu1 %v10692_v32  ;;  %v11023_v32 = vand.u32 4294901760, %v277_v49  ;;  %v1275_v20 = vand.u32 4294901760, %v1274_v24  ;;  %v11076_v24 = vsub.f32 %v252_v52, %v11036_v25 }
  0x9d   : > { %1175 = vmatpush1.msra.mxu0 %v10938_v41  ;;  %1098 = vmatprep.subr.mxu1 %v10698_v34  ;;  %v1292_v34 = vsub.f32 %v10962_v12, %v1291_v19 }
  0x9e   : > { %1051 = vmatmul.mubr.f32.gmra.mxu0 %v10833_v40  ;;  %1177 = vmatprep.subr.mxu0 %v10948_v46  ;;  %v11059_v50 = vsub.f32 %v277_v49, %v11023_v32  ;;  %v1333_v49 = vand.u32 4294901760, %v11040_v35 }
  0x9f   : > { %1100 = vmatpush1.msra.mxu1 %v10707_v38  ;;  %1179 = vmatpush1.msra.mxu0 %v10953_v11  ;;  %v1298_v38 = vsub.f32 %v10978_v14, %v1297_v26  ;;  %v1293_v18 = vand.u32 4294901760, %v1292_v34  ;;  %v1322_v34 = vsub.f32 %v11013_v39, %v14658_v6  ;;  %v1317_v6 = vand.u32 4294901760, %v1316_v48 }
  0xa0   : > { %1102 = vmatprep.subr.mxu1 %v10720_v43  ;;  %1181 = vmatprep.subr.mxu0 %v10964_v59  ;;  %v1304_v43 = vsub.f32 %v10983_v15, %v1303_v57  ;;  %v14661_v52 = vand.u32 4294901760, %v11059_v50  ;;  %v1329_v48 = vand.u32 4294901760, %v1328_v29 }
  0xa1   : > { %1104 = vmatpush1.msra.mxu1 %v10739_v51  ;;  %1137 = vmatprep.mubr.f32.mxu1 %v14678_v1  ;;  %v1310_v51 = vsub.f32 %v10995_v55, %v14660_v21  ;;  %v1299_v63 = vand.u32 4294901760, %v1298_v38  ;;  %v1351_v38 = vand.u32 4294901760, %v11064_v60  ;;  %v1363_v21 = vand.u32 4294901760, %v11080_v58 }
  0xa2   : > { %1183 = vmatpush1.msra.mxu0 %v10970_v13  ;;  %1139 = vmatmul.mubr.f32.vlgmr.msra.gmra.mxu1 %v10769_v9  ;;  %v1305_v31 = vand.u32 4294901760, %v1304_v43  ;;  %v1357_v43 = vand.u32 4294901760, %v11076_v24 }
  0xa3   : > { %1185 = vmatprep.subr.mxu0 %v10975_v17  ;;  %1276 = vmatprep.subr.mxu1 %v1275_v20  ;;  %v1339_v20 = vand.u32 4294901760, %v11045_v37 }
  0xa4   : > { %1187 = vmatpush1.msra.mxu0 %v10985_v16  ;;  %1282 = vmatpush1.msra.mxu1 %v1281_v22  ;;  %v1311_v22 = vand.u32 4294901760, %v1310_v51  ;;  %v1323_v51 = vand.u32 4294901760, %v1322_v34 }
  0xa5   : > { %1189 = vmatprep.subr.mxu0 %v11005_v62  ;;  %1288 = vmatprep.subr.mxu1 %v1287_v47  ;;  %v1334_v47 = vsub.f32 %v11040_v35, %v1333_v49  ;;  %v1340_v8 = vsub.f32 %v11045_v37, %v1339_v20 }
  0xa6   : > { %1144 = vmatprep.mubr.f32.mxu1 %v14678_v1  ;;  %1191 = vmatpush1.msra.mxu0 %v11009_v2 }
  0xa7   : > { %1294 = vmatpush1.msra.mxu1 %v1293_v18  ;;  %1193 = vmatprep.subr.mxu0 %v11023_v32  ;;  %v1346_v18 = vsub.f32 %v11059_v50, %v14661_v52  ;;  %v1335_v34 = vand.u32 4294901760, %v1334_v47  ;;  %v1341_v52 = vand.u32 4294901760, %v1340_v8 }
  0xa8   : > { %1146 = vmatmul.mubr.f32.gmra.mxu1 %v10833_v40  ;;  %1300 = vmatprep.subr.mxu1 %v1299_v63  ;;  %v1352_v63 = vsub.f32 %v11064_v60, %v1351_v38 }
  0xa9   : > { %1195 = vmatpush1.msra.mxu0 %v11031_v10  ;;  %1306 = vmatpush1.msra.mxu1 %v1305_v31  ;;  %v1358_v31 = vsub.f32 %v11076_v24, %v1357_v43  ;;  %v1347_v29 = vand.u32 4294901760, %v1346_v18 }
  0xaa   : > { %1197 = vmatprep.subr.mxu0 %v11036_v25  ;;  %1312 = vmatprep.subr.mxu1 %v1311_v22  ;;  %v1364_v22 = vsub.f32 %v11080_v58, %v1363_v21 }
  0xab   : > { %1199 = vmatpush1.msra.mxu0 %v11050_v42  ;;  %1318 = vmatpush1.msra.mxu1 %v1317_v6  ;;  %v1353_v6 = vand.u32 4294901760, %v1352_v63  ;;  %v1359_v47 = vand.u32 4294901760, %v1358_v31  ;;  %v278_v31 = vld [vmem:[#allocation6 + $0xe8] sm:$0xff] }
  0xac   : > { %1232 = vmatprep.mubr.f32.mxu0 %v14678_v1  ;;  %1324 = vmatprep.subr.mxu1 %v1323_v51  ;;  %v1365_v8 = vand.u32 4294901760, %v1364_v22 }
  0xad   : > { %1432 = vmatprep.subr.mxu0 %v10944_v7  ;;  %1238 = vmatmul.mubr.f32.vlgmr.msra.gmra.mxu0 %v10835_v23  ;;  %v429_v7 = vld [vmem:[#allocation6 + $0x5a0] sm:$0xff] }
  0xae   : > { %1330 = vmatpush1.msra.mxu1 %v1329_v48  ;;  %1435 = vmatpush1.msra.mxu0 %v10936_v5  ;;  %v14841_v5 = vand.u32 4294901760, %v10995_v55  ;;  %v279_v48 = vld [vmem:[#allocation6 + $0xf0] sm:$0xff] }
  0xaf   : > { %1336 = vmatprep.subr.mxu1 %v1335_v34  ;;  %1438 = vmatprep.subr.mxu0 %v10956_v56  ;;  %v428_v56 = vld [vmem:[#allocation6 + $0x598] sm:$0xff] }
  0xb0   : > { %1342 = vmatpush1.msra.mxu1 %v1341_v52  ;;  %1441 = vmatpush1.msra.mxu0 %v10962_v12  ;;  %v14842_v12 = vand.u32 4294901760, %v11000_v61  ;;  %v303_v52 = vld [vmem:[#allocation6 + $0x1b0] sm:$0xff] }
  0xb1   : > { %1348 = vmatprep.subr.mxu1 %v1347_v29  ;;  %1444 = vmatprep.subr.mxu0 %v10978_v14  ;;  %v11184_v14 = vand.u32 4294901760, %v429_v7  ;;  %v11254_v51 = vand.u32 4294901760, %v303_v52  ;;  %v254_v29 = vld [vmem:[#allocation6 + $0x28] sm:$0xff] }
  0xb2   : > { %1354 = vmatpush1.msra.mxu1 %v1353_v6  ;;  %1447 = vmatpush1.msra.mxu0 %v10983_v15  ;;  %v403_v15 = vld [vmem:[#allocation6 + $0x4d0] sm:$0xff] }
  0xb3   : > { %1360 = vmatprep.subr.mxu1 %v1359_v47  ;;  %1450 = vmatprep.subr.mxu0 %v10995_v55 }
  0xb4   : > { %1366 = vmatpush1.msra.mxu1 %v1365_v8  ;;  %1399 = vmatprep.mubr.f32.mxu1 %v14678_v1  ;;  %v11287_v8 = vand.u32 4294901760, %v279_v48 }
  0xb5   : > { %1453 = vmatpush1.msra.mxu0 %v11000_v61  ;;  %1401 = vmatmul.mubr.f32.vlgmr.msra.gmra.mxu1 %v10769_v9  ;;  %v379_v61 = vld [vmem:[#allocation6 + $0x410] sm:$0xff] }
  0xb6   : > { %1456 = vmatprep.subr.mxu0 %v11013_v39  ;;  %1544 = vmatprep.subr.mxu1 %v10922_v33 }
  0xb7   : > { %1459 = vmatpush1.msra.mxu0 %v11018_v53  ;;  %1546 = vmatpush1.msra.mxu1 %v10917_v27 }
  0xb8   : > { %1462 = vmatprep.subr.mxu0 %v11040_v35  ;;  %1548 = vmatprep.subr.mxu1 %v10930_v36  ;;  %v353_v35 = vld [vmem:[#allocation6 + $0x340] sm:$0xff] }
  0xb9   : > { %1243 = vmatprep.mubr.f32.mxu0 %v14678_v1  ;;  %1465 = vmatpush1.msra.mxu0 %v11045_v37  ;;  %v329_v37 = vld [vmem:[#allocation6 + $0x280] sm:$0xff] }
  0xba   : > { %1550 = vmatpush1.msra.mxu1 %v10938_v41  ;;  %1249 = vmatmul.mubr.f32.gmra.mxu0 %v10869_v30 }
  0xbb   : > { %1468 = vmatprep.subr.mxu0 %v11059_v50  ;;  %1552 = vmatprep.subr.mxu1 %v10948_v46 }
  0xbc   : > { %1471 = vmatpush1.msra.mxu0 %v11064_v60  ;;  %1554 = vmatpush1.msra.mxu1 %v10953_v11  ;;  %v328_v60 = vld [vmem:[#allocation6 + $0x278] sm:$0xff] }
  0xbd   : > { %1474 = vmatprep.subr.mxu0 %v11076_v24  ;;  %1556 = vmatprep.subr.mxu1 %v10964_v59 }
  0xbe   : > { %1477 = vmatpush1.msra.mxu0 %v11080_v58  ;;  %1510 = vmatprep.mubr.f32.mxu0 %v14678_v1  ;;  %v11249_v58 = vand.u32 4294901760, %v328_v60 }
  0xbf   : > { %1558 = vmatpush1.msra.mxu1 %v10970_v13  ;;  %1406 = vmatprep.mubr.f32.mxu1 %v14678_v1 }
  0xc0   : > { %1513 = vmatmul.mubr.f32.vlgmr.msra.gmra.mxu0 %v10789_v44  ;;  %1560 = vmatprep.subr.mxu1 %v10975_v17  ;;  %v11282_v47 = vsub.f32 %v328_v60, %v11249_v58 }
  0xc1   : > { %1645 = vmatprep.subr.mxu0 %v1273_v4  ;;  %1408 = vmatmul.mubr.f32.gmra.mxu1 %v10833_v40  ;;  %v14843_v4 = vand.u32 4294901760, %v11013_v39  ;;  %v354_v39 = vld [vmem:[#allocation6 + $0x348] sm:$0xff] }
  0xc2   : > { %1562 = vmatpush1.msra.mxu1 %v10985_v16  ;;  %1649 = vmatpush1.msra.mxu0 %v1279_v0  ;;  %v404_v0 = vld [vmem:[#allocation6 + $0x4d8] sm:$0xff] }
  0xc3   : > { %1564 = vmatprep.subr.mxu1 %v11005_v62  ;;  %1653 = vmatprep.subr.mxu0 %v1285_v45  ;;  %v14844_v45 = vand.u32 4294901760, %v11018_v53  ;;  %v11194_v55 = vand.u32 4294901760, %v404_v0  ;;  %v11205_v53 = vsub.f32 %v429_v7, %v11184_v14  ;;  %v253_v7 = vld [vmem:[#allocation6 + $0x20] sm:$0xff] }
  0xc4   : > { %1518 = vmatprep.mubr.f32.mxu0 %v14678_v1  ;;  %1566 = vmatpush1.msra.mxu1 %v11009_v2 }
  0xc5   : > { %1657 = vmatpush1.msra.mxu0 %v1291_v19  ;;  %1568 = vmatprep.subr.mxu1 %v11023_v32  ;;  %v11189_v19 = vand.u32 4294901760, %v428_v56 }
  0xc6   : > { %1521 = vmatmul.mubr.f32.gmra.mxu0 %v10843_v28  ;;  %1661 = vmatprep.subr.mxu0 %v1297_v26  ;;  %v378_v26 = vld [vmem:[#allocation6 + $0x408] sm:$0xff] }
  0xc7   : > { %1570 = vmatpush1.msra.mxu1 %v11031_v10  ;;  %1665 = vmatpush1.msra.mxu0 %v1303_v57  ;;  %v11212_v57 = vand.u32 4294901760, %v379_v61 }
  0xc8   : > { %1572 = vmatprep.subr.mxu1 %v11036_v25  ;;  %1669 = vmatprep.subr.mxu0 %v14841_v5 }
  0xc9   : > { %1574 = vmatpush1.msra.mxu1 %v11050_v42  ;;  %1607 = vmatprep.mubr.f32.mxu1 %v14678_v1 }
  0xca   : > { %1673 = vmatpush1.msra.mxu0 %v14842_v12  ;;  %1611 = vmatmul.mubr.f32.vlgmr.msra.gmra.mxu1 %v10804_v54  ;;  %v11298_v12 = vand.u32 4294901760, %v278_v31 }
  0xcb   : > { %1677 = vmatprep.subr.mxu0 %v14843_v4  ;;  %1770 = vmatprep.subr.mxu1 %v10922_v33  ;;  %v11199_v33 = vand.u32 4294901760, %v403_v15 }
  0xcc   : > { %1681 = vmatpush1.msra.mxu0 %v14844_v45  ;;  %1772 = vmatpush1.msra.mxu1 %v10917_v27  ;;  %v14845_v27 = vand.u32 4294901760, %v11059_v50  ;;  %v11220_v50 = vsub.f32 %v404_v0, %v11194_v55  ;;  %v11328_v60 = vsub.f32 %v278_v31, %v11298_v12 }
  0xcd   : > { %1685 = vmatprep.subr.mxu0 %v1333_v49  ;;  %1774 = vmatprep.subr.mxu1 %v10930_v36  ;;  %v11210_v36 = vsub.f32 %v428_v56, %v11189_v19  ;;  %v11228_v49 = vand.u32 4294901760, %v354_v39  ;;  %v11293_v56 = vsub.f32 %v303_v52, %v11254_v51  ;;  %v14664_v52 = vand.u32 4294901760, %v11282_v47 }
  0xce   : > { %1616 = vmatprep.mubr.f32.mxu1 %v14678_v1  ;;  %1689 = vmatpush1.msra.mxu0 %v1339_v20  ;;  %v1969_v20 = vand.u32 4294901760, %v11205_v53 }
  0xcf   : > { %1776 = vmatpush1.msra.mxu1 %v10938_v41  ;;  %1693 = vmatprep.subr.mxu0 %v14845_v27  ;;  %v11217_v41 = vand.u32 4294901760, %v378_v26  ;;  %v1975_v24 = vand.u32 4294901760, %v11210_v36 }
  0xd0   : > { %1620 = vmatmul.mubr.f32.gmra.mxu1 %v10854_v3  ;;  %1778 = vmatprep.subr.mxu1 %v10948_v46  ;;  %v11226_v46 = vsub.f32 %v403_v15, %v11199_v33  ;;  %v11303_v15 = vand.u32 4294901760, %v254_v29 }
  0xd1   : > { %1697 = vmatpush1.msra.mxu0 %v1351_v38  ;;  %1780 = vmatpush1.msra.mxu1 %v10953_v11  ;;  %v11233_v11 = vand.u32 4294901760, %v353_v35  ;;  %v304_v38 = vld [vmem:[#allocation6 + $0x1b8] sm:$0xff] }
  0xd2   : > { %1701 = vmatprep.subr.mxu0 %v1357_v43  ;;  %1782 = vmatprep.subr.mxu1 %v10964_v59  ;;  %v11238_v59 = vand.u32 4294901760, %v329_v37  ;;  %v11242_v43 = vsub.f32 %v379_v61, %v11212_v57  ;;  %v1987_v18 = vand.u32 4294901760, %v11226_v46  ;;  %v11268_v34 = vand.u32 4294901760, %v304_v38 }
  0xd3   : > { %1705 = vmatpush1.msra.mxu0 %v1363_v21  ;;  %1738 = vmatprep.mubr.f32.mxu0 %v14678_v1  ;;  %v11247_v21 = vsub.f32 %v378_v26, %v11217_v41  ;;  %v11263_v63 = vsub.f32 %v353_v35, %v11233_v11 }
  0xd4   : > { %1784 = vmatpush1.msra.mxu1 %v10970_v13  ;;  %1740 = vmatmul.mubr.f32.vlgmr.msra.gmra.mxu0 %v10769_v9  ;;  %v1981_v13 = vand.u32 4294901760, %v11220_v50  ;;  %v1993_v22 = vand.u32 4294901760, %v11242_v43  ;;  %v11277_v6 = vsub.f32 %v329_v37, %v11238_v59  ;;  %v11307_v61 = vsub.f32 %v304_v38, %v11268_v34 }
  0xd5   : > { %1786 = vmatprep.subr.mxu1 %v10975_v17  ;;  %1865 = vmatprep.subr.mxu0 %v11184_v14  ;;  %v11258_v17 = vsub.f32 %v354_v39, %v11228_v49  ;;  %v1999_v5 = vand.u32 4294901760, %v11247_v21  ;;  %v14662_v45 = vand.u32 4294901760, %v11263_v63  ;;  %v11323_v37 = vsub.f32 %v279_v48, %v11287_v8 }
  0xd6   : > { %1788 = vmatpush1.msra.mxu1 %v10985_v16  ;;  %1867 = vmatpush1.msra.mxu0 %v11189_v19  ;;  %v1970_v16 = vsub.f32 %v11205_v53, %v1969_v20  ;;  %v1994_v27 = vsub.f32 %v11242_v43, %v1993_v22  ;;  %v14663_v39 = vand.u32 4294901760, %v11277_v6 }
  0xd7   : > { %1790 = vmatprep.subr.mxu1 %v11005_v62  ;;  %1869 = vmatprep.subr.mxu0 %v11194_v55  ;;  %v1976_v62 = vsub.f32 %v11210_v36, %v1975_v24  ;;  %v14665_v0 = vand.u32 4294901760, %v11258_v17  ;;  %v2012_v48 = vsub.f32 %v11263_v63, %v14662_v45 }
  0xd8   : > { %1745 = vmatprep.mubr.f32.mxu0 %v14678_v1  ;;  %1792 = vmatpush1.msra.mxu1 %v11009_v2  ;;  %v1982_v2 = vsub.f32 %v11220_v50, %v1981_v13  ;;  %v1971_v4 = vand.u32 4294901760, %v1970_v16  ;;  %v2029_v16 = vand.u32 4294901760, %v11307_v61  ;;  %v1995_v31 = vand.u32 4294901760, %v1994_v27 }
  0xd9   : > { %1871 = vmatpush1.msra.mxu0 %v11199_v33  ;;  %1794 = vmatprep.subr.mxu1 %v11023_v32  ;;  %v1988_v32 = vsub.f32 %v11226_v46, %v1987_v18  ;;  %v1977_v26 = vand.u32 4294901760, %v1976_v62  ;;  %v11340_v62 = vsub.f32 %v254_v29, %v11303_v15  ;;  %v14666_v29 = vand.u32 4294901760, %v11323_v37 }
  0xda   : > { %1747 = vmatmul.mubr.f32.gmra.mxu0 %v10833_v40  ;;  %1873 = vmatprep.subr.mxu0 %v11212_v57  ;;  %v1983_v35 = vand.u32 4294901760, %v1982_v2  ;;  %v2047_v27 = vand.u32 4294901760, %v11328_v60 }
  0xdb   : > { %1796 = vmatpush1.msra.mxu1 %v11031_v10  ;;  %1875 = vmatpush1.msra.mxu0 %v11217_v41  ;;  %v11314_v10 = vand.u32 4294901760, %v253_v7  ;;  %v1989_v38 = vand.u32 4294901760, %v1988_v32  ;;  %v2018_v32 = vsub.f32 %v11277_v6, %v14663_v39  ;;  %v2013_v39 = vand.u32 4294901760, %v2012_v48 }
  0xdc   : > { %1798 = vmatprep.subr.mxu1 %v11036_v25  ;;  %1877 = vmatprep.subr.mxu0 %v11228_v49  ;;  %v2000_v25 = vsub.f32 %v11247_v21, %v1999_v5 }
  0xdd   : > { %1800 = vmatpush1.msra.mxu1 %v11050_v42  ;;  %1833 = vmatprep.mubr.f32.mxu1 %v14678_v1  ;;  %v2006_v42 = vsub.f32 %v11258_v17, %v14665_v0  ;;  %v11344_v2 = vsub.f32 %v253_v7, %v11314_v10  ;;  %v2024_v7 = vsub.f32 %v11282_v47, %v14664_v52 }
  0xde   : > { %1879 = vmatpush1.msra.mxu0 %v11233_v11  ;;  %1835 = vmatmul.mubr.f32.vlgmr.msra.gmra.mxu1 %v10769_v9  ;;  %v2001_v45 = vand.u32 4294901760, %v2000_v25  ;;  %v2053_v25 = vand.u32 4294901760, %v11340_v62 }
  0xdf   : > { %1881 = vmatprep.subr.mxu0 %v11238_v59  ;;  %1972 = vmatprep.subr.mxu1 %v1971_v4  ;;  %v2035_v4 = vand.u32 4294901760, %v11293_v56  ;;  %v2059_v0 = vand.u32 4294901760, %v11344_v2  ;;  %v2025_v48 = vand.u32 4294901760, %v2024_v7 }
  0xe0   : > { %1883 = vmatpush1.msra.mxu0 %v11249_v58  ;;  %1978 = vmatpush1.msra.mxu1 %v1977_v26  ;;  %v2007_v26 = vand.u32 4294901760, %v2006_v42  ;;  %v2019_v42 = vand.u32 4294901760, %v2018_v32 }
  0xe1   : > { %1885 = vmatprep.subr.mxu0 %v11268_v34  ;;  %1984 = vmatprep.subr.mxu1 %v1983_v35  ;;  %v2030_v35 = vsub.f32 %v11307_v61, %v2029_v16  ;;  %v2036_v52 = vsub.f32 %v11293_v56, %v2035_v4 }
  0xe2   : > { %1840 = vmatprep.mubr.f32.mxu1 %v14678_v1  ;;  %1887 = vmatpush1.msra.mxu0 %v11254_v51 }
  0xe3   : > { %1990 = vmatpush1.msra.mxu1 %v1989_v38  ;;  %1889 = vmatprep.subr.mxu0 %v11287_v8  ;;  %v2042_v38 = vsub.f32 %v11323_v37, %v14666_v29  ;;  %v2031_v32 = vand.u32 4294901760, %v2030_v35  ;;  %v2037_v29 = vand.u32 4294901760, %v2036_v52 }
  0xe4   : > { %1842 = vmatmul.mubr.f32.gmra.mxu1 %v10833_v40  ;;  %1996 = vmatprep.subr.mxu1 %v1995_v31  ;;  %v2048_v31 = vsub.f32 %v11328_v60, %v2047_v27 }
  0xe5   : > { %1891 = vmatpush1.msra.mxu0 %v11298_v12  ;;  %2002 = vmatpush1.msra.mxu1 %v2001_v45  ;;  %v2054_v45 = vsub.f32 %v11340_v62, %v2053_v25  ;;  %v2043_v7 = vand.u32 4294901760, %v2042_v38 }
  0xe6   : > { %1893 = vmatprep.subr.mxu0 %v11303_v15  ;;  %2008 = vmatprep.subr.mxu1 %v2007_v26  ;;  %v2060_v26 = vsub.f32 %v11344_v2, %v2059_v0 }
  0xe7   : > { %1895 = vmatpush1.msra.mxu0 %v11314_v10  ;;  %2014 = vmatpush1.msra.mxu1 %v2013_v39  ;;  %v2049_v39 = vand.u32 4294901760, %v2048_v31  ;;  %v2055_v35 = vand.u32 4294901760, %v2054_v45 }
  0xe8   : > { %1928 = vmatprep.mubr.f32.mxu0 %v14678_v1  ;;  %2020 = vmatprep.subr.mxu1 %v2019_v42  ;;  %v2061_v52 = vand.u32 4294901760, %v2060_v26  ;;  %v9951_v42 = vld [vmem:[#allocation2] ss:$0 sm:$0xff] }
  0xe9   : > { %2128 = vmatprep.subr.mxu0 %v11205_v53  ;;  %1934 = vmatmul.mubr.f32.vlgmr.msra.gmra.mxu0 %v10835_v23  ;;  %v14846_v53 = vand.u32 4294901760, %v11258_v17 }
  0xea   : > { %2026 = vmatpush1.msra.mxu1 %v2025_v48  ;;  %2131 = vmatpush1.msra.mxu0 %v11210_v36  ;;  %v431_v36 = vld [vmem:[#allocation6 + $0x5b0] sm:$0xff] }
  0xeb   : > { %2032 = vmatprep.subr.mxu1 %v2031_v32  ;;  %2134 = vmatprep.subr.mxu0 %v11220_v50  ;;  %v430_v50 = vld [vmem:[#allocation6 + $0x5a8] sm:$0xff]  ;;  %v281_v32 = vld [vmem:[#allocation6 + $0x100] sm:$0xff] }
  0xec   : > { %2038 = vmatpush1.msra.mxu1 %v2037_v29  ;;  %2137 = vmatpush1.msra.mxu0 %v11226_v46  ;;  %v10470_v29 = vmov 0   ;;  %v14847_v46 = vand.u32 4294901760, %v11263_v63 }
  0xed   : > { %2044 = vmatprep.subr.mxu1 %v2043_v7  ;;  %2140 = vmatprep.subr.mxu0 %v11242_v43  ;;  %v11448_v43 = vand.u32 4294901760, %v431_v36  ;;  %v280_v7 = vld [vmem:[#allocation6 + $0xf8] sm:$0xff] }
  0xee   : > { %2050 = vmatpush1.msra.mxu1 %v2049_v39  ;;  %2143 = vmatpush1.msra.mxu0 %v11247_v21  ;;  %v405_v21 = vld [vmem:[#allocation6 + $0x4e0] sm:$0xff] }
  0xef   : > { %2056 = vmatprep.subr.mxu1 %v2055_v35  ;;  %2146 = vmatprep.subr.mxu0 %v11258_v17  ;;  %v256_v35 = vld [vmem:[#allocation6 + $0x38] sm:$0xff] }
  0xf0   : > { %2062 = vmatpush1.msra.mxu1 %v2061_v52  ;;  %2095 = vmatprep.mubr.f32.mxu1 %v14678_v1 }
  0xf1   : > { %2149 = vmatpush1.msra.mxu0 %v11263_v63  ;;  %2097 = vmatmul.mubr.f32.vlgmr.msra.gmra.mxu1 %v10769_v9  ;;  %v381_v63 = vld [vmem:[#allocation6 + $0x420] sm:$0xff] }
  0xf2   : > { %2152 = vmatprep.subr.mxu0 %v11277_v6  ;;  %2240 = vmatprep.subr.mxu1 %v11184_v14 }
  0xf3   : > { %2155 = vmatpush1.msra.mxu0 %v11282_v47  ;;  %2242 = vmatpush1.msra.mxu1 %v11189_v19 }
  0xf4   : > { %2158 = vmatprep.subr.mxu0 %v11307_v61  ;;  %2244 = vmatprep.subr.mxu1 %v11194_v55  ;;  %v331_v61 = vld [vmem:[#allocation6 + $0x290] sm:$0xff] }
  0xf5   : > { %1939 = vmatprep.mubr.f32.mxu0 %v14678_v1  ;;  %2161 = vmatpush1.msra.mxu0 %v11293_v56  ;;  %v355_v56 = vld [vmem:[#allocation6 + $0x350] sm:$0xff] }
  0xf6   : > { %2246 = vmatpush1.msra.mxu1 %v11199_v33  ;;  %1945 = vmatmul.mubr.f32.gmra.mxu0 %v10869_v30 }
  0xf7   : > { %2164 = vmatprep.subr.mxu0 %v11323_v37  ;;  %2248 = vmatprep.subr.mxu1 %v11212_v57 }
  0xf8   : > { %2167 = vmatpush1.msra.mxu0 %v11328_v60  ;;  %2250 = vmatpush1.msra.mxu1 %v11217_v41  ;;  %v330_v60 = vld [vmem:[#allocation6 + $0x288] sm:$0xff] }
  0xf9   : > { %2170 = vmatprep.subr.mxu0 %v11340_v62  ;;  %2252 = vmatprep.subr.mxu1 %v11228_v49 }
  0xfa   : > { %2173 = vmatpush1.msra.mxu0 %v11344_v2  ;;  %2206 = vmatprep.mubr.f32.mxu0 %v14678_v1  ;;  %v11513_v2 = vand.u32 4294901760, %v330_v60 }
  0xfb   : > { %2254 = vmatpush1.msra.mxu1 %v11233_v11  ;;  %10209 = vset.pattern.permute.xlu0 %v10470_v29 }
  0xfc   : > { %2102 = vmatprep.mubr.f32.mxu1 %v14678_v1  ;;  %2209 = vmatmul.mubr.f32.vlgmr.msra.gmra.mxu0 %v10789_v44  ;;  %v11546_v29 = vsub.f32 %v330_v60, %v11513_v2 }
  0xfd   : > { %2256 = vmatprep.subr.mxu1 %v11238_v59  ;;  %2341 = vmatprep.subr.mxu0 %v1969_v20  ;;  %v406_v20 = vld [vmem:[#allocation6 + $0x4e8] sm:$0xff] }
  0xfe   : > { %9578 = vperm.xlu0 %10209, %v9951_v42   ;;  %2104 = vmatmul.mubr.f32.gmra.mxu1 %v10833_v40  ;;  %v11458_v17 = vand.u32 4294901760, %v406_v20  ;;  %v11551_v42 = vand.u32 4294901760, %v281_v32 }
  0xff   : > { %2258 = vmatpush1.msra.mxu1 %v11249_v58  ;;  %2345 = vmatpush1.msra.mxu0 %v1975_v24  ;;  %v14848_v24 = vand.u32 4294901760, %v11277_v6  ;;  %v356_v6 = vld [vmem:[#allocation6 + $0x358] sm:$0xff] }
 0x100   : > { %2260 = vmatprep.subr.mxu1 %v11268_v34  ;;  %2349 = vmatprep.subr.mxu0 %v1981_v13  ;;  %v14849_v13 = vand.u32 4294901760, %v11282_v47  ;;  %v11469_v47 = vsub.f32 %v431_v36, %v11448_v43  ;;  %v255_v36 = vld [vmem:[#allocation6 + $0x30] sm:$0xff] }
 0x101   : > { %2214 = vmatprep.mubr.f32.mxu0 %v14678_v1  ;;  %2262 = vmatpush1.msra.mxu1 %v11254_v51 }
 0x102   : > { %2353 = vmatpush1.msra.mxu0 %v1987_v18  ;;  %2264 = vmatprep.subr.mxu1 %v11287_v8  ;;  %v11453_v18 = vand.u32 4294901760, %v430_v50 }
 0x103   : > { %2217 = vmatmul.mubr.f32.gmra.mxu0 %v10843_v28  ;;  %2357 = vmatprep.subr.mxu0 %v1993_v22  ;;  %v380_v22 = vld [vmem:[#allocation6 + $0x418] sm:$0xff] }
 0x104   : > { %2266 = vmatpush1.msra.mxu1 %v11298_v12  ;;  %2361 = vmatpush1.msra.mxu0 %v1999_v5  ;;  %v11476_v5 = vand.u32 4294901760, %v381_v63 }
 0x105   : > { %2268 = vmatprep.subr.mxu1 %v11303_v15  ;;  %2365 = vmatprep.subr.mxu0 %v14846_v53 }
 0x106   : > { %2270 = vmatpush1.msra.mxu1 %v11314_v10  ;;  %2303 = vmatprep.mubr.f32.mxu1 %v14678_v1  ;;  %v11506_v38 = vsub.f32 %v381_v63, %v11476_v5 }
 0x107   : > { %2369 = vmatpush1.msra.mxu0 %v14847_v46  ;;  %2307 = vmatmul.mubr.f32.vlgmr.msra.gmra.mxu1 %v10804_v54  ;;  %v11562_v46 = vand.u32 4294901760, %v280_v7 }
 0x108   : > { %2373 = vmatprep.subr.mxu0 %v14848_v24  ;;  %2466 = vmatprep.subr.mxu1 %v11184_v14  ;;  %v11463_v14 = vand.u32 4294901760, %v405_v21  ;;  %v2689_v39 = vand.u32 4294901760, %v11506_v38 }
 0x109   : > { %2377 = vmatpush1.msra.mxu0 %v14849_v13  ;;  %2468 = vmatpush1.msra.mxu1 %v11189_v19  ;;  %v14850_v19 = vand.u32 4294901760, %v11323_v37  ;;  %v11484_v37 = vsub.f32 %v406_v20, %v11458_v17  ;;  %v11592_v60 = vsub.f32 %v280_v7, %v11562_v46 }
 0x10a   : > { %2381 = vmatprep.subr.mxu0 %v2029_v16  ;;  %2470 = vmatprep.subr.mxu1 %v11194_v55  ;;  %v11474_v55 = vsub.f32 %v430_v50, %v11453_v18  ;;  %v11492_v16 = vand.u32 4294901760, %v356_v6 }
 0x10b   : > { %2312 = vmatprep.mubr.f32.mxu1 %v14678_v1  ;;  %2385 = vmatpush1.msra.mxu0 %v2035_v4  ;;  %v2665_v4 = vand.u32 4294901760, %v11469_v47 }
 0x10c   : > { %2472 = vmatpush1.msra.mxu1 %v11199_v33  ;;  %2389 = vmatprep.subr.mxu0 %v14850_v19  ;;  %v11481_v33 = vand.u32 4294901760, %v380_v22  ;;  %v2671_v62 = vand.u32 4294901760, %v11474_v55  ;;  %v2690_v19 = vsub.f32 %v11506_v38, %v2689_v39 }
 0x10d   : > { %2316 = vmatmul.mubr.f32.gmra.mxu1 %v10854_v3  ;;  %2474 = vmatprep.subr.mxu1 %v11212_v57  ;;  %v11490_v57 = vsub.f32 %v405_v21, %v11463_v14  ;;  %v11567_v21 = vand.u32 4294901760, %v256_v35 }
 0x10e   : > { %2393 = vmatpush1.msra.mxu0 %v2047_v27  ;;  %2476 = vmatpush1.msra.mxu1 %v11217_v41  ;;  %v11497_v41 = vand.u32 4294901760, %v355_v56  ;;  %v305_v27 = vld [vmem:[#allocation6 + $0x1c0] sm:$0xff]  ;;  %v2691_v7 = vand.u32 4294901760, %v2690_v19  ;;  %v2743_v19 = vand.u32 4294901760, %v11592_v60 }
 0x10f   : > { %2397 = vmatprep.subr.mxu0 %v2053_v25  ;;  %2478 = vmatprep.subr.mxu1 %v11228_v49  ;;  %v11502_v49 = vand.u32 4294901760, %v331_v61  ;;  %v306_v25 = vld [vmem:[#allocation6 + $0x1c8] sm:$0xff]  ;;  %v11518_v48 = vand.u32 4294901760, %v305_v27  ;;  %v2683_v31 = vand.u32 4294901760, %v11490_v57 }
 0x110   : > { %2401 = vmatpush1.msra.mxu0 %v2059_v0  ;;  %2434 = vmatprep.mubr.f32.mxu0 %v14678_v1  ;;  %v11511_v0 = vsub.f32 %v380_v22, %v11481_v33  ;;  %v11527_v45 = vsub.f32 %v355_v56, %v11497_v41  ;;  %v11532_v26 = vand.u32 4294901760, %v306_v25 }
 0x111   : > { %2480 = vmatpush1.msra.mxu1 %v11233_v11  ;;  %2436 = vmatmul.mubr.f32.vlgmr.msra.gmra.mxu0 %v10769_v9  ;;  %v2677_v11 = vand.u32 4294901760, %v11484_v37  ;;  %v11541_v52 = vsub.f32 %v331_v61, %v11502_v49  ;;  %v11557_v50 = vsub.f32 %v305_v27, %v11518_v48  ;;  %v11587_v61 = vsub.f32 %v281_v32, %v11551_v42 }
 0x112   : > { %2482 = vmatprep.subr.mxu1 %v11238_v59  ;;  %2561 = vmatprep.subr.mxu0 %v11448_v43  ;;  %v11522_v59 = vsub.f32 %v356_v6, %v11492_v16  ;;  %v2695_v53 = vand.u32 4294901760, %v11511_v0  ;;  %v14667_v13 = vand.u32 4294901760, %v11527_v45  ;;  %v11571_v63 = vsub.f32 %v306_v25, %v11532_v26 }
 0x113   : > { %2484 = vmatpush1.msra.mxu1 %v11249_v58  ;;  %2563 = vmatpush1.msra.mxu0 %v11453_v18  ;;  %v2666_v58 = vsub.f32 %v11469_v47, %v2665_v4  ;;  %v14668_v6 = vand.u32 4294901760, %v11541_v52  ;;  %v14669_v27 = vand.u32 4294901760, %v11546_v29 }
 0x114   : > { %2486 = vmatprep.subr.mxu1 %v11268_v34  ;;  %2565 = vmatprep.subr.mxu0 %v11458_v17  ;;  %v2672_v34 = vsub.f32 %v11474_v55, %v2671_v62  ;;  %v14670_v20 = vand.u32 4294901760, %v11522_v59  ;;  %v2708_v32 = vsub.f32 %v11527_v45, %v14667_v13 }
 0x115   : > { %2441 = vmatprep.mubr.f32.mxu0 %v14678_v1  ;;  %2488 = vmatpush1.msra.mxu1 %v11254_v51  ;;  %v2678_v51 = vsub.f32 %v11484_v37, %v2677_v11  ;;  %v2667_v24 = vand.u32 4294901760, %v2666_v58  ;;  %v2725_v58 = vand.u32 4294901760, %v11571_v63 }
 0x116   : > { %2567 = vmatpush1.msra.mxu0 %v11463_v14  ;;  %2490 = vmatprep.subr.mxu1 %v11287_v8  ;;  %v2684_v8 = vsub.f32 %v11490_v57, %v2683_v31  ;;  %v2673_v22 = vand.u32 4294901760, %v2672_v34  ;;  %v11604_v34 = vsub.f32 %v256_v35, %v11567_v21  ;;  %v14671_v35 = vand.u32 4294901760, %v11587_v61 }
 0x117   : > { %2443 = vmatmul.mubr.f32.gmra.mxu0 %v10833_v40  ;;  %2569 = vmatprep.subr.mxu0 %v11476_v5  ;;  %v2679_v56 = vand.u32 4294901760, %v2678_v51 }
 0x118   : > { %2492 = vmatpush1.msra.mxu1 %v11298_v12  ;;  %2571 = vmatpush1.msra.mxu0 %v11481_v33  ;;  %v11578_v12 = vand.u32 4294901760, %v255_v36  ;;  %v2685_v25 = vand.u32 4294901760, %v2684_v8  ;;  %v2714_v8 = vsub.f32 %v11541_v52, %v14668_v6  ;;  %v2709_v6 = vand.u32 4294901760, %v2708_v32 }
 0x119   : > { %2494 = vmatprep.subr.mxu1 %v11303_v15  ;;  %2573 = vmatprep.subr.mxu0 %v11492_v16  ;;  %v2696_v15 = vsub.f32 %v11511_v0, %v2695_v53 }
 0x11a   : > { %2496 = vmatpush1.msra.mxu1 %v11314_v10  ;;  %2529 = vmatprep.mubr.f32.mxu1 %v14678_v1  ;;  %v2702_v10 = vsub.f32 %v11522_v59, %v14670_v20  ;;  %v11608_v51 = vsub.f32 %v255_v36, %v11578_v12  ;;  %v2720_v36 = vsub.f32 %v11546_v29, %v14669_v27 }
 0x11b   : > { %2575 = vmatpush1.msra.mxu0 %v11497_v41  ;;  %2531 = vmatmul.mubr.f32.vlgmr.msra.gmra.mxu1 %v10769_v9  ;;  %v2697_v13 = vand.u32 4294901760, %v2696_v15  ;;  %v2749_v15 = vand.u32 4294901760, %v11604_v34 }
 0x11c   : > { %2577 = vmatprep.subr.mxu0 %v11502_v49  ;;  %2668 = vmatprep.subr.mxu1 %v2667_v24  ;;  %v2731_v24 = vand.u32 4294901760, %v11557_v50  ;;  %v2755_v20 = vand.u32 4294901760, %v11608_v51  ;;  %v2721_v32 = vand.u32 4294901760, %v2720_v36 }
 0x11d   : > { %2579 = vmatpush1.msra.mxu0 %v11513_v2  ;;  %2674 = vmatpush1.msra.mxu1 %v2673_v22  ;;  %v2703_v22 = vand.u32 4294901760, %v2702_v10  ;;  %v2715_v10 = vand.u32 4294901760, %v2714_v8 }
 0x11e   : > { %2581 = vmatprep.subr.mxu0 %v11532_v26  ;;  %2680 = vmatprep.subr.mxu1 %v2679_v56  ;;  %v2726_v56 = vsub.f32 %v11571_v63, %v2725_v58  ;;  %v2732_v27 = vsub.f32 %v11557_v50, %v2731_v24 }
 0x11f   : > { %2536 = vmatprep.mubr.f32.mxu1 %v14678_v1  ;;  %2583 = vmatpush1.msra.mxu0 %v11518_v48 }
 0x120   : > { %2686 = vmatpush1.msra.mxu1 %v2685_v25  ;;  %2585 = vmatprep.subr.mxu0 %v11551_v42  ;;  %v2738_v25 = vsub.f32 %v11587_v61, %v14671_v35  ;;  %v2727_v8 = vand.u32 4294901760, %v2726_v56  ;;  %v2733_v35 = vand.u32 4294901760, %v2732_v27 }
 0x121   : > { %2538 = vmatmul.mubr.f32.gmra.mxu1 %v10833_v40  ;;  %2692 = vmatprep.subr.mxu1 %v2691_v7  ;;  %v2744_v7 = vsub.f32 %v11592_v60, %v2743_v19 }
 0x122   : > { %2587 = vmatpush1.msra.mxu0 %v11562_v46  ;;  %2698 = vmatpush1.msra.mxu1 %v2697_v13  ;;  %v2750_v13 = vsub.f32 %v11604_v34, %v2749_v15  ;;  %v2739_v36 = vand.u32 4294901760, %v2738_v25  ;;  %v332_v25 = vld [vmem:[#allocation6 + $0x298] sm:$0xff] }
 0x123   : > { %2589 = vmatprep.subr.mxu0 %v11567_v21  ;;  %2704 = vmatprep.subr.mxu1 %v2703_v22  ;;  %v2756_v22 = vsub.f32 %v11608_v51, %v2755_v20 }
 0x124   : > { %2591 = vmatpush1.msra.mxu0 %v11578_v12  ;;  %2710 = vmatpush1.msra.mxu1 %v2709_v6  ;;  %v2745_v6 = vand.u32 4294901760, %v2744_v7  ;;  %v2751_v56 = vand.u32 4294901760, %v2750_v13  ;;  %v307_v7 = vld [vmem:[#allocation6 + $0x1d0] sm:$0xff] }
 0x125   : > { %2624 = vmatprep.mubr.f32.mxu0 %v14678_v1  ;;  %2716 = vmatprep.subr.mxu1 %v2715_v10  ;;  %v2757_v27 = vand.u32 4294901760, %v2756_v22  ;;  %v283_v22 = vld [vmem:[#allocation6 + $0x110] sm:$0xff] }
 0x126   : > { %2824 = vmatprep.subr.mxu0 %v11469_v47  ;;  %2630 = vmatmul.mubr.f32.vlgmr.msra.gmra.mxu0 %v10835_v23  ;;  %v433_v47 = vld [vmem:[#allocation6 + $0x5c0] sm:$0xff] }
 0x127   : > { %2722 = vmatpush1.msra.mxu1 %v2721_v32  ;;  %2827 = vmatpush1.msra.mxu0 %v11474_v55  ;;  %v432_v55 = vld [vmem:[#allocation6 + $0x5b8] sm:$0xff] }
 0x128   : > { %2728 = vmatprep.subr.mxu1 %v2727_v8  ;;  %2830 = vmatprep.subr.mxu0 %v11484_v37  ;;  %v14851_v37 = vand.u32 4294901760, %v11522_v59 }
 0x129   : > { %2734 = vmatpush1.msra.mxu1 %v2733_v35  ;;  %2833 = vmatpush1.msra.mxu0 %v11490_v57  ;;  %v11706_v57 = vand.u32 4294901760, %v433_v47 }
 0x12a   : > { %2740 = vmatprep.subr.mxu1 %v2739_v36  ;;  %2836 = vmatprep.subr.mxu0 %v11506_v38  ;;  %v408_v38 = vld [vmem:[#allocation6 + $0x4f8] sm:$0xff] }
 0x12b   : > { %2746 = vmatpush1.msra.mxu1 %v2745_v6  ;;  %2839 = vmatpush1.msra.mxu0 %v11511_v0  ;;  %v14853_v0 = vand.u32 4294901760, %v11541_v52 }
 0x12c   : > { %2752 = vmatprep.subr.mxu1 %v2751_v56  ;;  %2842 = vmatprep.subr.mxu0 %v11522_v59  ;;  %v11722_v59 = vand.u32 4294901760, %v408_v38 }
 0x12d   : > { %2758 = vmatpush1.msra.mxu1 %v2757_v27  ;;  %2791 = vmatprep.mubr.f32.mxu1 %v14678_v1  ;;  %v282_v27 = vld [vmem:[#allocation6 + $0x108] sm:$0xff] }
 0x12e   : > { %2845 = vmatpush1.msra.mxu0 %v11527_v45  ;;  %2793 = vmatmul.mubr.f32.vlgmr.msra.gmra.mxu1 %v10769_v9 }
 0x12f   : > { %2848 = vmatprep.subr.mxu0 %v11541_v52  ;;  %2936 = vmatprep.subr.mxu1 %v11448_v43 }
 0x130   : > { %2851 = vmatpush1.msra.mxu0 %v11546_v29  ;;  %2938 = vmatpush1.msra.mxu1 %v11453_v18 }
 0x131   : > { %2854 = vmatprep.subr.mxu0 %v11571_v63  ;;  %2940 = vmatprep.subr.mxu1 %v11458_v17 }
 0x132   : > { %2635 = vmatprep.mubr.f32.mxu0 %v14678_v1  ;;  %2857 = vmatpush1.msra.mxu0 %v11557_v50  ;;  %v357_v50 = vld [vmem:[#allocation6 + $0x360] sm:$0xff] }
 0x133   : > { %2942 = vmatpush1.msra.mxu1 %v11463_v14  ;;  %2641 = vmatmul.mubr.f32.gmra.mxu0 %v10869_v30  ;;  %v11727_v52 = vpop.f32.mrf.mxu0 }
 0x134   : > { %2860 = vmatprep.subr.mxu0 %v11587_v61  ;;  %2944 = vmatprep.subr.mxu1 %v11476_v5 }
 0x135   : > { %2863 = vmatpush1.msra.mxu0 %v11592_v60  ;;  %2946 = vmatpush1.msra.mxu1 %v11481_v33  ;;  %v11753_v35 = vpop.f32.mrf.mxu0 }
 0x136   : > { %2866 = vmatprep.subr.mxu0 %v11604_v34  ;;  %2948 = vmatprep.subr.mxu1 %v11492_v16  ;;  %v308_v34 = vld [vmem:[#allocation6 + $0x1d8] sm:$0xff] }
 0x137   : > { %2869 = vmatpush1.msra.mxu0 %v11608_v51  ;;  %2902 = vmatprep.mubr.f32.mxu0 %v14678_v1 }
 0x138   : > { %2950 = vmatpush1.msra.mxu1 %v11497_v41  ;;  %2798 = vmatprep.mubr.f32.mxu1 %v14678_v1 }
 0x139   : > { %2905 = vmatmul.mubr.f32.vlgmr.msra.gmra.mxu0 %v10789_v44  ;;  %2952 = vmatprep.subr.mxu1 %v11502_v49  ;;  %v11755_v10 = vpop.f32.mrf.mxu1 }
 0x13a   : > { %3037 = vmatprep.subr.mxu0 %v2665_v4  ;;  %2800 = vmatmul.mubr.f32.gmra.mxu1 %v10833_v40  ;;  %v14852_v4 = vand.u32 4294901760, %v11527_v45  ;;  %v383_v45 = vld [vmem:[#allocation6 + $0x430] sm:$0xff] }
 0x13b   : > { %2954 = vmatpush1.msra.mxu1 %v11513_v2  ;;  %3041 = vmatpush1.msra.mxu0 %v2671_v62  ;;  %v11711_v62 = vand.u32 4294901760, %v432_v55  ;;  %v11742_v63 = vand.u32 4294901760, %v383_v45  ;;  %v11791_v8 = vpop.f32.mrf.mxu1 }
 0x13c   : > { %2956 = vmatprep.subr.mxu1 %v11532_v26  ;;  %3045 = vmatprep.subr.mxu0 %v2677_v11  ;;  %v14854_v11 = vand.u32 4294901760, %v11546_v29 }
 0x13d   : > { %2910 = vmatprep.mubr.f32.mxu0 %v14678_v1  ;;  %2958 = vmatpush1.msra.mxu1 %v11518_v48  ;;  %v11778_v51 = vsub.f32 %v383_v45, %v11742_v63  ;;  %v257_v45 = vld [vmem:[#allocation6 + $0x40] sm:$0xff] }
 0x13e   : > { %3049 = vmatpush1.msra.mxu0 %v2683_v31  ;;  %2960 = vmatprep.subr.mxu1 %v11551_v42  ;;  %v407_v31 = vld [vmem:[#allocation6 + $0x4f0] sm:$0xff] }
 0x13f   : > { %2913 = vmatmul.mubr.f32.gmra.mxu0 %v10843_v28  ;;  %3053 = vmatprep.subr.mxu0 %v2689_v39  ;;  %v11725_v39 = vsub.f32 %v433_v47, %v11706_v57  ;;  %v11738_v29 = vand.u32 4294901760, %v407_v31  ;;  %v11771_v32 = vpop.f32.mrf.mxu0  ;;  %v14862_v28 = vmov 0.0  }
 0x140   : > { %2962 = vmatpush1.msra.mxu1 %v11562_v46  ;;  %3057 = vmatpush1.msra.mxu0 %v2695_v53  ;;  %v358_v53 = vld [vmem:[#allocation6 + $0x368] sm:$0xff] }
 0x141   : > { %2964 = vmatprep.subr.mxu1 %v11567_v21  ;;  %3061 = vmatprep.subr.mxu0 %v14851_v37  ;;  %v11767_v60 = vsub.f32 %v407_v31, %v11738_v29  ;;  %v11813_v47 = vpop.f32.mrf.mxu0  ;;  %v11819_v37 = vand.u32 4294901760, %v307_v7  ;;  %v11831_v31 = vand.u32 4294901760, %v283_v22 }
 0x142   : > { %2966 = vmatpush1.msra.mxu1 %v11578_v12  ;;  %2999 = vmatprep.mubr.f32.mxu1 %v14678_v1 }
 0x143   : > { %3065 = vmatpush1.msra.mxu0 %v14852_v4  ;;  %3003 = vmatmul.mubr.f32.vlgmr.msra.gmra.mxu1 %v10804_v54  ;;  %v14673_v56 = vand.u32 4294901760, %v11767_v60  ;;  %v258_v4 = vld [vmem:[#allocation6 + $0x48] sm:$0xff]  ;;  %14857 = vst [vmem:[#allocation18_spill] sm:$0xff] %v11831_v31 }
 0x144   : > { %3069 = vmatprep.subr.mxu0 %v14853_v0  ;;  %3162 = vmatprep.subr.mxu1 %v11448_v43  ;;  %v11733_v43 = vsub.f32 %v432_v55, %v11711_v62 }
 0x145   : > { %3073 = vmatpush1.msra.mxu0 %v14854_v11  ;;  %3164 = vmatpush1.msra.mxu1 %v11453_v18  ;;  %v382_v18 = vld [vmem:[#allocation6 + $0x428] sm:$0xff]  ;;  %v11815_v55 = vpop.f32.mrf.mxu1 }
 0x146   : > { %3077 = vmatprep.subr.mxu0 %v2725_v58  ;;  %3166 = vmatprep.subr.mxu1 %v11458_v17  ;;  %v14855_v17 = vand.u32 4294901760, %v11587_v61  ;;  %v11747_v58 = vand.u32 4294901760, %v382_v18  ;;  %v14675_v61 = vand.u32 4294901760, %v11725_v39 }
 0x147   : > { %3008 = vmatprep.mubr.f32.mxu1 %v14678_v1  ;;  %3081 = vmatpush1.msra.mxu0 %v2731_v24  ;;  %v11751_v24 = vsub.f32 %v408_v38, %v11722_v59 }
 0x148   : > { %3168 = vmatpush1.msra.mxu1 %v11463_v14  ;;  %3085 = vmatprep.subr.mxu0 %v14855_v17  ;;  %v333_v14 = vld [vmem:[#allocation6 + $0x2a0] sm:$0xff]  ;;  %v11840_v17 = vand.u32 4294901760, %v282_v27 }
 0x149   : > { %3012 = vmatmul.mubr.f32.gmra.mxu1 %v10854_v3  ;;  %3170 = vmatprep.subr.mxu1 %v11476_v5  ;;  %v11760_v5 = vand.u32 4294901760, %v358_v53 }
 0x14a   : > { %3089 = vmatpush1.msra.mxu0 %v2743_v19  ;;  %3172 = vmatpush1.msra.mxu1 %v11481_v33  ;;  %v14674_v33 = vand.u32 4294901760, %v11733_v43  ;;  %v11769_v19 = vand.u32 4294901760, %v357_v50  ;;  %14858 = vst [vmem:[#allocation19_spill] sm:$0xff] %v11840_v17 }
 0x14b   : > { %3093 = vmatprep.subr.mxu0 %v2749_v15  ;;  %3174 = vmatprep.subr.mxu1 %v11492_v16  ;;  %v11775_v16 = vand.u32 4294901760, %v333_v14  ;;  %v11788_v15 = vsub.f32 %v11725_v39, %v14675_v61  ;;  %v11803_v36 = vsub.f32 %v358_v53, %v11760_v5 }
 0x14c   : > { %3097 = vmatpush1.msra.mxu0 %v2755_v20  ;;  %3130 = vmatprep.mubr.f32.mxu0 %v14678_v1  ;;  %v11783_v20 = vsub.f32 %v382_v18, %v11747_v58  ;;  %v11800_v13 = vsub.f32 %v11733_v43, %v14674_v33  ;;  %v11808_v6 = vsub.f32 %v357_v50, %v11769_v19  ;;  %v11866_v33 = vand.u32 4294901760, %v257_v45 }
 0x14d   : > { %3176 = vmatpush1.msra.mxu1 %v11497_v41  ;;  %3132 = vmatmul.mubr.f32.vlgmr.msra.gmra.mxu0 %v10769_v9  ;;  %v14672_v41 = vand.u32 4294901760, %v11751_v24  ;;  %v11823_v38 = vsub.f32 %v333_v14, %v11775_v16  ;;  %v3363_v0 = vand.u32 4294901760, %v11788_v15  ;;  %v14682_v53 = vand.u32 4294901760, %v11803_v36 }
 0x14e   : > { %3178 = vmatprep.subr.mxu1 %v11502_v49  ;;  %3257 = vmatprep.subr.mxu0 %v11706_v57  ;;  %v11795_v49 = vand.u32 4294901760, %v332_v25  ;;  %v3380_v50 = vsub.f32 %v11767_v60, %v14673_v56  ;;  %v11848_v14 = vand.u32 4294901760, %v258_v4  ;;  %14859 = vst [vmem:[#allocation20_spill] sm:$0xff] %v11866_v33 }
 0x14f   : > { %3180 = vmatpush1.msra.mxu1 %v11513_v2  ;;  %3259 = vmatpush1.msra.mxu0 %v11711_v62  ;;  %v11810_v2 = vand.u32 4294901760, %v308_v34  ;;  %v3374_v11 = vsub.f32 %v11751_v24, %v14672_v41  ;;  %v11856_v41 = vpop.f32.mrf.mxu1 }
 0x150   : > { %3182 = vmatprep.subr.mxu1 %v11532_v26  ;;  %3261 = vmatprep.subr.mxu0 %v11722_v59  ;;  %v14676_v26 = vand.u32 4294901760, %v11778_v51  ;;  %v11837_v18 = vsub.f32 %v332_v25, %v11795_v49  ;;  %v11894_v3 = vsub.f32 %v258_v4, %v11848_v14 }
 0x151   : > { %14856 = vst [vmem:[#allocation17_spill] sm:$0xff] %v11810_v2  ;;  %3137 = vmatprep.mubr.f32.mxu0 %v14678_v1  ;;  %3184 = vmatpush1.msra.mxu1 %v11518_v48  ;;  %v14677_v48 = vand.u32 4294901760, %v11783_v20  ;;  %v11852_v25 = vsub.f32 %v308_v34, %v11810_v2  ;;  %v3375_v61 = vand.u32 4294901760, %v3374_v11  ;;  %v11877_v15 = vpop.f32.mrf.mxu1  ;;  %v11900_v11 = vsub.f32 %v257_v45, %v11866_v33 }
 0x152   : > { %3263 = vmatpush1.msra.mxu0 %v11738_v29  ;;  %3186 = vmatprep.subr.mxu1 %v11551_v42  ;;  %v3369_v42 = vand.u32 4294901760, %v11800_v13  ;;  %v11854_v13 = vpop.f32.mrf.mxu0  ;;  %v3386_v56 = vsub.f32 %v11778_v51, %v14676_v26  ;;  %v11882_v26 = vsub.f32 %v282_v27, %v11840_v17  ;;  %v14863_v45 = vand.u32 4294901760, %v11837_v18 }
 0x153   : > { %3139 = vmatmul.mubr.f32.gmra.mxu0 %v10833_v40  ;;  %3265 = vmatprep.subr.mxu0 %v11742_v63  ;;  %v11908_v54 = vpop.f32.mrf.mxu1 }
 0x154   : > { %3188 = vmatpush1.msra.mxu1 %v11562_v46  ;;  %3267 = vmatpush1.msra.mxu0 %v11747_v58  ;;  %v11861_v46 = vsub.f32 %v307_v7, %v11819_v37  ;;  %v11875_v7 = vsub.f32 %v283_v22, %v11831_v31  ;;  %v3381_v22 = vand.u32 4294901760, %v3380_v50  ;;  %v11896_v27 = vpop.f32.mrf.mxu0 }
 0x155   : > { %3190 = vmatprep.subr.mxu1 %v11567_v21  ;;  %3269 = vmatprep.subr.mxu0 %v11760_v5  ;;  %v3392_v21 = vsub.f32 %v11783_v20, %v14677_v48  ;;  %v14860_v48 = vand.u32 4294901760, %v11808_v6 }
 0x156   : > { %3192 = vmatpush1.msra.mxu1 %v11578_v12  ;;  %3225 = vmatprep.mubr.f32.mxu1 %v14678_v1  ;;  %v3398_v12 = vsub.f32 %v11803_v36, %v14682_v53  ;;  %v3387_v53 = vand.u32 4294901760, %v3386_v56 }
 0x157   : > { %3271 = vmatpush1.msra.mxu0 %v11769_v19  ;;  %3227 = vmatmul.mubr.f32.vlgmr.msra.gmra.mxu1 %v10769_v9  ;;  %v3404_v1 = vsub.f32 %v11808_v6, %v14860_v48  ;;  %v3393_v4 = vand.u32 4294901760, %v3392_v21  ;;  %v14864_v21 = vand.u32 4294901760, %v11852_v25  ;;  %v11932_v48 = vpop.f32.mrf.mxu1 }
 0x158   : > { %3273 = vmatprep.subr.mxu0 %v11775_v16  ;;  %3364 = vmatprep.subr.mxu1 %v3363_v0  ;;  %v14861_v0 = vand.u32 4294901760, %v11823_v38  ;;  %v3399_v56 = vand.u32 4294901760, %v3398_v12 }
 0x159   : > { %3275 = vmatpush1.msra.mxu0 %v11795_v49  ;;  %3370 = vmatpush1.msra.mxu1 %v3369_v42  ;;  %v3416_v42 = vsub.f32 %v11837_v18, %v14863_v45  ;;  %v3422_v34 = vsub.f32 %v11852_v25, %v14864_v21  ;;  %v14865_v45 = vand.u32 4294901760, %v11861_v46 }
 0x15a   : > { %v3410_v50 = vsub.f32 %v11823_v38, %v14861_v0  ;;  %3277 = vmatprep.subr.mxu0 %v11810_v2  ;;  %3376 = vmatprep.subr.mxu1 %v3375_v61  ;;  %v3405_v61 = vand.u32 4294901760, %v3404_v1  ;;  %v11921_v2 = vpop.f32.mrf.mxu0  ;;  %v14866_v1 = vand.u32 4294901760, %v11875_v7 }
 0x15b   : > { %3232 = vmatprep.mubr.f32.mxu1 %v14862_v28  ;;  %3279 = vmatpush1.msra.mxu0 %v11819_v37  ;;  %v3428_v0 = vsub.f32 %v11861_v46, %v14865_v45  ;;  %v3423_v45 = vand.u32 4294901760, %v3422_v34 }
 0x15c   : > { %3382 = vmatpush1.msra.mxu1 %v3381_v22  ;;  %3281 = vmatprep.subr.mxu0 %v11831_v31  ;;  %v3411_v12 = vand.u32 4294901760, %v3410_v50  ;;  %v3434_v21 = vsub.f32 %v11875_v7, %v14866_v1  ;;  %v14867_v50 = vand.u32 4294901760, %v11882_v26 }
 0x15d   : > { %3234 = vmatmul.mubr.f32.gmra.mxu1 %v10833_v40  ;;  %3388 = vmatprep.subr.mxu1 %v3387_v53  ;;  %v3417_v53 = vand.u32 4294901760, %v3416_v42  ;;  %v3429_v1 = vand.u32 4294901760, %v3428_v0 }
 0x15e   : > { %3283 = vmatpush1.msra.mxu0 %v11840_v17  ;;  %3394 = vmatpush1.msra.mxu1 %v3393_v4  ;;  %v3440_v31 = vsub.f32 %v11882_v26, %v14867_v50  ;;  %v14868_v4 = vand.u32 4294901760, %v11894_v3  ;;  %v828_v17 = vpop.f32.mrf.mxu0  ;;  %v3435_v50 = vand.u32 4294901760, %v3434_v21 }
 0x15f   : > { %3285 = vmatprep.subr.mxu0 %v11848_v14  ;;  %3400 = vmatprep.subr.mxu1 %v3399_v56  ;;  %v14869_v56 = vand.u32 4294901760, %v11900_v11 }
 0x160   : > { %3287 = vmatpush1.msra.mxu0 %v11866_v33  ;;  %3406 = vmatpush1.msra.mxu1 %v3405_v61  ;;  %v3446_v22 = vsub.f32 %v11894_v3, %v14868_v4  ;;  %v927_v61 = vpop.f32.mrf.mxu1  ;;  %v1045_v34 = vpop.f32.mrf.mxu0  ;;  %v3441_v4 = vand.u32 4294901760, %v3440_v31  ;;  %v9396_v33 = vlaneseq  ;;  %v714_v31 = vadd.f32 %v11815_v55, %v11771_v32 }
 0x161   : > { %3320 = vmatprep.mubr.f32.mxu0 %v14862_v28  ;;  %3412 = vmatprep.subr.mxu1 %v3411_v12  ;;  %v3452_v42 = vsub.f32 %v11900_v11, %v14869_v56 }
 0x162   : > { %3520 = vmatprep.subr.mxu0 %v11725_v39  ;;  %3326 = vmatmul.mubr.f32.vlgmr.msra.gmra.mxu0 %v10835_v23  ;;  %v3447_v12 = vand.u32 4294901760, %v3446_v22  ;;  %v1140_v0 = vpop.f32.mrf.mxu1  ;;  %v1047_v21 = vpop.f32.mrf.mxu0 }
 0x163   : > { %3418 = vmatpush1.msra.mxu1 %v3417_v53  ;;  %3523 = vmatpush1.msra.mxu0 %v11733_v43  ;;  %v3453_v56 = vand.u32 4294901760, %v3452_v42  ;;  %v716_v53 = vadd.f32 %v11856_v41, %v11813_v47  ;;  %v709_v42 = vadd.f32 %v11791_v8, %v11753_v35 }
 0x164   : > { %3424 = vmatprep.subr.mxu1 %v3423_v45  ;;  %3526 = vmatprep.subr.mxu0 %v11751_v24  ;;  %v1142_v22 = vpop.f32.mrf.mxu1  ;;  %v11959_v45 = vshrl.u32 %v9396_v33, 7  ;;  %v1052_v32 = vpop.f32.mrf.mxu0 }
 0x165   : > { %3430 = vmatpush1.msra.mxu1 %v3429_v1  ;;  %3529 = vmatpush1.msra.mxu0 %v11767_v60  ;;  %v707_v1 = vadd.f32 %v11755_v10, %v11727_v52  ;;  %v821_v41 = vadd.f32 %v11896_v27, %v709_v42  ;;  %v827_v52 = vadd.f32 %v11921_v2, %v714_v31 }
 0x166   : > { %3436 = vmatprep.subr.mxu1 %v3435_v50  ;;  %3532 = vmatprep.subr.mxu0 %v11778_v51  ;;  %14870 = vst [vmem:[#allocation21_spill] sm:$0xff] %v11959_v45  ;;  %v829_v35 = vadd.f32 %v828_v17, %v716_v53  ;;  %v11977_v8 = vsub.s32 0, %v11959_v45  ;;  %v11980_v47 = vsub.s32 1, %v11959_v45  ;;  %v1054_v27 = vpop.f32.mrf.mxu0  ;;  %v11987_v50 = vld [vmem:[#allocation8] sm:$0xff] }
 0x167   : > { %3442 = vmatpush1.msra.mxu1 %v3441_v4  ;;  %3535 = vmatpush1.msra.mxu0 %v11783_v20  ;;  %v819_v33 = vadd.f32 %v11854_v13, %v707_v1  ;;  %v919_v2 = vadd.f32 %v11908_v54, %v821_v41  ;;  %v926_v13 = vadd.f32 %v11932_v48, %v827_v52  ;;  %v14873_v1 = vand.u32 4294901760, %v11725_v39  ;;  %v14875_v41 = vld [vmem:[#allocation17_spill] sm:$0xff] }
 0x168   : > { %3448 = vmatprep.subr.mxu1 %v3447_v12  ;;  %3538 = vmatprep.subr.mxu0 %v11803_v36  ;;  %v1147_v10 = vpop.f32.mrf.mxu1  ;;  %14871 = vst [vmem:[#allocation22_spill] sm:$0xff] %v11977_v8  ;;  %14872 = vst [vmem:[#allocation23_spill] sm:$0xff] %v11980_v47  ;;  %v928_v17 = vadd.f32 %v927_v61, %v829_v35  ;;  %v9399_v48 = vrot.slane %v11987_v50, %v11977_v8  ;;  %v14876_v52 = vand.u32 4294901760, %v11751_v24 }
 0x169   : > { %3454 = vmatpush1.msra.mxu1 %v3453_v56  ;;  %3487 = vmatprep.mubr.f32.mxu1 %v14862_v28  ;;  %v917_v55 = vadd.f32 %v11877_v15, %v819_v33  ;;  %v1048_v12 = vadd.f32 %v1047_v21, %v919_v2  ;;  %v1053_v56 = vadd.f32 %v1052_v32, %v926_v13  ;;  %v14874_v32 = vand.u32 4294901760, %v11733_v43  ;;  %v435_v43 = vld [vmem:[#allocation6 + $0x5d0] sm:$0xff] }
 0x16a   : > { %3541 = vmatpush1.msra.mxu0 %v11808_v6  ;;  %3489 = vmatmul.mubr.f32.vlgmr.msra.gmra.mxu1 %v10769_v9  ;;  %v1149_v15 = vpop.f32.mrf.mxu1  ;;  %v1055_v54 = vadd.f32 %v1054_v27, %v928_v17  ;;  %v9403_v31 = vrot.slane %v11987_v50, %v11980_v47  ;;  %v14877_v35 = vand.u32 4294901760, %v11767_v60  ;;  %v14879_v27 = vld [vmem:[#allocation15_spill] sm:$0xff]  ;;  %v14880_v17 = vand.u32 4294901760, %v11778_v51 }
 0x16b   : > { %3544 = vmatprep.subr.mxu0 %v11823_v38  ;;  %3632 = vmatprep.subr.mxu1 %v11706_v57  ;;  %v1046_v4 = vadd.f32 %v1045_v34, %v917_v55  ;;  %v1143_v34 = vadd.f32 %v1142_v22, %v1048_v12  ;;  %v1148_v21 = vadd.f32 %v1147_v10, %v1053_v56  ;;  %v14878_v55 = vld [vmem:[#allocation18_spill] sm:$0xff]  ;;  %v14881_v12 = vld [vmem:[#allocation19_spill] sm:$0xff]  ;;  %v14882_v60 = vand.u32 4294901760, %v11783_v20 }
 0x16c   : > { %3547 = vmatpush1.msra.mxu0 %v11837_v18  ;;  %3634 = vmatpush1.msra.mxu1 %v11711_v62  ;;  %v1150_v53 = vadd.f32 %v1149_v15, %v1055_v54 }
 0x16d   : > { %3550 = vmatprep.subr.mxu0 %v11852_v25  ;;  %3636 = vmatprep.subr.mxu1 %v11722_v59  ;;  %v1141_v61 = vadd.f32 %v1140_v0, %v1046_v4  ;;  %v9522_v22 = vsub.f32 %v1143_v34, %v9403_v31  ;;  %v9546_v42 = vsub.f32 %v1148_v21, %v9399_v48  ;;  %v12020_v10 = vpop.f32.mrf.mxu0  ;;  %v14884_v21 = vld [vmem:[#allocation20_spill] sm:$0xff] }
 0x16e   : > { %3331 = vmatprep.mubr.f32.mxu0 %v14862_v28  ;;  %3553 = vmatpush1.msra.mxu0 %v11861_v46  ;;  %v9547_v33 = vsub.f32 %v1150_v53, %v9403_v31  ;;  %v12038_v31 = vand.u32 4294901760, %v435_v43 }
 0x16f   : > { %3638 = vmatpush1.msra.mxu1 %v11738_v29  ;;  %3337 = vmatmul.mubr.f32.gmra.mxu0 %v10869_v30  ;;  %v9521_v0 = vsub.f32 %v1141_v61, %v9399_v48  ;;  %v14883_v48 = vand.u32 4294901760, %v11803_v36  ;;  %v434_v61 = vld [vmem:[#allocation6 + $0x5c8] sm:$0xff]  ;;  %v12040_v34 = vpop.f32.mrf.mxu0 }
 0x170   : > { %3556 = vmatprep.subr.mxu0 %v11875_v7  ;;  %3640 = vmatprep.subr.mxu1 %v11742_v63  ;;  %v410_v36 = vld [vmem:[#allocation6 + $0x508] sm:$0xff] }
 0x171   : > { %3559 = vmatpush1.msra.mxu0 %v11882_v26  ;;  %3642 = vmatpush1.msra.mxu1 %v11747_v58 }
 0x172   : > { %3562 = vmatprep.subr.mxu0 %v11894_v3  ;;  %3644 = vmatprep.subr.mxu1 %v11760_v5 }
 0x173   : > { %3565 = vmatpush1.msra.mxu0 %v11900_v11  ;;  %3598 = vmatprep.mubr.f32.mxu0 %v14862_v28 }
 0x174   : > { %3646 = vmatpush1.msra.mxu1 %v11769_v19  ;;  %3494 = vmatprep.mubr.f32.mxu1 %v14862_v28 }
 0x175   : > { %3601 = vmatmul.mubr.f32.vlgmr.msra.gmra.mxu0 %v10789_v44  ;;  %3648 = vmatprep.subr.mxu1 %v11775_v16 }
 0x176   : > { %3733 = vmatprep.subr.mxu0 %v14873_v1  ;;  %3496 = vmatmul.mubr.f32.gmra.mxu1 %v10833_v40 }
 0x177   : > { %3650 = vmatpush1.msra.mxu1 %v11795_v49  ;;  %3737 = vmatpush1.msra.mxu0 %v14874_v32 }
 0x178   : > { %3652 = vmatprep.subr.mxu1 %v14875_v41  ;;  %3741 = vmatprep.subr.mxu0 %v14876_v52  ;;  %v409_v52 = vld [vmem:[#allocation6 + $0x500] sm:$0xff] }
 0x179   : > { %3606 = vmatprep.mubr.f32.mxu0 %v14862_v28  ;;  %3654 = vmatpush1.msra.mxu1 %v11819_v37  ;;  %v12018_v39 = vpop.permute.xlu0 %9578 }
 0x17a   : > { %3745 = vmatpush1.msra.mxu0 %v14877_v35  ;;  %3656 = vmatprep.subr.mxu1 %v14878_v55  ;;  %v9581_v2 = vmul.f32 %v12018_v39, %v9521_v0  ;;  %v9582_v13 = vmul.f32 %v12018_v39, %v9522_v22  ;;  %v9606_v24 = vmul.f32 %v12018_v39, %v9546_v42  ;;  %v12047_v32 = vpop.f32.mrf.mxu0  ;;  %v14888_v35 = vand.u32 4294901760, %v11837_v18 }
 0x17b   : > { %3609 = vmatmul.mubr.f32.gmra.mxu0 %v14879_v27  ;;  %3749 = vmatprep.subr.mxu0 %v14880_v17  ;;  %v9607_v4 = vmul.f32 %v12018_v39, %v9547_v33  ;;  %v14890_v18 = vand.u32 4294901760, %v11861_v46  ;;  %v359_v17 = vld [vmem:[#allocation6 + $0x370] sm:$0xff] }
 0x17c   : > { %3658 = vmatpush1.msra.mxu1 %v14881_v12  ;;  %3753 = vmatpush1.msra.mxu0 %v14882_v60  ;;  %v9631_v56 = vmul.f32 %v9581_v2, %v9521_v0  ;;  %v9632_v15 = vmul.f32 %v9582_v13, %v9522_v22  ;;  %v9656_v54 = vmul.f32 %v9606_v24, %v9546_v42  ;;  %v14885_v0 = vand.u32 4294901760, %v11808_v6  ;;  %v14886_v22 = vld [vmem:[#allocation14_spill] sm:$0xff]  ;;  %v384_v24 = vld [vmem:[#allocation6 + $0x438] sm:$0xff] }
 0x17d   : > { %3660 = vmatprep.subr.mxu1 %v11848_v14  ;;  %3757 = vmatprep.subr.mxu0 %v14883_v48  ;;  %v9657_v51 = vmul.f32 %v9607_v4, %v9547_v33  ;;  %v14887_v33 = vand.u32 4294901760, %v11823_v38  ;;  %v12055_v6 = vand.u32 4294901760, %v434_v61  ;;  %v12058_v2 = vsub.f32 %v435_v43, %v12038_v31  ;;  %v12070_v43 = vpop.f32.mrf.mxu0  ;;  %v12075_v4 = vpop.f32.mrf.mxu1  ;;  %v14892_v60 = vld [vmem:[#allocation16_spill] sm:$0xff] }
 0x17e   : > { %3662 = vmatpush1.msra.mxu1 %v14884_v21  ;;  %3695 = vmatprep.mubr.f32.mxu1 %v14862_v28  ;;  %v9681_v20 = vmul.f32 1.442695, %v9631_v56  ;;  %v9683_v53 = vmul.f32 1.442695, %v9632_v15  ;;  %v9731_v1 = vmul.f32 1.442695, %v9656_v54 }
 0x17f   : > { %3761 = vmatpush1.msra.mxu0 %v14885_v0  ;;  %3699 = vmatmul.mubr.f32.vlgmr.msra.gmra.mxu1 %v14886_v22  ;;  %v9733_v42 = vmul.f32 1.442695, %v9657_v51  ;;  %v14889_v13 = vand.u32 4294901760, %v11852_v25  ;;  %v12063_v38 = vand.u32 4294901760, %v410_v36  ;;  %v14891_v25 = vand.u32 4294901760, %v11875_v7  ;;  %v335_v54 = vld [vmem:[#allocation6 + $0x2b0] sm:$0xff] }
 0x180   : > { %3765 = vmatprep.subr.mxu0 %v14887_v33  ;;  %3858 = vmatprep.subr.mxu1 %v11706_v57  ;;  %10210 = vpow2.f32 %v9681_v20  ;;  %v385_v57 = vld [vmem:[#allocation6 + $0x440] sm:$0xff]  ;;  %v12080_v46 = vsub.f32 %v434_v61, %v12055_v6  ;;  %v14695_v15 = vand.u32 4294901760, %v12058_v2  ;;  %v12088_v7 = vand.u32 4294901760, %v384_v24 }
 0x181   : > { %3769 = vmatpush1.msra.mxu0 %v14888_v35  ;;  %3860 = vmatpush1.msra.mxu1 %v11711_v62  ;;  %10212 = vpow2.f32 %v9683_v53  ;;  %v12068_v62 = vand.u32 4294901760, %v409_v52  ;;  %v12082_v56 = vand.u32 4294901760, %v385_v57  ;;  %v12091_v48 = vsub.f32 %v410_v36, %v12063_v38  ;;  %v334_v53 = vld [vmem:[#allocation6 + $0x2a8] sm:$0xff]  ;;  %v309_v36 = vld [vmem:[#allocation6 + $0x1e0] sm:$0xff] }
 0x182   : > { %3773 = vmatprep.subr.mxu0 %v14889_v13  ;;  %3862 = vmatprep.subr.mxu1 %v11722_v59  ;;  %10214 = vpow2.f32 %v9731_v1  ;;  %v360_v59 = vld [vmem:[#allocation6 + $0x378] sm:$0xff]  ;;  %14895 = vst [vmem:[#allocation18_spill] sm:$0xff] %v12088_v7  ;;  %v14899_v20 = vand.u32 4294901760, %v11900_v11  ;;  %v12118_v1 = vsub.f32 %v12058_v2, %v14695_v15  ;;  %v14696_v0 = vand.u32 4294901760, %v12080_v46  ;;  %v310_v11 = vld [vmem:[#allocation6 + $0x1e8] sm:$0xff]  ;;  %v259_v15 = vld [vmem:[#allocation6 + $0x50] sm:$0xff] }
 0x183   : > { %3704 = vmatprep.mubr.f32.mxu1 %v14862_v28  ;;  %3777 = vmatpush1.msra.mxu0 %v14890_v18  ;;  %10216 = vpow2.f32 %v9733_v42  ;;  %14893 = vst [vmem:[#allocation17_spill] sm:$0xff] %v12082_v56  ;;  %v12097_v61 = vsub.f32 %v409_v52, %v12068_v62  ;;  %v12099_v51 = vand.u32 4294901760, %v360_v59  ;;  %v12122_v42 = vsub.f32 %v385_v57, %v12082_v56  ;;  %v285_v57 = vld [vmem:[#allocation6 + $0x120] sm:$0xff]  ;;  %v284_v18 = vld [vmem:[#allocation6 + $0x118] sm:$0xff] }
 0x184   : > { %3864 = vmatpush1.msra.mxu1 %v11738_v29  ;;  %3781 = vmatprep.subr.mxu0 %v14891_v25  ;;  %v14894_v29 = vand.u32 4294901760, %v11882_v26  ;;  %v12101_v26 = vand.u32 4294901760, %v359_v17  ;;  %v12137_v13 = vand.u32 4294901760, %v334_v53 }
 0x185   : > { %3708 = vmatmul.mubr.f32.gmra.mxu1 %v14892_v60  ;;  %3866 = vmatprep.subr.mxu1 %v11742_v63  ;;  %v14896_v63 = vand.u32 4294901760, %v11894_v3  ;;  %14897 = vst [vmem:[#allocation19_spill] sm:$0xff] %v12099_v51  ;;  %v12109_v3 = vpop.f32.mrf.mxu1  ;;  %v14904_v8 = vand.u32 4294901760, %v12097_v61 }
 0x186   : > { %3785 = vmatpush1.msra.mxu0 %v14894_v29  ;;  %3868 = vmatpush1.msra.mxu1 %v11747_v58  ;;  %14898 = vst [vmem:[#allocation20_spill] sm:$0xff] %v12101_v26  ;;  %v12104_v58 = vpop.f32.mrf.mxu0  ;;  %v12135_v35 = vsub.f32 %v359_v17, %v12101_v26  ;;  %14901 = vst [vmem:[#allocation25_spill] sm:$0xff] %v12137_v13  ;;  %v12149_v17 = vand.u32 4294901760, %v309_v36 }
 0x187   : > { %3789 = vmatprep.subr.mxu0 %v14896_v63  ;;  %3870 = vmatprep.subr.mxu1 %v11760_v5  ;;  %v12113_v5 = vand.u32 4294901760, %v335_v54  ;;  %v12130_v52 = vpop.f32.mrf.mxu1  ;;  %v4059_v63 = vand.u32 4294901760, %v12118_v1 }
 0x188   : > { %3793 = vmatpush1.msra.mxu0 %v14899_v20  ;;  %3826 = vmatprep.mubr.f32.mxu0 %v14862_v28  ;;  %v12143_v25 = vpop.f32.mrf.mxu0  ;;  %14902 = vst [vmem:[#allocation26_spill] sm:$0xff] %v12149_v17  ;;  %v260_v20 = vld [vmem:[#allocation6 + $0x58] sm:$0xff] }
 0x189   : > { %3872 = vmatpush1.msra.mxu1 %v11769_v19  ;;  %3828 = vmatmul.mubr.f32.vlgmr.msra.gmra.mxu0 %v10769_v9  ;;  %14900 = vst [vmem:[#allocation24_spill] sm:$0xff] %v12113_v5  ;;  %v12127_v19 = vsub.f32 %v384_v24, %v12088_v7  ;;  %v12141_v24 = vsub.f32 %v360_v59, %v12099_v51  ;;  %v12176_v47 = vpop.f32.mrf.mxu1  ;;  %v12197_v44 = vand.u32 4294901760, %v260_v20 }
 0x18a   : > { %3874 = vmatprep.subr.mxu1 %v11775_v16  ;;  %3953 = vmatprep.subr.mxu0 %v12038_v31  ;;  %v4064_v59 = vsub.f32 %v12080_v46, %v14696_v0  ;;  %v12159_v16 = vsub.f32 %v335_v54, %v12113_v5  ;;  %v12171_v0 = vand.u32 4294901760, %v285_v57  ;;  %v12189_v22 = vpop.f32.mrf.mxu0  ;;  %v14905_v54 = vand.u32 4294901760, %v12122_v42 }
 0x18b   : > { %3876 = vmatpush1.msra.mxu1 %v11795_v49  ;;  %3955 = vmatpush1.msra.mxu0 %v12055_v6  ;;  %v12147_v49 = vand.u32 4294901760, %v310_v11  ;;  %v12204_v60 = vpop.f32.mrf.mxu1 }
 0x18c   : > { %3878 = vmatprep.subr.mxu1 %v14875_v41  ;;  %3957 = vmatprep.subr.mxu0 %v12063_v38  ;;  %v12173_v41 = vand.u32 4294901760, %v284_v18 }
 0x18d   : > { %v10211_v29 = vpop.eup %10210  ;;  %3833 = vmatprep.mubr.f32.mxu0 %v14862_v28  ;;  %3880 = vmatpush1.msra.mxu1 %v11819_v37  ;;  %v14903_v37 = vand.u32 4294901760, %v12091_v48 }
 0x18e   : > { %v10213_v33 = vpop.eup %10212  ;;  %3959 = vmatpush1.msra.mxu0 %v12068_v62  ;;  %3882 = vmatprep.subr.mxu1 %v14878_v55  ;;  %9781 = vst [vmem:[%s12168_s24] sm:$0xff] %v10211_v29  ;;  %v4076_v29 = vsub.f32 %v12097_v61, %v14904_v8  ;;  %v12199_v8 = vand.u32 4294901760, %v259_v15 }
 0x18f   : > { %v4070_v1 = vsub.f32 %v12091_v48, %v14903_v37  ;;  %v10215_v55 = vpop.eup %10214  ;;  %3835 = vmatmul.mubr.f32.gmra.mxu0 %v10833_v40  ;;  %3961 = vmatprep.subr.mxu0 %v12082_v56  ;;  %v12181_v37 = vsub.f32 %v334_v53, %v12137_v13  ;;  %9782 = vst [vmem:[%s12168_s24 + $0x8] sm:$0xff] %v10213_v33  ;;  %v12233_v56 = vpop.f32.mrf.mxu0 }
 0x190   : > { %v10217_v27 = vpop.eup %10216  ;;  %3884 = vmatpush1.msra.mxu1 %v14881_v12  ;;  %3963 = vmatpush1.msra.mxu0 %v12088_v7  ;;  %v12194_v53 = vsub.f32 %v309_v36, %v12149_v17  ;;  %9806 = vst [vmem:[%s12168_s24 + $0xc8] sm:$0xff] %v10215_v55  ;;  %v12202_v33 = vsub.f32 %v310_v11, %v12147_v49  ;;  %v4065_v12 = vand.u32 4294901760, %v4064_v59  ;;  %v14909_v55 = vand.u32 4294901760, %v12159_v16 }
 0x191   : > { %3886 = vmatprep.subr.mxu1 %v11848_v14  ;;  %3965 = vmatprep.subr.mxu0 %v12099_v51  ;;  %v4082_v36 = vsub.f32 %v12122_v42, %v14905_v54  ;;  %9807 = vst [vmem:[%s12168_s24 + $0xd0] sm:$0xff] %v10217_v27  ;;  %v4071_v11 = vand.u32 4294901760, %v4070_v1  ;;  %v12216_v7 = vsub.f32 %v284_v18, %v12173_v41  ;;  %v14906_v14 = vand.u32 4294901760, %v12127_v19 }
 0x192   : > { %3888 = vmatpush1.msra.mxu1 %v14884_v21  ;;  %3921 = vmatprep.mubr.f32.mxu1 %v14862_v28  ;;  %v12222_v59 = vsub.f32 %v285_v57, %v12171_v0  ;;  %v4077_v27 = vand.u32 4294901760, %v4076_v29  ;;  %v14907_v21 = vand.u32 4294901760, %v12141_v24  ;;  %v14908_v1 = vand.u32 4294901760, %v12135_v35 }
 0x193   : > { %v4088_v51 = vsub.f32 %v12127_v19, %v14906_v14  ;;  %3967 = vmatpush1.msra.mxu0 %v12101_v26  ;;  %3923 = vmatmul.mubr.f32.vlgmr.msra.gmra.mxu1 %v10769_v9  ;;  %v12237_v57 = vsub.f32 %v259_v15, %v12199_v8  ;;  %v1614_v26 = vpop.f32.mrf.mxu1  ;;  %v14912_v14 = vand.u32 4294901760, %v12194_v53 }
 0x194   : > { %v4094_v54 = vsub.f32 %v12141_v24, %v14907_v21  ;;  %v4100_v18 = vsub.f32 %v12135_v35, %v14908_v1  ;;  %3969 = vmatprep.subr.mxu0 %v12113_v5  ;;  %4060 = vmatprep.subr.mxu1 %v4059_v63  ;;  %v12242_v21 = vsub.f32 %v260_v20, %v12197_v44  ;;  %v4083_v1 = vand.u32 4294901760, %v4082_v36  ;;  %v1741_v63 = vpop.f32.mrf.mxu0 }
 0x195   : > { %3971 = vmatpush1.msra.mxu0 %v12137_v13  ;;  %4066 = vmatpush1.msra.mxu1 %v4065_v12  ;;  %v4106_v5 = vsub.f32 %v12159_v16, %v14909_v55  ;;  %v4089_v15 = vand.u32 4294901760, %v4088_v51  ;;  %v14910_v36 = vand.u32 4294901760, %v12181_v37  ;;  %v1403_v55 = vadd.f32 %v12075_v4, %v12020_v10 }
 0x196   : > { %3973 = vmatprep.subr.mxu0 %v12147_v49  ;;  %4072 = vmatprep.subr.mxu1 %v4071_v11  ;;  %v4095_v20 = vand.u32 4294901760, %v4094_v54  ;;  %v4101_v12 = vand.u32 4294901760, %v4100_v18  ;;  %v14911_v51 = vand.u32 4294901760, %v12202_v33  ;;  %v4124_v29 = vsub.f32 %v12194_v53, %v14912_v14 }
 0x197   : > { %3928 = vmatprep.mubr.f32.mxu1 %v14862_v28  ;;  %3975 = vmatpush1.msra.mxu0 %v12149_v17  ;;  %v4112_v13 = vsub.f32 %v12181_v37, %v14910_v36  ;;  %v1621_v17 = vpop.f32.mrf.mxu1  ;;  %v4107_v10 = vand.u32 4294901760, %v4106_v5  ;;  %v1405_v4 = vadd.f32 %v12109_v3, %v12040_v34  ;;  %v1743_v36 = vpop.f32.mrf.mxu0  ;;  %v14914_v14 = vand.u32 4294901760, %v12222_v59 }
 0x198   : > { %4078 = vmatpush1.msra.mxu1 %v4077_v27  ;;  %3977 = vmatprep.subr.mxu0 %v12171_v0  ;;  %v4118_v11 = vsub.f32 %v12202_v33, %v14911_v51  ;;  %v1515_v27 = vadd.f32 %v12104_v58, %v1403_v55  ;;  %v12272_v51 = vsub.s32 2, %v11959_v45  ;;  %v14915_v54 = vand.u32 4294901760, %v12216_v7 }
 0x199   : > { %3930 = vmatmul.mubr.f32.gmra.mxu1 %v10833_v40  ;;  %4084 = vmatprep.subr.mxu1 %v4083_v1  ;;  %v4130_v18 = vsub.f32 %v12222_v59, %v14914_v14  ;;  %v12282_v1 = vsub.s32 3, %v11959_v45  ;;  %v4113_v34 = vand.u32 4294901760, %v4112_v13  ;;  %v1410_v58 = vadd.f32 %v12130_v52, %v12047_v32  ;;  %v1623_v32 = vpop.f32.mrf.mxu1 }
 0x19a   : > { %14913 = vst [vmem:[#allocation27_spill] sm:$0xff] %v12272_v51  ;;  %3979 = vmatpush1.msra.mxu0 %v12173_v41  ;;  %4090 = vmatpush1.msra.mxu1 %v4089_v15  ;;  %v4136_v5 = vsub.f32 %v12216_v7, %v14915_v54  ;;  %v1517_v3 = vadd.f32 %v12143_v25, %v1405_v4  ;;  %v4119_v55 = vand.u32 4294901760, %v4118_v11  ;;  %v14917_v54 = vand.u32 4294901760, %v12242_v21 }
 0x19b   : > { %14916 = vst [vmem:[#allocation28_spill] sm:$0xff] %v12282_v1  ;;  %3981 = vmatprep.subr.mxu0 %v12197_v44  ;;  %4096 = vmatprep.subr.mxu1 %v4095_v20  ;;  %v1613_v15 = vadd.f32 %v12204_v60, %v1515_v27  ;;  %v14918_v45 = vand.u32 4294901760, %v12237_v57  ;;  %v1412_v13 = vadd.f32 %v12176_v47, %v12070_v43  ;;  %v4125_v60 = vand.u32 4294901760, %v4124_v29 }
 0x19c   : > { %3983 = vmatpush1.msra.mxu0 %v12199_v8  ;;  %4102 = vmatpush1.msra.mxu1 %v4101_v12  ;;  %v4142_v14 = vsub.f32 %v12242_v21, %v14917_v54  ;;  %v1615_v52 = vadd.f32 %v1614_v26, %v1517_v3  ;;  %v1748_v12 = vpop.f32.mrf.mxu0  ;;  %v9407_v11 = vrot.slane %v11987_v50, %v12272_v51  ;;  %v4131_v4 = vand.u32 4294901760, %v4130_v18 }
 0x19d   : > { %v4148_v20 = vsub.f32 %v12237_v57, %v14918_v45  ;;  %4016 = vmatprep.mubr.f32.mxu0 %v14862_v28  ;;  %4108 = vmatprep.subr.mxu1 %v4107_v10  ;;  %v1742_v25 = vadd.f32 %v1741_v63, %v1613_v15  ;;  %v9411_v47 = vrot.slane %v11987_v50, %v12282_v1  ;;  %v4137_v43 = vand.u32 4294901760, %v4136_v5 }
 0x19e   : > { %4216 = vmatprep.subr.mxu0 %v12058_v2  ;;  %4022 = vmatmul.mubr.f32.vlgmr.msra.gmra.mxu0 %v10835_v23  ;;  %v1836_v45 = vpop.f32.mrf.mxu1  ;;  %v1523_v26 = vadd.f32 %v12189_v22, %v1410_v58  ;;  %v1744_v29 = vadd.f32 %v1743_v36, %v1615_v52  ;;  %v4143_v10 = vand.u32 4294901760, %v4142_v14  ;;  %v1525_v27 = vadd.f32 %v12233_v56, %v1412_v13 }
 0x19f   : > { %4114 = vmatpush1.msra.mxu1 %v4113_v34  ;;  %4219 = vmatpush1.msra.mxu0 %v12080_v46  ;;  %v1837_v63 = vadd.f32 %v1836_v45, %v1742_v25  ;;  %v4149_v18 = vand.u32 4294901760, %v4148_v20  ;;  %v1750_v34 = vpop.f32.mrf.mxu0 }
 0x1a0   : > { %4120 = vmatprep.subr.mxu1 %v4119_v55  ;;  %4222 = vmatprep.subr.mxu0 %v12091_v48  ;;  %v1838_v3 = vpop.f32.mrf.mxu1  ;;  %v1622_v50 = vadd.f32 %v1621_v17, %v1523_v26  ;;  %v1624_v22 = vadd.f32 %v1623_v32, %v1525_v27  ;;  %v14919_v26 = vld [vmem:[#allocation17_spill] sm:$0xff] }
 0x1a1   : > { %4126 = vmatpush1.msra.mxu1 %v4125_v60  ;;  %4225 = vmatpush1.msra.mxu0 %v12097_v61  ;;  %v9523_v15 = vsub.f32 %v1837_v63, %v9407_v11  ;;  %v1839_v54 = vadd.f32 %v1838_v3, %v1744_v29  ;;  %v14920_v29 = vld [vmem:[#allocation18_spill] sm:$0xff]  ;;  %v14922_v3 = vld [vmem:[#allocation20_spill] sm:$0xff] }
 0x1a2   : > { %4132 = vmatprep.subr.mxu1 %v4131_v4  ;;  %4228 = vmatprep.subr.mxu0 %v12122_v42  ;;  %v1749_v36 = vadd.f32 %v1748_v12, %v1622_v50  ;;  %v1751_v58 = vadd.f32 %v1750_v34, %v1624_v22  ;;  %v14924_v50 = vld [vmem:[#allocation24_spill] sm:$0xff]  ;;  %v14925_v34 = vand.u32 4294901760, %v12058_v2  ;;  %v14928_v22 = vand.u32 4294901760, %v12091_v48  ;;  %v437_v48 = vld [vmem:[#allocation6 + $0x5e0] sm:$0xff] }
 0x1a3   : > { %4138 = vmatpush1.msra.mxu1 %v4137_v43  ;;  %4231 = vmatpush1.msra.mxu0 %v12127_v19  ;;  %v9583_v5 = vmul.f32 %v12018_v39, %v9523_v15  ;;  %v9524_v56 = vsub.f32 %v1839_v54, %v9411_v47  ;;  %v14927_v54 = vand.u32 4294901760, %v12080_v46  ;;  %v14931_v46 = vld [vmem:[#allocation15_spill] sm:$0xff] }
 0x1a4   : > { %4144 = vmatprep.subr.mxu1 %v4143_v10  ;;  %4234 = vmatprep.subr.mxu0 %v12141_v24  ;;  %v1843_v55 = vpop.f32.mrf.mxu1  ;;  %v14921_v10 = vld [vmem:[#allocation19_spill] sm:$0xff] }
 0x1a5   : > { %4150 = vmatpush1.msra.mxu1 %v4149_v18  ;;  %4183 = vmatprep.mubr.f32.mxu1 %v14862_v28  ;;  %v9633_v17 = vmul.f32 %v9583_v5, %v9523_v15  ;;  %v9584_v14 = vmul.f32 %v12018_v39, %v9524_v56  ;;  %v1844_v20 = vadd.f32 %v1843_v55, %v1749_v36  ;;  %v14923_v18 = vld [vmem:[#allocation13_spill] sm:$0xff]  ;;  %v14929_v36 = vld [vmem:[#allocation26_spill] sm:$0xff]  ;;  %v14930_v5 = vand.u32 4294901760, %v12097_v61 }
 0x1a6   : > { %4237 = vmatpush1.msra.mxu0 %v12135_v35  ;;  %4185 = vmatmul.mubr.f32.vlgmr.msra.gmra.mxu1 %v10769_v9  ;;  %v1845_v13 = vpop.f32.mrf.mxu1  ;;  %v14926_v15 = vld [vmem:[#allocation25_spill] sm:$0xff]  ;;  %v14934_v61 = vand.u32 4294901760, %v12141_v24  ;;  %v14937_v24 = vand.u32 4294901760, %v12159_v16 }
 0x1a7   : > { %4240 = vmatprep.subr.mxu0 %v12159_v16  ;;  %4328 = vmatprep.subr.mxu1 %v12038_v31  ;;  %v9685_v32 = vmul.f32 1.442695, %v9633_v17  ;;  %v9634_v60 = vmul.f32 %v9584_v14, %v9524_v56  ;;  %v9548_v52 = vsub.f32 %v1844_v20, %v9407_v11  ;;  %v1846_v25 = vadd.f32 %v1845_v13, %v1751_v58  ;;  %v436_v14 = vld [vmem:[#allocation6 + $0x5d8] sm:$0xff] }
 0x1a8   : > { %4243 = vmatpush1.msra.mxu0 %v12181_v37  ;;  %4330 = vmatpush1.msra.mxu1 %v12055_v6  ;;  %v14932_v58 = vand.u32 4294901760, %v12122_v42  ;;  %v14933_v17 = vand.u32 4294901760, %v12127_v19  ;;  %v12371_v42 = vand.u32 4294901760, %v437_v48  ;;  %v14935_v13 = vand.u32 4294901760, %v12135_v35  ;;  %v14936_v19 = vld [vmem:[#allocation14_spill] sm:$0xff]  ;;  %v411_v35 = vld [vmem:[#allocation6 + $0x510] sm:$0xff] }
 0x1a9   : > { %4246 = vmatprep.subr.mxu0 %v12202_v33  ;;  %4332 = vmatprep.subr.mxu1 %v12063_v38  ;;  %10218 = vpow2.f32 %v9685_v32  ;;  %v9687_v12 = vmul.f32 1.442695, %v9634_v60  ;;  %v9608_v4 = vmul.f32 %v12018_v39, %v9548_v52  ;;  %v9549_v45 = vsub.f32 %v1846_v25, %v9411_v47  ;;  %v12356_v56 = vpop.f32.mrf.mxu0  ;;  %v412_v32 = vld [vmem:[#allocation6 + $0x518] sm:$0xff] }
 0x1aa   : > { %4027 = vmatprep.mubr.f32.mxu0 %v14862_v28  ;;  %4249 = vmatpush1.msra.mxu0 %v12194_v53  ;;  %v12392_v16 = vand.u32 4294901760, %v412_v32 }
 0x1ab   : > { %4334 = vmatpush1.msra.mxu1 %v12068_v62  ;;  %4033 = vmatmul.mubr.f32.gmra.mxu0 %v10869_v30  ;;  %10220 = vpow2.f32 %v9687_v12  ;;  %v9658_v11 = vmul.f32 %v9608_v4, %v9548_v52  ;;  %v9609_v43 = vmul.f32 %v12018_v39, %v9549_v45  ;;  %v12373_v20 = vpop.f32.mrf.mxu0  ;;  %v12381_v52 = vand.u32 4294901760, %v436_v14 }
 0x1ac   : > { %4252 = vmatprep.subr.mxu0 %v12222_v59  ;;  %4336 = vmatprep.subr.mxu1 %v14919_v26  ;;  %v14938_v12 = vand.u32 4294901760, %v12181_v37  ;;  %v14940_v37 = vand.u32 4294901760, %v12194_v53 }
 0x1ad   : > { %4255 = vmatpush1.msra.mxu0 %v12216_v7  ;;  %4338 = vmatpush1.msra.mxu1 %v14920_v29  ;;  %v9735_v47 = vmul.f32 1.442695, %v9658_v11  ;;  %v9659_v63 = vmul.f32 %v9609_v43, %v9549_v45  ;;  %v14939_v45 = vand.u32 4294901760, %v12202_v33  ;;  %v12395_v11 = vsub.f32 %v437_v48, %v12371_v42 }
 0x1ae   : > { %4258 = vmatprep.subr.mxu0 %v12242_v21  ;;  %4340 = vmatprep.subr.mxu1 %v14921_v10  ;;  %v14941_v33 = vand.u32 4294901760, %v12222_v59  ;;  %v12407_v43 = vand.u32 4294901760, %v411_v35 }
 0x1af   : > { %4261 = vmatpush1.msra.mxu0 %v12237_v57  ;;  %4294 = vmatprep.mubr.f32.mxu0 %v14862_v28  ;;  %10222 = vpow2.f32 %v9735_v47  ;;  %v9737_v27 = vmul.f32 1.442695, %v9659_v63  ;;  %v362_v47 = vld [vmem:[#allocation6 + $0x388] sm:$0xff] }
 0x1b0   : > { %4342 = vmatpush1.msra.mxu1 %v14922_v3  ;;  %4190 = vmatprep.mubr.f32.mxu1 %v14862_v28 }
 0x1b1   : > { %4297 = vmatmul.mubr.f32.vlgmr.msra.gmra.mxu0 %v14923_v18  ;;  %4344 = vmatprep.subr.mxu1 %v14924_v50  ;;  %10224 = vpow2.f32 %v9737_v27  ;;  %v14942_v27 = vld [vmem:[#allocation16_spill] sm:$0xff] }
 0x1b2   : > { %4429 = vmatprep.subr.mxu0 %v14925_v34  ;;  %4192 = vmatmul.mubr.f32.gmra.mxu1 %v10833_v40  ;;  %v361_v34 = vld [vmem:[#allocation6 + $0x380] sm:$0xff] }
 0x1b3   : > { %4346 = vmatpush1.msra.mxu1 %v14926_v15  ;;  %4433 = vmatpush1.msra.mxu0 %v14927_v54  ;;  %v12415_v54 = vpop.f32.mrf.mxu1  ;;  %v12437_v48 = vand.u32 4294901760, %v361_v34 }
 0x1b4   : > { %4348 = vmatprep.subr.mxu1 %v12147_v49  ;;  %4437 = vmatprep.subr.mxu0 %v14928_v22  ;;  %v337_v22 = vld [vmem:[#allocation6 + $0x2c0] sm:$0xff] }
 0x1b5   : > { %4302 = vmatprep.mubr.f32.mxu0 %v14862_v28  ;;  %4350 = vmatpush1.msra.mxu1 %v14929_v36  ;;  %14947 = vst [vmem:[#allocation18_spill] sm:$0xff] %v12437_v48 }
 0x1b6   : > { %v10219_v2 = vpop.eup %10218  ;;  %4441 = vmatpush1.msra.mxu0 %v14930_v5  ;;  %4352 = vmatprep.subr.mxu1 %v12171_v0  ;;  %v12383_v25 = vpop.f32.mrf.mxu0  ;;  %v12424_v5 = vsub.f32 %v412_v32, %v12392_v16 }
 0x1b7   : > { %4305 = vmatmul.mubr.f32.gmra.mxu0 %v14931_v46  ;;  %4445 = vmatprep.subr.mxu0 %v14932_v58  ;;  %9783 = vst [vmem:[%s12168_s24 + $0x10] sm:$0xff] %v10219_v2  ;;  %v14720_v2 = vand.u32 4294901760, %v12395_v11  ;;  %v12429_v58 = vand.u32 4294901760, %v362_v47 }
 0x1b8   : > { %v10221_v55 = vpop.eup %10220  ;;  %4354 = vmatpush1.msra.mxu1 %v12173_v41  ;;  %4449 = vmatpush1.msra.mxu0 %v14933_v17  ;;  %v12409_v63 = vpop.f32.mrf.mxu0  ;;  %v14721_v32 = vand.u32 4294901760, %v12424_v5 }
 0x1b9   : > { %4356 = vmatprep.subr.mxu1 %v12197_v44  ;;  %4453 = vmatprep.subr.mxu0 %v14934_v61  ;;  %9784 = vst [vmem:[%s12168_s24 + $0x18] sm:$0xff] %v10221_v55  ;;  %14945 = vst [vmem:[#allocation17_spill] sm:$0xff] %v12429_v58  ;;  %v336_v55 = vld [vmem:[#allocation6 + $0x2b8] sm:$0xff] }
 0x1ba   : > { %4358 = vmatpush1.msra.mxu1 %v12199_v8  ;;  %4391 = vmatprep.mubr.f32.mxu1 %v14862_v28 }
 0x1bb   : > { %4457 = vmatpush1.msra.mxu0 %v14935_v13  ;;  %4395 = vmatmul.mubr.f32.vlgmr.msra.gmra.mxu1 %v14936_v19 }
 0x1bc   : > { %v10223_v60 = vpop.eup %10222  ;;  %4461 = vmatprep.subr.mxu0 %v14937_v24  ;;  %4554 = vmatprep.subr.mxu1 %v12038_v31  ;;  %v387_v31 = vld [vmem:[#allocation6 + $0x450] sm:$0xff]  ;;  %v12440_v61 = vpop.f32.mrf.mxu0  ;;  %v12464_v24 = vand.u32 4294901760, %v336_v55 }
 0x1bd   : > { %4465 = vmatpush1.msra.mxu0 %v14938_v12  ;;  %4556 = vmatpush1.msra.mxu1 %v12055_v6  ;;  %9808 = vst [vmem:[%s12168_s24 + $0xd8] sm:$0xff] %v10223_v60  ;;  %v386_v6 = vld [vmem:[#allocation6 + $0x448] sm:$0xff]  ;;  %v12413_v53 = vand.u32 4294901760, %v387_v31  ;;  %v311_v60 = vld [vmem:[#allocation6 + $0x1f0] sm:$0xff]  ;;  %v12467_v12 = vsub.f32 %v362_v47, %v12429_v58 }
 0x1be   : > { %v10225_v4 = vpop.eup %10224  ;;  %4469 = vmatprep.subr.mxu0 %v14939_v45  ;;  %4558 = vmatprep.subr.mxu1 %v12063_v38  ;;  %v12405_v38 = vsub.f32 %v436_v14, %v12381_v52  ;;  %v12420_v59 = vand.u32 4294901760, %v386_v6  ;;  %v12449_v14 = vpop.f32.mrf.mxu1 }
 0x1bf   : > { %4400 = vmatprep.mubr.f32.mxu1 %v14862_v28  ;;  %4473 = vmatpush1.msra.mxu0 %v14940_v37  ;;  %9809 = vst [vmem:[%s12168_s24 + $0xe0] sm:$0xff] %v10225_v4  ;;  %v12474_v4 = vsub.f32 %v361_v34, %v12437_v48  ;;  %v286_v37 = vld [vmem:[#allocation6 + $0x128] sm:$0xff] }
 0x1c0   : > { %4560 = vmatpush1.msra.mxu1 %v12068_v62  ;;  %4477 = vmatprep.subr.mxu0 %v14941_v33  ;;  %v14943_v62 = vand.u32 4294901760, %v12216_v7  ;;  %v14946_v7 = vand.u32 4294901760, %v12237_v57  ;;  %v14719_v17 = vand.u32 4294901760, %v12405_v38  ;;  %v312_v57 = vld [vmem:[#allocation6 + $0x1f8] sm:$0xff]  ;;  %v12454_v13 = vsub.f32 %v386_v6, %v12420_v59  ;;  %v262_v6 = vld [vmem:[#allocation6 + $0x68] sm:$0xff]  ;;  %v12482_v33 = vpop.f32.mrf.mxu0 }
 0x1c1   : > { %4404 = vmatmul.mubr.f32.gmra.mxu1 %v14942_v27  ;;  %4562 = vmatprep.subr.mxu1 %v14919_v26  ;;  %v14944_v26 = vand.u32 4294901760, %v12242_v21  ;;  %v12444_v21 = vand.u32 4294901760, %v337_v22  ;;  %v12479_v45 = vand.u32 4294901760, %v312_v57 }
 0x1c2   : > { %4481 = vmatpush1.msra.mxu0 %v14943_v62  ;;  %4564 = vmatpush1.msra.mxu1 %v14920_v29  ;;  %v12435_v29 = vsub.f32 %v411_v35, %v12407_v43  ;;  %v12469_v35 = vpop.f32.mrf.mxu1 }
 0x1c3   : > { %4485 = vmatprep.subr.mxu0 %v14944_v26  ;;  %4566 = vmatprep.subr.mxu1 %v14921_v10  ;;  %14948 = vst [vmem:[#allocation19_spill] sm:$0xff] %v12444_v21  ;;  %v12447_v10 = vsub.f32 %v387_v31, %v12413_v53  ;;  %v12490_v34 = vsub.f32 %v337_v22, %v12444_v21  ;;  %v12522_v51 = vpop.f32.mrf.mxu0 }
 0x1c4   : > { %4489 = vmatpush1.msra.mxu0 %v14946_v7  ;;  %4522 = vmatprep.mubr.f32.mxu0 %v14862_v28  ;;  %v14726_v31 = vand.u32 4294901760, %v12435_v29  ;;  %v4766_v26 = vsub.f32 %v12424_v5, %v14721_v32  ;;  %v12504_v22 = vsub.f32 %v336_v55, %v12464_v24  ;;  %v12511_v47 = vpop.f32.mrf.mxu1  ;;  %v12520_v1 = vsub.f32 %v312_v57, %v12479_v45 }
 0x1c5   : > { %4568 = vmatpush1.msra.mxu1 %v14922_v3  ;;  %4524 = vmatmul.mubr.f32.vlgmr.msra.gmra.mxu0 %v10769_v9  ;;  %v12459_v3 = vsub.f32 %v12395_v11, %v14720_v2  ;;  %v12506_v2 = vand.u32 4294901760, %v286_v37  ;;  %v14953_v57 = vand.u32 4294901760, %v12454_v13 }
 0x1c6   : > { %4570 = vmatprep.subr.mxu1 %v14924_v50  ;;  %4649 = vmatprep.subr.mxu0 %v12371_v42  ;;  %v287_v50 = vld [vmem:[#allocation6 + $0x130] sm:$0xff] }
 0x1c7   : > { %4572 = vmatpush1.msra.mxu1 %v14926_v15  ;;  %4651 = vmatpush1.msra.mxu0 %v12381_v52  ;;  %v4760_v15 = vsub.f32 %v12405_v38, %v14719_v17  ;;  %v4755_v62 = vand.u32 4294901760, %v12459_v3  ;;  %v12498_v7 = vand.u32 4294901760, %v287_v50  ;;  %v261_v17 = vld [vmem:[#allocation6 + $0x60] sm:$0xff]  ;;  %14951 = vst [vmem:[#allocation25_spill] sm:$0xff] %v12506_v2  ;;  %v12535_v55 = vpop.f32.mrf.mxu1 }
 0x1c8   : > { %4574 = vmatprep.subr.mxu1 %v12147_v49  ;;  %4653 = vmatprep.subr.mxu0 %v12392_v16  ;;  %v12486_v49 = vand.u32 4294901760, %v311_v60  ;;  %v12532_v27 = vand.u32 4294901760, %v261_v17 }
 0x1c9   : > { %4529 = vmatprep.mubr.f32.mxu0 %v14862_v28  ;;  %4576 = vmatpush1.msra.mxu1 %v14929_v36  ;;  %14950 = vst [vmem:[#allocation24_spill] sm:$0xff] %v12498_v7  ;;  %v4761_v32 = vand.u32 4294901760, %v4760_v15  ;;  %v4772_v36 = vsub.f32 %v12435_v29, %v14726_v31  ;;  %v14952_v15 = vand.u32 4294901760, %v12447_v10  ;;  %v12543_v19 = vsub.f32 %v287_v50, %v12498_v7 }
 0x1ca   : > { %14949 = vst [vmem:[#allocation20_spill] sm:$0xff] %v12486_v49  ;;  %4655 = vmatpush1.msra.mxu0 %v12407_v43  ;;  %4578 = vmatprep.subr.mxu1 %v12171_v0  ;;  %v12508_v0 = vand.u32 4294901760, %v262_v6  ;;  %v14954_v31 = vand.u32 4294901760, %v12467_v12 }
 0x1cb   : > { %4531 = vmatmul.mubr.f32.gmra.mxu0 %v10833_v40  ;;  %4657 = vmatprep.subr.mxu0 %v12413_v53  ;;  %v4778_v3 = vsub.f32 %v12447_v10, %v14952_v15  ;;  %v12548_v15 = vsub.f32 %v286_v37, %v12506_v2  ;;  %v4773_v50 = vand.u32 4294901760, %v4772_v36 }
 0x1cc   : > { %4580 = vmatpush1.msra.mxu1 %v12173_v41  ;;  %4659 = vmatpush1.msra.mxu0 %v12420_v59  ;;  %v12527_v41 = vsub.f32 %v311_v60, %v12486_v49  ;;  %v4784_v60 = vsub.f32 %v12454_v13, %v14953_v57  ;;  %v12555_v46 = vsub.f32 %v262_v6, %v12508_v0  ;;  %v14955_v57 = vand.u32 4294901760, %v12474_v4 }
 0x1cd   : > { %4582 = vmatprep.subr.mxu1 %v12197_v44  ;;  %4661 = vmatprep.subr.mxu0 %v12429_v58  ;;  %v4767_v44 = vand.u32 4294901760, %v4766_v26  ;;  %v12566_v26 = vsub.f32 %v261_v17, %v12532_v27  ;;  %v14956_v6 = vand.u32 4294901760, %v12490_v34 }
 0x1ce   : > { %4584 = vmatpush1.msra.mxu1 %v12199_v8  ;;  %4617 = vmatprep.mubr.f32.mxu1 %v14862_v28  ;;  %v4790_v8 = vsub.f32 %v12467_v12, %v14954_v31  ;;  %v4796_v18 = vsub.f32 %v12474_v4, %v14955_v57  ;;  %v4779_v31 = vand.u32 4294901760, %v4778_v3  ;;  %v4785_v57 = vand.u32 4294901760, %v4784_v60 }
 0x1cf   : > { %4663 = vmatpush1.msra.mxu0 %v12437_v48  ;;  %4619 = vmatmul.mubr.f32.vlgmr.msra.gmra.mxu1 %v10769_v9  ;;  %v12562_v48 = vpop.f32.mrf.mxu0  ;;  %v14958_v60 = vand.u32 4294901760, %v12520_v1 }
 0x1d0   : > { %4665 = vmatprep.subr.mxu0 %v12444_v21  ;;  %4756 = vmatprep.subr.mxu1 %v4755_v62  ;;  %v4802_v62 = vsub.f32 %v12490_v34, %v14956_v6  ;;  %v2310_v21 = vpop.f32.mrf.mxu1  ;;  %v4791_v17 = vand.u32 4294901760, %v4790_v8 }
 0x1d1   : > { %4667 = vmatpush1.msra.mxu0 %v12464_v24  ;;  %4762 = vmatpush1.msra.mxu1 %v4761_v32  ;;  %v2437_v58 = vpop.f32.mrf.mxu0  ;;  %v14957_v32 = vand.u32 4294901760, %v12504_v22  ;;  %v4814_v37 = vsub.f32 %v12520_v1, %v14958_v60 }
 0x1d2   : > { %4669 = vmatprep.subr.mxu0 %v12479_v45  ;;  %4768 = vmatprep.subr.mxu1 %v4767_v44  ;;  %v4797_v44 = vand.u32 4294901760, %v4796_v18  ;;  %v4803_v8 = vand.u32 4294901760, %v4802_v62  ;;  %v2317_v36 = vpop.f32.mrf.mxu1  ;;  %v14960_v18 = vand.u32 4294901760, %v12543_v19  ;;  %v14961_v62 = vld [vmem:[#allocation21_spill] sm:$0xff] }
 0x1d3   : > { %4624 = vmatprep.mubr.f32.mxu1 %v14862_v28  ;;  %4671 = vmatpush1.msra.mxu0 %v12486_v49  ;;  %v4808_v3 = vsub.f32 %v12504_v22, %v14957_v32  ;;  %v2099_v49 = vadd.f32 %v12415_v54, %v12356_v56  ;;  %v14959_v32 = vand.u32 4294901760, %v12527_v41  ;;  %v2101_v56 = vadd.f32 %v12449_v14, %v12373_v20 }
 0x1d4   : > { %4774 = vmatpush1.msra.mxu1 %v4773_v50  ;;  %4673 = vmatprep.subr.mxu0 %v12498_v7  ;;  %v4826_v60 = vsub.f32 %v12543_v19, %v14960_v18  ;;  %v12600_v7 = vsub.s32 4, %v14961_v62  ;;  %v14963_v50 = vand.u32 4294901760, %v12548_v15  ;;  %v12610_v20 = vsub.s32 5, %v14961_v62 }
 0x1d5   : > { %4626 = vmatmul.mubr.f32.gmra.mxu1 %v10833_v40  ;;  %4780 = vmatprep.subr.mxu1 %v4779_v31  ;;  %v4820_v6 = vsub.f32 %v12527_v41, %v14959_v32  ;;  %v2211_v54 = vadd.f32 %v12440_v61, %v2099_v49  ;;  %v2439_v31 = vpop.f32.mrf.mxu0  ;;  %v4809_v32 = vand.u32 4294901760, %v4808_v3  ;;  %v4815_v61 = vand.u32 4294901760, %v4814_v37  ;;  %v12625_v37 = vld [vmem:[#allocation8] sm:$0xff] }
 0x1d6   : > { %4675 = vmatpush1.msra.mxu0 %v12506_v2  ;;  %4786 = vmatpush1.msra.mxu1 %v4785_v57  ;;  %14962 = vst [vmem:[#allocation26_spill] sm:$0xff] %v12600_v7  ;;  %v4832_v57 = vsub.f32 %v12548_v15, %v14963_v50  ;;  %v14964_v2 = vand.u32 4294901760, %v12555_v46  ;;  %14965 = vst [vmem:[#allocation29_spill] sm:$0xff] %v12610_v20  ;;  %v2106_v14 = vadd.f32 %v12469_v35, %v12383_v25 }
 0x1d7   : > { %4677 = vmatprep.subr.mxu0 %v12508_v0  ;;  %4792 = vmatprep.subr.mxu1 %v4791_v17  ;;  %v2213_v49 = vadd.f32 %v12482_v33, %v2101_v56  ;;  %v2309_v17 = vadd.f32 %v12535_v55, %v2211_v54  ;;  %v4821_v3 = vand.u32 4294901760, %v4820_v6  ;;  %v2108_v62 = vadd.f32 %v12511_v47, %v12409_v63  ;;  %v2444_v55 = vpop.f32.mrf.mxu0 }
 0x1d8   : > { %v4838_v18 = vsub.f32 %v12555_v46, %v14964_v2  ;;  %4679 = vmatpush1.msra.mxu0 %v12532_v27  ;;  %4798 = vmatpush1.msra.mxu1 %v4797_v44  ;;  %v14966_v2 = vand.u32 4294901760, %v12566_v26  ;;  %v2319_v44 = vpop.f32.mrf.mxu1  ;;  %v4827_v25 = vand.u32 4294901760, %v4826_v60  ;;  %v9415_v6 = vrot.slane %v12625_v37, %v12600_v7 }
 0x1d9   : > { %4712 = vmatprep.mubr.f32.mxu0 %v14862_v28  ;;  %4804 = vmatprep.subr.mxu1 %v4803_v8  ;;  %v2311_v35 = vadd.f32 %v2310_v21, %v2213_v49  ;;  %v2438_v33 = vadd.f32 %v2437_v58, %v2309_v17  ;;  %v4833_v8 = vand.u32 4294901760, %v4832_v57  ;;  %v9419_v63 = vrot.slane %v12625_v37, %v12610_v20  ;;  %v2446_v17 = vpop.f32.mrf.mxu0 }
 0x1da   : > { %v4844_v50 = vsub.f32 %v12566_v26, %v14966_v2  ;;  %4912 = vmatprep.subr.mxu0 %v12395_v11  ;;  %4718 = vmatmul.mubr.f32.vlgmr.msra.gmra.mxu0 %v10835_v23  ;;  %v4839_v47 = vand.u32 4294901760, %v4838_v18  ;;  %v2219_v58 = vadd.f32 %v12522_v51, %v2106_v14 }
 0x1db   : > { %4810 = vmatpush1.msra.mxu1 %v4809_v32  ;;  %4915 = vmatpush1.msra.mxu0 %v12405_v38  ;;  %v2532_v56 = vpop.f32.mrf.mxu1  ;;  %v2440_v21 = vadd.f32 %v2439_v31, %v2311_v35  ;;  %v2221_v32 = vadd.f32 %v12562_v48, %v2108_v62 }
 0x1dc   : > { %4816 = vmatprep.subr.mxu1 %v4815_v61  ;;  %4918 = vmatprep.subr.mxu0 %v12424_v5  ;;  %v2533_v60 = vadd.f32 %v2532_v56, %v2438_v33  ;;  %v4845_v54 = vand.u32 4294901760, %v4844_v50  ;;  %v2318_v57 = vadd.f32 %v2317_v36, %v2219_v58 }
 0x1dd   : > { %4822 = vmatpush1.msra.mxu1 %v4821_v3  ;;  %4921 = vmatpush1.msra.mxu0 %v12435_v29  ;;  %v2534_v49 = vpop.f32.mrf.mxu1  ;;  %v2320_v51 = vadd.f32 %v2319_v44, %v2221_v32 }
 0x1de   : > { %4828 = vmatprep.subr.mxu1 %v4827_v25  ;;  %4924 = vmatprep.subr.mxu0 %v12447_v10  ;;  %v9525_v61 = vsub.f32 %v2533_v60, %v9415_v6  ;;  %v2535_v2 = vadd.f32 %v2534_v49, %v2440_v21  ;;  %v2445_v31 = vadd.f32 %v2444_v55, %v2318_v57  ;;  %v14967_v21 = vld [vmem:[#allocation17_spill] sm:$0xff]  ;;  %v14970_v57 = vld [vmem:[#allocation19_spill] sm:$0xff] }
 0x1df   : > { %4834 = vmatpush1.msra.mxu1 %v4833_v8  ;;  %4927 = vmatpush1.msra.mxu0 %v12454_v13  ;;  %v2447_v48 = vadd.f32 %v2446_v17, %v2320_v51  ;;  %v14969_v49 = vld [vmem:[#allocation13_spill] sm:$0xff]  ;;  %v14971_v17 = vand.u32 4294901760, %v12395_v11  ;;  %v14974_v51 = vld [vmem:[#allocation20_spill] sm:$0xff]  ;;  %v14975_v11 = vand.u32 4294901760, %v12435_v29 }
 0x1e0   : > { %4840 = vmatprep.subr.mxu1 %v4839_v47  ;;  %4930 = vmatprep.subr.mxu0 %v12467_v12  ;;  %v9585_v18 = vmul.f32 %v12018_v39, %v9525_v61  ;;  %v9526_v14 = vsub.f32 %v2535_v2, %v9419_v63  ;;  %v14973_v2 = vand.u32 4294901760, %v12424_v5  ;;  %v439_v5 = vld [vmem:[#allocation6 + $0x5f0] sm:$0xff] }
 0x1e1   : > { %4846 = vmatpush1.msra.mxu1 %v4845_v54  ;;  %4879 = vmatprep.mubr.f32.mxu1 %v14862_v28  ;;  %v2539_v62 = vpop.f32.mrf.mxu1  ;;  %v14968_v54 = vld [vmem:[#allocation18_spill] sm:$0xff] }
 0x1e2   : > { %4933 = vmatpush1.msra.mxu0 %v12474_v4  ;;  %4881 = vmatmul.mubr.f32.vlgmr.msra.gmra.mxu1 %v10769_v9  ;;  %v9635_v36 = vmul.f32 %v9585_v18, %v9525_v61  ;;  %v9586_v3 = vmul.f32 %v12018_v39, %v9526_v14  ;;  %v2540_v50 = vadd.f32 %v2539_v62, %v2445_v31  ;;  %v14972_v61 = vand.u32 4294901760, %v12405_v38  ;;  %v14976_v31 = vld [vmem:[#allocation24_spill] sm:$0xff]  ;;  %v14977_v38 = vld [vmem:[#allocation15_spill] sm:$0xff]  ;;  %v14979_v62 = vld [vmem:[#allocation25_spill] sm:$0xff] }
 0x1e3   : > { %4936 = vmatprep.subr.mxu0 %v12490_v34  ;;  %5024 = vmatprep.subr.mxu1 %v12371_v42  ;;  %v2541_v44 = vpop.f32.mrf.mxu1 }
 0x1e4   : > { %4939 = vmatpush1.msra.mxu0 %v12504_v22  ;;  %5026 = vmatpush1.msra.mxu1 %v12381_v52  ;;  %v9689_v25 = vmul.f32 1.442695, %v9635_v36  ;;  %v9636_v35 = vmul.f32 %v9586_v3, %v9526_v14  ;;  %v9550_v33 = vsub.f32 %v2540_v50, %v9415_v6  ;;  %v2542_v55 = vadd.f32 %v2541_v44, %v2447_v48  ;;  %v438_v50 = vld [vmem:[#allocation6 + $0x5e8] sm:$0xff] }
 0x1e5   : > { %4942 = vmatprep.subr.mxu0 %v12520_v1  ;;  %5028 = vmatprep.subr.mxu1 %v12392_v16  ;;  %v14978_v48 = vand.u32 4294901760, %v12447_v10  ;;  %v14980_v36 = vand.u32 4294901760, %v12454_v13  ;;  %v14981_v3 = vand.u32 4294901760, %v12467_v12  ;;  %v12696_v10 = vand.u32 4294901760, %v439_v5 }
 0x1e6   : > { %4723 = vmatprep.mubr.f32.mxu0 %v14862_v28  ;;  %4945 = vmatpush1.msra.mxu0 %v12527_v41  ;;  %10226 = vpow2.f32 %v9689_v25  ;;  %v9691_v8 = vmul.f32 1.442695, %v9636_v35  ;;  %v9610_v56 = vmul.f32 %v12018_v39, %v9550_v33  ;;  %v9551_v47 = vsub.f32 %v2542_v55, %v9419_v63  ;;  %v12682_v18 = vpop.f32.mrf.mxu0  ;;  %v14983_v25 = vld [vmem:[#allocation14_spill] sm:$0xff] }
 0x1e7   : > { %5030 = vmatpush1.msra.mxu1 %v12407_v43  ;;  %4729 = vmatmul.mubr.f32.gmra.mxu0 %v10869_v30  ;;  %v14982_v13 = vand.u32 4294901760, %v12474_v4  ;;  %v414_v35 = vld [vmem:[#allocation6 + $0x528] sm:$0xff]  ;;  %v14984_v12 = vand.u32 4294901760, %v12490_v34  ;;  %v413_v4 = vld [vmem:[#allocation6 + $0x520] sm:$0xff] }
 0x1e8   : > { %4948 = vmatprep.subr.mxu0 %v12543_v19  ;;  %5032 = vmatprep.subr.mxu1 %v12413_v53  ;;  %10228 = vpow2.f32 %v9691_v8  ;;  %v9660_v6 = vmul.f32 %v9610_v56, %v9550_v33  ;;  %v9611_v58 = vmul.f32 %v12018_v39, %v9551_v47  ;;  %v12699_v44 = vpop.f32.mrf.mxu0  ;;  %v12707_v33 = vand.u32 4294901760, %v438_v50 }
 0x1e9   : > { %4951 = vmatpush1.msra.mxu0 %v12548_v15  ;;  %5034 = vmatpush1.msra.mxu1 %v12420_v59  ;;  %v14985_v56 = vand.u32 4294901760, %v12504_v22  ;;  %v12717_v34 = vand.u32 4294901760, %v414_v35  ;;  %v14987_v22 = vand.u32 4294901760, %v12527_v41 }
 0x1ea   : > { %4954 = vmatprep.subr.mxu0 %v12555_v46  ;;  %5036 = vmatprep.subr.mxu1 %v14967_v21  ;;  %v9739_v63 = vmul.f32 1.442695, %v9660_v6  ;;  %v9661_v60 = vmul.f32 %v9611_v58, %v9551_v47  ;;  %v14986_v47 = vand.u32 4294901760, %v12520_v1  ;;  %v12720_v6 = vsub.f32 %v439_v5, %v12696_v10 }
 0x1eb   : > { %4957 = vmatpush1.msra.mxu0 %v12566_v26  ;;  %4990 = vmatprep.mubr.f32.mxu0 %v14862_v28  ;;  %v14988_v1 = vand.u32 4294901760, %v12543_v19  ;;  %v14990_v19 = vand.u32 4294901760, %v12548_v15  ;;  %v14994_v15 = vand.u32 4294901760, %v12566_v26  ;;  %v314_v26 = vld [vmem:[#allocation6 + $0x208] sm:$0xff] }
 0x1ec   : > { %5038 = vmatpush1.msra.mxu1 %v14968_v54  ;;  %4886 = vmatprep.mubr.f32.mxu1 %v14862_v28  ;;  %10230 = vpow2.f32 %v9739_v63  ;;  %v9741_v32 = vmul.f32 1.442695, %v9661_v60  ;;  %v12732_v63 = vand.u32 4294901760, %v413_v4  ;;  %v364_v60 = vld [vmem:[#allocation6 + $0x398] sm:$0xff] }
 0x1ed   : > { %4993 = vmatmul.mubr.f32.vlgmr.msra.gmra.mxu0 %v14969_v49  ;;  %5040 = vmatprep.subr.mxu1 %v14970_v57  ;;  %v12755_v5 = vand.u32 4294901760, %v364_v60 }
 0x1ee   : > { %5125 = vmatprep.subr.mxu0 %v14971_v17  ;;  %4888 = vmatmul.mubr.f32.gmra.mxu1 %v10833_v40  ;;  %10232 = vpow2.f32 %v9741_v32  ;;  %v14989_v17 = vld [vmem:[#allocation16_spill] sm:$0xff] }
 0x1ef   : > { %5042 = vmatpush1.msra.mxu1 %v12464_v24  ;;  %5129 = vmatpush1.msra.mxu0 %v14972_v61  ;;  %v363_v61 = vld [vmem:[#allocation6 + $0x390] sm:$0xff]  ;;  %14993 = vst [vmem:[#allocation18_spill] sm:$0xff] %v12755_v5 }
 0x1f0   : > { %5044 = vmatprep.subr.mxu1 %v12479_v45  ;;  %5133 = vmatprep.subr.mxu0 %v14973_v2 }
 0x1f1   : > { %4998 = vmatprep.mubr.f32.mxu0 %v14862_v28  ;;  %5046 = vmatpush1.msra.mxu1 %v14974_v51 }
 0x1f2   : > { %5137 = vmatpush1.msra.mxu0 %v14975_v11  ;;  %5048 = vmatprep.subr.mxu1 %v14976_v31  ;;  %v339_v11 = vld [vmem:[#allocation6 + $0x2d0] sm:$0xff] }
 0x1f3   : > { %v10227_v14 = vpop.eup %10226  ;;  %5001 = vmatmul.mubr.f32.gmra.mxu0 %v14977_v38  ;;  %5141 = vmatprep.subr.mxu0 %v14978_v48  ;;  %v12709_v55 = vpop.f32.mrf.mxu0  ;;  %v12750_v48 = vsub.f32 %v414_v35, %v12717_v34 }
 0x1f4   : > { %5050 = vmatpush1.msra.mxu1 %v14979_v62  ;;  %5145 = vmatpush1.msra.mxu0 %v14980_v36  ;;  %9785 = vst [vmem:[%s12168_s24 + $0x20] sm:$0xff] %v10227_v14  ;;  %v14741_v14 = vand.u32 4294901760, %v12720_v6  ;;  %v12763_v36 = vand.u32 4294901760, %v363_v61 }
 0x1f5   : > { %v10229_v29 = vpop.eup %10228  ;;  %5052 = vmatprep.subr.mxu1 %v12508_v0  ;;  %5149 = vmatprep.subr.mxu0 %v14981_v3  ;;  %v12735_v32 = vpop.f32.mrf.mxu0 }
 0x1f6   : > { %5054 = vmatpush1.msra.mxu1 %v12532_v27  ;;  %5087 = vmatprep.mubr.f32.mxu1 %v14862_v28  ;;  %9786 = vst [vmem:[%s12168_s24 + $0x28] sm:$0xff] %v10229_v29  ;;  %14995 = vst [vmem:[#allocation19_spill] sm:$0xff] %v12763_v36  ;;  %v338_v29 = vld [vmem:[#allocation6 + $0x2c8] sm:$0xff] }
 0x1f7   : > { %5153 = vmatpush1.msra.mxu0 %v14982_v13  ;;  %5091 = vmatmul.mubr.f32.vlgmr.msra.gmra.mxu1 %v14983_v25 }
 0x1f8   : > { %5157 = vmatprep.subr.mxu0 %v14984_v12  ;;  %5250 = vmatprep.subr.mxu1 %v12371_v42  ;;  %v389_v42 = vld [vmem:[#allocation6 + $0x460] sm:$0xff]  ;;  %v14742_v12 = vand.u32 4294901760, %v12750_v48 }
 0x1f9   : > { %v10231_v8 = vpop.eup %10230  ;;  %5161 = vmatpush1.msra.mxu0 %v14985_v56  ;;  %5252 = vmatpush1.msra.mxu1 %v12381_v52  ;;  %v388_v52 = vld [vmem:[#allocation6 + $0x458] sm:$0xff]  ;;  %v12739_v41 = vand.u32 4294901760, %v389_v42  ;;  %v12790_v56 = vand.u32 4294901760, %v338_v29 }
 0x1fa   : > { %5165 = vmatprep.subr.mxu0 %v14986_v47  ;;  %5254 = vmatprep.subr.mxu1 %v12392_v16  ;;  %9810 = vst [vmem:[%s12168_s24 + $0xe8] sm:$0xff] %v10231_v8  ;;  %v12730_v16 = vsub.f32 %v438_v50, %v12707_v33  ;;  %v12746_v2 = vand.u32 4294901760, %v388_v52  ;;  %v12766_v50 = vpop.f32.mrf.mxu0  ;;  %v313_v8 = vld [vmem:[#allocation6 + $0x200] sm:$0xff] }
 0x1fb   : > { %v10233_v58 = vpop.eup %10232  ;;  %5096 = vmatprep.mubr.f32.mxu1 %v14862_v28  ;;  %5169 = vmatpush1.msra.mxu0 %v14987_v22 }
 0x1fc   : > { %5256 = vmatpush1.msra.mxu1 %v12407_v43  ;;  %5173 = vmatprep.subr.mxu0 %v14988_v1  ;;  %9811 = vst [vmem:[%s12168_s24 + $0xf0] sm:$0xff] %v10233_v58  ;;  %v12741_v43 = vpop.f32.mrf.mxu1  ;;  %14991 = vst [vmem:[#allocation17_spill] sm:$0xff] %v12746_v2  ;;  %v14740_v3 = vand.u32 4294901760, %v12730_v16  ;;  %v12780_v35 = vsub.f32 %v388_v52, %v12746_v2  ;;  %v12805_v58 = vand.u32 4294901760, %v314_v26  ;;  %v288_v52 = vld [vmem:[#allocation6 + $0x138] sm:$0xff] }
 0x1fd   : > { %5100 = vmatmul.mubr.f32.gmra.mxu1 %v14989_v17  ;;  %5258 = vmatprep.subr.mxu1 %v12413_v53  ;;  %v14992_v53 = vand.u32 4294901760, %v12555_v46  ;;  %v12770_v46 = vand.u32 4294901760, %v339_v11  ;;  %v264_v1 = vld [vmem:[#allocation6 + $0x78] sm:$0xff] }
 0x1fe   : > { %5177 = vmatpush1.msra.mxu0 %v14990_v19  ;;  %5260 = vmatpush1.msra.mxu1 %v12420_v59  ;;  %v12761_v59 = vsub.f32 %v413_v4, %v12732_v63  ;;  %v12775_v13 = vpop.f32.mrf.mxu1  ;;  %v12793_v4 = vsub.f32 %v364_v60, %v12755_v5  ;;  %v12808_v60 = vpop.f32.mrf.mxu0  ;;  %v12846_v7 = vsub.f32 %v314_v26, %v12805_v58  ;;  %v15002_v26 = vand.u32 4294901760, %v12780_v35 }
 0x1ff   : > { %5181 = vmatprep.subr.mxu0 %v14992_v53  ;;  %5262 = vmatprep.subr.mxu1 %v14967_v21  ;;  %14996 = vst [vmem:[#allocation20_spill] sm:$0xff] %v12770_v46  ;;  %v12773_v21 = vsub.f32 %v389_v42, %v12739_v41  ;;  %v12800_v42 = vsub.f32 %v363_v61, %v12763_v36  ;;  %v12832_v61 = vand.u32 4294901760, %v288_v52 }
 0x200   : > { %5185 = vmatpush1.msra.mxu0 %v14994_v15  ;;  %5218 = vmatprep.mubr.f32.mxu0 %v14862_v28  ;;  %v12795_v47 = vpop.f32.mrf.mxu1  ;;  %v12816_v19 = vsub.f32 %v339_v11, %v12770_v46  ;;  %v5462_v15 = vsub.f32 %v12750_v48, %v14742_v12  ;;  %v12830_v11 = vsub.f32 %v338_v29, %v12790_v56  ;;  %v12848_v17 = vpop.f32.mrf.mxu0 }
 0x201   : > { %5264 = vmatpush1.msra.mxu1 %v14968_v54  ;;  %5220 = vmatmul.mubr.f32.vlgmr.msra.gmra.mxu0 %v10769_v9  ;;  %v12785_v54 = vsub.f32 %v12720_v6, %v14741_v14  ;;  %v263_v14 = vld [vmem:[#allocation6 + $0x70] sm:$0xff]  ;;  %14999 = vst [vmem:[#allocation30_spill] sm:$0xff] %v12832_v61 }
 0x202   : > { %5266 = vmatprep.subr.mxu1 %v14970_v57  ;;  %5345 = vmatprep.subr.mxu0 %v12696_v10  ;;  %v289_v57 = vld [vmem:[#allocation6 + $0x140] sm:$0xff]  ;;  %v12837_v22 = vpop.f32.mrf.mxu1  ;;  %v12858_v25 = vand.u32 4294901760, %v263_v14 }
 0x203   : > { %5268 = vmatpush1.msra.mxu1 %v12464_v24  ;;  %5347 = vmatpush1.msra.mxu0 %v12707_v33  ;;  %v5456_v24 = vsub.f32 %v12730_v16, %v14740_v3  ;;  %v5451_v53 = vand.u32 4294901760, %v12785_v54  ;;  %v12824_v3 = vand.u32 4294901760, %v289_v57 }
 0x204   : > { %5270 = vmatprep.subr.mxu1 %v12479_v45  ;;  %5349 = vmatprep.subr.mxu0 %v12717_v34  ;;  %v12812_v45 = vand.u32 4294901760, %v313_v8  ;;  %v12861_v29 = vpop.f32.mrf.mxu1 }
 0x205   : > { %5225 = vmatprep.mubr.f32.mxu0 %v14862_v28  ;;  %5272 = vmatpush1.msra.mxu1 %v14974_v51  ;;  %14998 = vst [vmem:[#allocation25_spill] sm:$0xff] %v12824_v3  ;;  %v5457_v12 = vand.u32 4294901760, %v5456_v24  ;;  %v15000_v51 = vand.u32 4294901760, %v12761_v59  ;;  %v15001_v24 = vand.u32 4294901760, %v12773_v21  ;;  %v12869_v38 = vsub.f32 %v289_v57, %v12824_v3 }
 0x206   : > { %14997 = vst [vmem:[#allocation24_spill] sm:$0xff] %v12812_v45  ;;  %5351 = vmatpush1.msra.mxu0 %v12732_v63  ;;  %5274 = vmatprep.subr.mxu1 %v14976_v31  ;;  %v12834_v31 = vand.u32 4294901760, %v264_v1 }
 0x207   : > { %5227 = vmatmul.mubr.f32.gmra.mxu0 %v10833_v40  ;;  %5353 = vmatprep.subr.mxu0 %v12739_v41  ;;  %v5468_v20 = vsub.f32 %v12761_v59, %v15000_v51  ;;  %v5474_v54 = vsub.f32 %v12773_v21, %v15001_v24  ;;  %v12874_v24 = vsub.f32 %v288_v52, %v12832_v61  ;;  %v15003_v51 = vand.u32 4294901760, %v12793_v4 }
 0x208   : > { %5276 = vmatpush1.msra.mxu1 %v14979_v62  ;;  %5355 = vmatpush1.msra.mxu0 %v12746_v2  ;;  %v12853_v62 = vsub.f32 %v313_v8, %v12812_v45  ;;  %v5480_v8 = vsub.f32 %v12780_v35, %v15002_v26  ;;  %v12881_v49 = vsub.f32 %v264_v1, %v12834_v31  ;;  %v15004_v26 = vand.u32 4294901760, %v12800_v42 }
 0x209   : > { %5278 = vmatprep.subr.mxu1 %v12508_v0  ;;  %5357 = vmatprep.subr.mxu0 %v12755_v5  ;;  %v5463_v0 = vand.u32 4294901760, %v5462_v15  ;;  %v5469_v57 = vand.u32 4294901760, %v5468_v20  ;;  %v12888_v5 = vpop.f32.mrf.mxu0  ;;  %v12892_v15 = vsub.f32 %v263_v14, %v12858_v25  ;;  %v15005_v1 = vand.u32 4294901760, %v12816_v19 }
 0x20a   : > { %5280 = vmatpush1.msra.mxu1 %v12532_v27  ;;  %5313 = vmatprep.mubr.f32.mxu1 %v14862_v28  ;;  %v5486_v27 = vsub.f32 %v12793_v4, %v15003_v51  ;;  %v5475_v51 = vand.u32 4294901760, %v5474_v54 }
 0x20b   : > { %5359 = vmatpush1.msra.mxu0 %v12763_v36  ;;  %5315 = vmatmul.mubr.f32.vlgmr.msra.gmra.mxu1 %v10769_v9  ;;  %v5492_v36 = vsub.f32 %v12800_v42, %v15004_v26  ;;  %v5481_v26 = vand.u32 4294901760, %v5480_v8  ;;  %v15007_v8 = vand.u32 4294901760, %v12846_v7 }
 0x20c   : > { %5361 = vmatprep.subr.mxu0 %v12770_v46  ;;  %5452 = vmatprep.subr.mxu1 %v5451_v53  ;;  %v5498_v53 = vsub.f32 %v12816_v19, %v15005_v1  ;;  %v3006_v46 = vpop.f32.mrf.mxu1  ;;  %v5487_v14 = vand.u32 4294901760, %v5486_v27 }
 0x20d   : > { %5363 = vmatpush1.msra.mxu0 %v12790_v56  ;;  %5458 = vmatpush1.msra.mxu1 %v5457_v12  ;;  %v3133_v2 = vpop.f32.mrf.mxu0  ;;  %v15006_v12 = vand.u32 4294901760, %v12830_v11  ;;  %v5510_v52 = vsub.f32 %v12846_v7, %v15007_v8 }
 0x20e   : > { %5365 = vmatprep.subr.mxu0 %v12805_v58  ;;  %5464 = vmatprep.subr.mxu1 %v5463_v0  ;;  %v5493_v0 = vand.u32 4294901760, %v5492_v36  ;;  %v5499_v27 = vand.u32 4294901760, %v5498_v53  ;;  %v3013_v20 = vpop.f32.mrf.mxu1  ;;  %v15009_v36 = vand.u32 4294901760, %v12869_v38  ;;  %v15010_v53 = vld [vmem:[#allocation21_spill] sm:$0xff] }
 0x20f   : > { %5320 = vmatprep.mubr.f32.mxu1 %v14862_v28  ;;  %5367 = vmatpush1.msra.mxu0 %v12812_v45  ;;  %v5504_v54 = vsub.f32 %v12830_v11, %v15006_v12  ;;  %v2795_v45 = vadd.f32 %v12741_v43, %v12682_v18  ;;  %v15008_v12 = vand.u32 4294901760, %v12853_v62  ;;  %v2797_v18 = vadd.f32 %v12775_v13, %v12699_v44 }
 0x210   : > { %5470 = vmatpush1.msra.mxu1 %v5469_v57  ;;  %5369 = vmatprep.subr.mxu0 %v12824_v3  ;;  %v5522_v8 = vsub.f32 %v12869_v38, %v15009_v36  ;;  %v12926_v3 = vsub.s32 6, %v15010_v53  ;;  %v15012_v57 = vand.u32 4294901760, %v12874_v24  ;;  %v12936_v44 = vsub.s32 7, %v15010_v53 }
 0x211   : > { %5322 = vmatmul.mubr.f32.gmra.mxu1 %v10833_v40  ;;  %5476 = vmatprep.subr.mxu1 %v5475_v51  ;;  %v5516_v1 = vsub.f32 %v12853_v62, %v15008_v12  ;;  %v2907_v43 = vadd.f32 %v12766_v50, %v2795_v45  ;;  %v3135_v51 = vpop.f32.mrf.mxu0  ;;  %v5505_v12 = vand.u32 4294901760, %v5504_v54  ;;  %v5511_v50 = vand.u32 4294901760, %v5510_v52 }
 0x212   : > { %5371 = vmatpush1.msra.mxu0 %v12832_v61  ;;  %5482 = vmatpush1.msra.mxu1 %v5481_v26  ;;  %15011 = vst [vmem:[#allocation21_spill] sm:$0xff] %v12926_v3  ;;  %v5528_v26 = vsub.f32 %v12874_v24, %v15012_v57  ;;  %v15013_v61 = vand.u32 4294901760, %v12881_v49  ;;  %15014 = vst [vmem:[#allocation31_spill] sm:$0xff] %v12936_v44  ;;  %v2802_v13 = vadd.f32 %v12795_v47, %v12709_v55 }
 0x213   : > { %5373 = vmatprep.subr.mxu0 %v12834_v31  ;;  %5488 = vmatprep.subr.mxu1 %v5487_v14  ;;  %v2909_v45 = vadd.f32 %v12808_v60, %v2797_v18  ;;  %v3005_v14 = vadd.f32 %v12861_v29, %v2907_v43  ;;  %v5517_v54 = vand.u32 4294901760, %v5516_v1  ;;  %v2804_v53 = vadd.f32 %v12837_v22, %v12735_v32  ;;  %v3140_v29 = vpop.f32.mrf.mxu0 }
 0x214   : > { %v5534_v36 = vsub.f32 %v12881_v49, %v15013_v61  ;;  %5375 = vmatpush1.msra.mxu0 %v12858_v25  ;;  %5494 = vmatpush1.msra.mxu1 %v5493_v0  ;;  %v15015_v61 = vand.u32 4294901760, %v12892_v15  ;;  %v3015_v0 = vpop.f32.mrf.mxu1  ;;  %v5523_v55 = vand.u32 4294901760, %v5522_v8  ;;  %v9423_v52 = vrot.slane %v12625_v37, %v12926_v3 }
 0x215   : > { %5408 = vmatprep.mubr.f32.mxu0 %v14862_v28  ;;  %5500 = vmatprep.subr.mxu1 %v5499_v27  ;;  %v3007_v47 = vadd.f32 %v3006_v46, %v2909_v45  ;;  %v3134_v60 = vadd.f32 %v3133_v2, %v3005_v14  ;;  %v5529_v1 = vand.u32 4294901760, %v5528_v26  ;;  %v9427_v32 = vrot.slane %v12625_v37, %v12936_v44  ;;  %v3142_v37 = vpop.f32.mrf.mxu0 }
 0x216   : > { %v5540_v57 = vsub.f32 %v12892_v15, %v15015_v61  ;;  %5608 = vmatprep.subr.mxu0 %v12720_v6  ;;  %5414 = vmatmul.mubr.f32.vlgmr.msra.gmra.mxu0 %v10835_v23  ;;  %v5535_v22 = vand.u32 4294901760, %v5534_v36  ;;  %v2915_v8 = vadd.f32 %v12848_v17, %v2802_v13  ;;  %v2917_v43 = vadd.f32 %v12888_v5, %v2804_v53 }
 0x217   : > { %5506 = vmatpush1.msra.mxu1 %v5505_v12  ;;  %5611 = vmatpush1.msra.mxu0 %v12730_v16  ;;  %v3228_v27 = vpop.f32.mrf.mxu1  ;;  %v3136_v46 = vadd.f32 %v3135_v51, %v3007_v47 }
 0x218   : > { %5512 = vmatprep.subr.mxu1 %v5511_v50  ;;  %5614 = vmatprep.subr.mxu0 %v12750_v48  ;;  %v3229_v2 = vadd.f32 %v3228_v27, %v3134_v60  ;;  %v5541_v18 = vand.u32 4294901760, %v5540_v57  ;;  %v3014_v26 = vadd.f32 %v3013_v20, %v2915_v8  ;;  %v3016_v17 = vadd.f32 %v3015_v0, %v2917_v43  ;;  %v15017_v8 = vld [vmem:[#allocation18_spill] sm:$0xff]  ;;  %v15019_v43 = vld [vmem:[#allocation13_spill] sm:$0xff] }
 0x219   : > { %5518 = vmatpush1.msra.mxu1 %v5517_v54  ;;  %5617 = vmatpush1.msra.mxu0 %v12761_v59  ;;  %v3230_v12 = vpop.f32.mrf.mxu1 }
 0x21a   : > { %5524 = vmatprep.subr.mxu1 %v5523_v55  ;;  %5620 = vmatprep.subr.mxu0 %v12773_v21  ;;  %v9527_v50 = vsub.f32 %v3229_v2, %v9423_v52  ;;  %v3231_v45 = vadd.f32 %v3230_v12, %v3136_v46  ;;  %v3141_v51 = vadd.f32 %v3140_v29, %v3014_v26  ;;  %v15018_v2 = vld [vmem:[#allocation19_spill] sm:$0xff]  ;;  %v15020_v12 = vld [vmem:[#allocation20_spill] sm:$0xff]  ;;  %v15021_v26 = vand.u32 4294901760, %v12720_v6 }
 0x21b   : > { %5530 = vmatpush1.msra.mxu1 %v5529_v1  ;;  %5623 = vmatpush1.msra.mxu0 %v12780_v35  ;;  %v3143_v5 = vadd.f32 %v3142_v37, %v3016_v17  ;;  %v15022_v37 = vand.u32 4294901760, %v12730_v16  ;;  %v15025_v6 = vand.u32 4294901760, %v12761_v59  ;;  %v15026_v17 = vld [vmem:[#allocation25_spill] sm:$0xff]  ;;  %v15027_v16 = vld [vmem:[#allocation15_spill] sm:$0xff] }
 0x21c   : > { %5536 = vmatprep.subr.mxu1 %v5535_v22  ;;  %5626 = vmatprep.subr.mxu0 %v12793_v4  ;;  %v9587_v36 = vmul.f32 %v12018_v39, %v9527_v50  ;;  %v9528_v13 = vsub.f32 %v3231_v45, %v9427_v32  ;;  %v15016_v22 = vld [vmem:[#allocation17_spill] sm:$0xff]  ;;  %v15024_v45 = vld [vmem:[#allocation24_spill] sm:$0xff] }
 0x21d   : > { %5542 = vmatpush1.msra.mxu1 %v5541_v18  ;;  %5575 = vmatprep.mubr.f32.mxu1 %v14862_v28  ;;  %v3235_v14 = vpop.f32.mrf.mxu1 }
 0x21e   : > { %5629 = vmatpush1.msra.mxu0 %v12800_v42  ;;  %5577 = vmatmul.mubr.f32.vlgmr.msra.gmra.mxu1 %v10769_v9  ;;  %v9637_v20 = vmul.f32 %v9587_v36, %v9527_v50  ;;  %v9588_v54 = vmul.f32 %v12018_v39, %v9528_v13  ;;  %v3236_v61 = vadd.f32 %v3235_v14, %v3141_v51  ;;  %v15023_v50 = vand.u32 4294901760, %v12750_v48  ;;  %v441_v48 = vld [vmem:[#allocation6 + $0x600] sm:$0xff] }
 0x21f   : > { %5632 = vmatprep.subr.mxu0 %v12816_v19  ;;  %5720 = vmatprep.subr.mxu1 %v12696_v10  ;;  %v3237_v57 = vpop.f32.mrf.mxu1  ;;  %v15030_v14 = vand.u32 4294901760, %v12780_v35  ;;  %v15032_v35 = vand.u32 4294901760, %v12800_v42  ;;  %v415_v42 = vld [vmem:[#allocation6 + $0x530] sm:$0xff] }
 0x220   : > { %5635 = vmatpush1.msra.mxu0 %v12830_v11  ;;  %5722 = vmatpush1.msra.mxu1 %v12707_v33  ;;  %v9693_v53 = vmul.f32 1.442695, %v9637_v20  ;;  %v9638_v0 = vmul.f32 %v9588_v54, %v9528_v13  ;;  %v9552_v55 = vsub.f32 %v3236_v61, %v9423_v52  ;;  %v3238_v47 = vadd.f32 %v3237_v57, %v3143_v5  ;;  %v15029_v5 = vld [vmem:[#allocation30_spill] sm:$0xff]  ;;  %v440_v54 = vld [vmem:[#allocation6 + $0x5f8] sm:$0xff] }
 0x221   : > { %5638 = vmatprep.subr.mxu0 %v12846_v7  ;;  %5724 = vmatprep.subr.mxu1 %v12717_v34  ;;  %v15028_v13 = vand.u32 4294901760, %v12773_v21  ;;  %v15031_v20 = vand.u32 4294901760, %v12793_v4  ;;  %v13020_v21 = vand.u32 4294901760, %v441_v48  ;;  %v15033_v57 = vld [vmem:[#allocation14_spill] sm:$0xff]  ;;  %v15034_v4 = vand.u32 4294901760, %v12816_v19 }
 0x222   : > { %5419 = vmatprep.mubr.f32.mxu0 %v14862_v28  ;;  %5641 = vmatpush1.msra.mxu0 %v12853_v62  ;;  %10234 = vpow2.f32 %v9693_v53  ;;  %v9695_v60 = vmul.f32 1.442695, %v9638_v0  ;;  %v9612_v29 = vmul.f32 %v12018_v39, %v9552_v55  ;;  %v9553_v1 = vsub.f32 %v3238_v47, %v9427_v32  ;;  %v13006_v51 = vpop.f32.mrf.mxu0  ;;  %v416_v53 = vld [vmem:[#allocation6 + $0x538] sm:$0xff] }
 0x223   : > { %5726 = vmatpush1.msra.mxu1 %v12732_v63  ;;  %5425 = vmatmul.mubr.f32.gmra.mxu0 %v10869_v30  ;;  %v13031_v0 = vand.u32 4294901760, %v440_v54  ;;  %v13041_v19 = vand.u32 4294901760, %v416_v53 }
 0x224   : > { %5644 = vmatprep.subr.mxu0 %v12869_v38  ;;  %5728 = vmatprep.subr.mxu1 %v12739_v41  ;;  %10236 = vpow2.f32 %v9695_v60  ;;  %v9662_v52 = vmul.f32 %v9612_v29, %v9552_v55  ;;  %v9613_v27 = vmul.f32 %v12018_v39, %v9553_v1  ;;  %v13023_v61 = vpop.f32.mrf.mxu0  ;;  %v15035_v60 = vand.u32 4294901760, %v12830_v11 }
 0x225   : > { %5647 = vmatpush1.msra.mxu0 %v12874_v24  ;;  %5730 = vmatpush1.msra.mxu1 %v15016_v22  ;;  %v15036_v29 = vand.u32 4294901760, %v12846_v7  ;;  %v15037_v11 = vand.u32 4294901760, %v12853_v62  ;;  %v15038_v7 = vand.u32 4294901760, %v12869_v38  ;;  %v15040_v38 = vand.u32 4294901760, %v12874_v24 }
 0x226   : > { %5650 = vmatprep.subr.mxu0 %v12881_v49  ;;  %5732 = vmatprep.subr.mxu1 %v15017_v8  ;;  %v9743_v32 = vmul.f32 1.442695, %v9662_v52  ;;  %v9663_v46 = vmul.f32 %v9613_v27, %v9553_v1  ;;  %v13044_v1 = vsub.f32 %v441_v48, %v13020_v21  ;;  %v13056_v27 = vand.u32 4294901760, %v415_v42 }
 0x227   : > { %5653 = vmatpush1.msra.mxu0 %v12892_v15  ;;  %5686 = vmatprep.mubr.f32.mxu0 %v14862_v28  ;;  %v15043_v24 = vand.u32 4294901760, %v12892_v15  ;;  %v316_v15 = vld [vmem:[#allocation6 + $0x218] sm:$0xff] }
 0x228   : > { %5734 = vmatpush1.msra.mxu1 %v15018_v2  ;;  %5582 = vmatprep.mubr.f32.mxu1 %v14862_v28  ;;  %10238 = vpow2.f32 %v9743_v32  ;;  %v9745_v18 = vmul.f32 1.442695, %v9663_v46  ;;  %v366_v32 = vld [vmem:[#allocation6 + $0x3a8] sm:$0xff] }
 0x229   : > { %5689 = vmatmul.mubr.f32.vlgmr.msra.gmra.mxu0 %v15019_v43  ;;  %5736 = vmatprep.subr.mxu1 %v15020_v12 }
 0x22a   : > { %5821 = vmatprep.subr.mxu0 %v15021_v26  ;;  %5584 = vmatmul.mubr.f32.gmra.mxu1 %v10833_v40  ;;  %10240 = vpow2.f32 %v9745_v18  ;;  %v15039_v18 = vld [vmem:[#allocation16_spill] sm:$0xff]  ;;  %v365_v26 = vld [vmem:[#allocation6 + $0x3a0] sm:$0xff] }
 0x22b   : > { %5738 = vmatpush1.msra.mxu1 %v12790_v56  ;;  %5825 = vmatpush1.msra.mxu0 %v15022_v37  ;;  %v13087_v48 = vand.u32 4294901760, %v365_v26 }
 0x22c   : > { %5740 = vmatprep.subr.mxu1 %v12805_v58  ;;  %5829 = vmatprep.subr.mxu0 %v15023_v50  ;;  %v341_v50 = vld [vmem:[#allocation6 + $0x2e0] sm:$0xff] }
 0x22d   : > { %5694 = vmatprep.mubr.f32.mxu0 %v14862_v28  ;;  %5742 = vmatpush1.msra.mxu1 %v15024_v45  ;;  %15044 = vst [vmem:[#allocation18_spill] sm:$0xff] %v13087_v48 }
 0x22e   : > { %5833 = vmatpush1.msra.mxu0 %v15025_v6  ;;  %5744 = vmatprep.subr.mxu1 %v15026_v17  ;;  %v14762_v6 = vand.u32 4294901760, %v13044_v1 }
 0x22f   : > { %v10235_v36 = vpop.eup %10234  ;;  %5697 = vmatmul.mubr.f32.gmra.mxu0 %v15027_v16  ;;  %5837 = vmatprep.subr.mxu0 %v15028_v13  ;;  %v13033_v55 = vpop.f32.mrf.mxu0  ;;  %v13079_v13 = vand.u32 4294901760, %v366_v32 }
 0x230   : > { %5746 = vmatpush1.msra.mxu1 %v15029_v5  ;;  %5841 = vmatpush1.msra.mxu0 %v15030_v14  ;;  %9787 = vst [vmem:[%s12168_s24 + $0x30] sm:$0xff] %v10235_v36  ;;  %v13074_v36 = vsub.f32 %v416_v53, %v13041_v19  ;;  %v340_v14 = vld [vmem:[#allocation6 + $0x2d8] sm:$0xff] }
 0x231   : > { %v10237_v59 = vpop.eup %10236  ;;  %5748 = vmatprep.subr.mxu1 %v12834_v31  ;;  %5845 = vmatprep.subr.mxu0 %v15031_v20  ;;  %v13059_v46 = vpop.f32.mrf.mxu0  ;;  %15042 = vst [vmem:[#allocation17_spill] sm:$0xff] %v13079_v13 }
 0x232   : > { %5750 = vmatpush1.msra.mxu1 %v12858_v25  ;;  %5783 = vmatprep.mubr.f32.mxu1 %v14862_v28  ;;  %9788 = vst [vmem:[%s12168_s24 + $0x38] sm:$0xff] %v10237_v59  ;;  %v14763_v53 = vand.u32 4294901760, %v13074_v36 }
 0x233   : > { %5849 = vmatpush1.msra.mxu0 %v15032_v35  ;;  %5787 = vmatmul.mubr.f32.vlgmr.msra.gmra.mxu1 %v15033_v57 }
 0x234   : > { %5853 = vmatprep.subr.mxu0 %v15034_v4  ;;  %5946 = vmatprep.subr.mxu1 %v12696_v10  ;;  %v391_v10 = vld [vmem:[#allocation6 + $0x470] sm:$0xff] }
 0x235   : > { %v10239_v47 = vpop.eup %10238  ;;  %5857 = vmatpush1.msra.mxu0 %v15035_v60  ;;  %5948 = vmatpush1.msra.mxu1 %v12707_v33  ;;  %v390_v33 = vld [vmem:[#allocation6 + $0x468] sm:$0xff]  ;;  %v13063_v62 = vand.u32 4294901760, %v391_v10  ;;  %v13090_v20 = vpop.f32.mrf.mxu0  ;;  %v315_v4 = vld [vmem:[#allocation6 + $0x210] sm:$0xff]  ;;  %v13117_v60 = vsub.f32 %v366_v32, %v13079_v13 }
 0x236   : > { %5861 = vmatprep.subr.mxu0 %v15036_v29  ;;  %5950 = vmatprep.subr.mxu1 %v12717_v34  ;;  %9812 = vst [vmem:[%s12168_s24 + $0xf8] sm:$0xff] %v10239_v47  ;;  %v13054_v34 = vsub.f32 %v440_v54, %v13031_v0  ;;  %v13070_v37 = vand.u32 4294901760, %v390_v33  ;;  %v13114_v47 = vand.u32 4294901760, %v340_v14  ;;  %v13124_v29 = vsub.f32 %v365_v26, %v13087_v48 }
 0x237   : > { %v10241_v52 = vpop.eup %10240  ;;  %5792 = vmatprep.mubr.f32.mxu1 %v14862_v28  ;;  %5865 = vmatpush1.msra.mxu0 %v15037_v11  ;;  %v290_v11 = vld [vmem:[#allocation6 + $0x148] sm:$0xff] }
 0x238   : > { %5952 = vmatpush1.msra.mxu1 %v12732_v63  ;;  %5869 = vmatprep.subr.mxu0 %v15038_v7  ;;  %9813 = vst [vmem:[%s12168_s24 + $0x100] sm:$0xff] %v10241_v52  ;;  %v13065_v63 = vpop.f32.mrf.mxu1  ;;  %v14761_v59 = vand.u32 4294901760, %v13054_v34  ;;  %v13104_v35 = vsub.f32 %v390_v33, %v13070_v37  ;;  %v266_v33 = vld [vmem:[#allocation6 + $0x88] sm:$0xff]  ;;  %v13132_v7 = vpop.f32.mrf.mxu0 }
 0x239   : > { %5796 = vmatmul.mubr.f32.gmra.mxu1 %v15039_v18  ;;  %5954 = vmatprep.subr.mxu1 %v12739_v41  ;;  %v15041_v41 = vand.u32 4294901760, %v12881_v49  ;;  %v13094_v49 = vand.u32 4294901760, %v341_v50 }
 0x23a   : > { %5873 = vmatpush1.msra.mxu0 %v15040_v38  ;;  %5956 = vmatpush1.msra.mxu1 %v15016_v22  ;;  %v13085_v22 = vsub.f32 %v415_v42, %v13056_v27  ;;  %v13099_v54 = vpop.f32.mrf.mxu1 }
 0x23b   : > { %5877 = vmatprep.subr.mxu0 %v15041_v41  ;;  %5958 = vmatprep.subr.mxu1 %v15017_v8  ;;  %15045 = vst [vmem:[#allocation19_spill] sm:$0xff] %v13094_v49  ;;  %v13097_v8 = vsub.f32 %v391_v10, %v13063_v62  ;;  %v13129_v10 = vand.u32 4294901760, %v316_v15  ;;  %v13140_v26 = vsub.f32 %v341_v50, %v13094_v49  ;;  %v13172_v3 = vpop.f32.mrf.mxu0 }
 0x23c   : > { %5881 = vmatpush1.msra.mxu0 %v15043_v24  ;;  %5914 = vmatprep.mubr.f32.mxu0 %v14862_v28  ;;  %v13119_v42 = vpop.f32.mrf.mxu1  ;;  %v14768_v52 = vand.u32 4294901760, %v13085_v22  ;;  %v6158_v41 = vsub.f32 %v13074_v36, %v14763_v53  ;;  %v13154_v50 = vsub.f32 %v340_v14, %v13114_v47 }
 0x23d   : > { %5960 = vmatpush1.msra.mxu1 %v15018_v2  ;;  %5916 = vmatmul.mubr.f32.vlgmr.msra.gmra.mxu0 %v10769_v9  ;;  %v13109_v2 = vsub.f32 %v13044_v1, %v14762_v6  ;;  %v13156_v6 = vand.u32 4294901760, %v290_v11  ;;  %v13170_v44 = vsub.f32 %v316_v15, %v13129_v10  ;;  %v15050_v15 = vand.u32 4294901760, %v13104_v35 }
 0x23e   : > { %5962 = vmatprep.subr.mxu1 %v15020_v12  ;;  %6041 = vmatprep.subr.mxu0 %v13020_v21  ;;  %v291_v12 = vld [vmem:[#allocation6 + $0x150] sm:$0xff]  ;;  %v13161_v32 = vpop.f32.mrf.mxu1 }
 0x23f   : > { %5964 = vmatpush1.msra.mxu1 %v12790_v56  ;;  %6043 = vmatpush1.msra.mxu0 %v13031_v0  ;;  %v6152_v56 = vsub.f32 %v13054_v34, %v14761_v59  ;;  %v6147_v38 = vand.u32 4294901760, %v13109_v2  ;;  %v13148_v24 = vand.u32 4294901760, %v291_v12  ;;  %v265_v59 = vld [vmem:[#allocation6 + $0x80] sm:$0xff]  ;;  %15048 = vst [vmem:[#allocation25_spill] sm:$0xff] %v13156_v6 }
 0x240   : > { %5966 = vmatprep.subr.mxu1 %v12805_v58  ;;  %6045 = vmatprep.subr.mxu0 %v13041_v19  ;;  %v13136_v58 = vand.u32 4294901760, %v315_v4  ;;  %v13182_v18 = vand.u32 4294901760, %v265_v59  ;;  %v13185_v14 = vpop.f32.mrf.mxu1 }
 0x241   : > { %5921 = vmatprep.mubr.f32.mxu0 %v14862_v28  ;;  %5968 = vmatpush1.msra.mxu1 %v15024_v45  ;;  %15047 = vst [vmem:[#allocation24_spill] sm:$0xff] %v13148_v24  ;;  %v6153_v53 = vand.u32 4294901760, %v6152_v56  ;;  %v6164_v45 = vsub.f32 %v13085_v22, %v14768_v52  ;;  %v15049_v56 = vand.u32 4294901760, %v13097_v8  ;;  %v13193_v57 = vsub.f32 %v291_v12, %v13148_v24 }
 0x242   : > { %15046 = vst [vmem:[#allocation20_spill] sm:$0xff] %v13136_v58  ;;  %6047 = vmatpush1.msra.mxu0 %v13056_v27  ;;  %5970 = vmatprep.subr.mxu1 %v15026_v17  ;;  %v13158_v17 = vand.u32 4294901760, %v266_v33  ;;  %v15051_v52 = vand.u32 4294901760, %v13117_v60 }
 0x243   : > { %5923 = vmatmul.mubr.f32.gmra.mxu0 %v10833_v40  ;;  %6049 = vmatprep.subr.mxu0 %v13063_v62  ;;  %v6170_v2 = vsub.f32 %v13097_v8, %v15049_v56  ;;  %v13198_v56 = vsub.f32 %v290_v11, %v13156_v6  ;;  %v6165_v12 = vand.u32 4294901760, %v6164_v45 }
 0x244   : > { %5972 = vmatpush1.msra.mxu1 %v15029_v5  ;;  %6051 = vmatpush1.msra.mxu0 %v13070_v37  ;;  %v13177_v5 = vsub.f32 %v315_v4, %v13136_v58  ;;  %v6176_v4 = vsub.f32 %v13104_v35, %v15050_v15  ;;  %v13205_v16 = vsub.f32 %v266_v33, %v13158_v17  ;;  %v15052_v15 = vand.u32 4294901760, %v13124_v29 }
 0x245   : > { %5974 = vmatprep.subr.mxu1 %v12834_v31  ;;  %6053 = vmatprep.subr.mxu0 %v13079_v13  ;;  %v6159_v31 = vand.u32 4294901760, %v6158_v41  ;;  %v13216_v41 = vsub.f32 %v265_v59, %v13182_v18  ;;  %v15053_v33 = vand.u32 4294901760, %v13140_v26 }
 0x246   : > { %5976 = vmatpush1.msra.mxu1 %v12858_v25  ;;  %6009 = vmatprep.mubr.f32.mxu1 %v14862_v28  ;;  %v6182_v25 = vsub.f32 %v13117_v60, %v15051_v52  ;;  %v6188_v43 = vsub.f32 %v13124_v29, %v15052_v15  ;;  %v6171_v52 = vand.u32 4294901760, %v6170_v2  ;;  %v6177_v15 = vand.u32 4294901760, %v6176_v4 }
 0x247   : > { %6055 = vmatpush1.msra.mxu0 %v13087_v48  ;;  %6011 = vmatmul.mubr.f32.vlgmr.msra.gmra.mxu1 %v10769_v9  ;;  %v13212_v48 = vpop.f32.mrf.mxu0  ;;  %v15055_v4 = vand.u32 4294901760, %v13170_v44 }
 0x248   : > { %6057 = vmatprep.subr.mxu0 %v13094_v49  ;;  %6148 = vmatprep.subr.mxu1 %v6147_v38  ;;  %v6194_v38 = vsub.f32 %v13140_v26, %v15053_v33  ;;  %v3702_v49 = vpop.f32.mrf.mxu1  ;;  %v6183_v59 = vand.u32 4294901760, %v6182_v25 }
 0x249   : > { %6059 = vmatpush1.msra.mxu0 %v13114_v47  ;;  %6154 = vmatpush1.msra.mxu1 %v6153_v53  ;;  %v3829_v13 = vpop.f32.mrf.mxu0  ;;  %v15054_v53 = vand.u32 4294901760, %v13154_v50  ;;  %v6206_v11 = vsub.f32 %v13170_v44, %v15055_v4 }
 0x24a   : > { %6061 = vmatprep.subr.mxu0 %v13129_v10  ;;  %6160 = vmatprep.subr.mxu1 %v6159_v31  ;;  %v6189_v31 = vand.u32 4294901760, %v6188_v43  ;;  %v6195_v25 = vand.u32 4294901760, %v6194_v38  ;;  %v3709_v45 = vpop.f32.mrf.mxu1  ;;  %v15057_v43 = vand.u32 4294901760, %v13193_v57 }
 0x24b   : > { %6016 = vmatprep.mubr.f32.mxu1 %v14862_v28  ;;  %6063 = vmatpush1.msra.mxu0 %v13136_v58  ;;  %v6200_v2 = vsub.f32 %v13154_v50, %v15054_v53  ;;  %v3491_v58 = vadd.f32 %v13065_v63, %v13006_v51  ;;  %v15056_v53 = vand.u32 4294901760, %v13177_v5  ;;  %v3493_v51 = vadd.f32 %v13099_v54, %v13023_v61 }
 0x24c   : > { %6166 = vmatpush1.msra.mxu1 %v6165_v12  ;;  %6065 = vmatprep.subr.mxu0 %v13148_v24  ;;  %v6218_v4 = vsub.f32 %v13193_v57, %v15057_v43  ;;  %v13256_v24 = vld [vmem:[#allocation8 + $0x8] sm:$0xff]  ;;  %v6207_v61 = vand.u32 4294901760, %v6206_v11 }
 0x24d   : > { %6018 = vmatmul.mubr.f32.gmra.mxu1 %v10833_v40  ;;  %6172 = vmatprep.subr.mxu1 %v6171_v52  ;;  %v6212_v33 = vsub.f32 %v13177_v5, %v15056_v53  ;;  %v3603_v63 = vadd.f32 %v13090_v20, %v3491_v58  ;;  %v3831_v52 = vpop.f32.mrf.mxu0  ;;  %v6201_v38 = vand.u32 4294901760, %v6200_v2  ;;  %v15058_v53 = vand.u32 4294901760, %v13198_v56  ;;  %v15061_v11 = vld [vmem:[#allocation22_spill] sm:$0xff] }
 0x24e   : > { %6067 = vmatpush1.msra.mxu0 %v13156_v6  ;;  %6178 = vmatpush1.msra.mxu1 %v6177_v15  ;;  %v15059_v15 = vand.u32 4294901760, %v13205_v16  ;;  %v3498_v20 = vadd.f32 %v13119_v42, %v13033_v55  ;;  %v3605_v54 = vadd.f32 %v13132_v7, %v3493_v51  ;;  %v15060_v2 = vand.u32 4294901760, %v13216_v41 }
 0x24f   : > { %6069 = vmatprep.subr.mxu0 %v13158_v17  ;;  %6184 = vmatprep.subr.mxu1 %v6183_v59  ;;  %v6224_v12 = vsub.f32 %v13198_v56, %v15058_v53  ;;  %v3701_v58 = vadd.f32 %v13185_v14, %v3603_v63  ;;  %v6213_v59 = vand.u32 4294901760, %v6212_v33  ;;  %v3500_v53 = vadd.f32 %v13161_v32, %v13059_v46  ;;  %v3836_v14 = vpop.f32.mrf.mxu0  ;;  %v15062_v63 = vld [vmem:[#allocation23_spill] sm:$0xff] }
 0x250   : > { %v6230_v6 = vsub.f32 %v13205_v16, %v15059_v15  ;;  %6071 = vmatpush1.msra.mxu0 %v13182_v18  ;;  %6190 = vmatpush1.msra.mxu1 %v6189_v31  ;;  %v6236_v43 = vsub.f32 %v13216_v41, %v15060_v2  ;;  %v3711_v31 = vpop.f32.mrf.mxu1  ;;  %v6219_v55 = vand.u32 4294901760, %v6218_v4  ;;  %v3703_v42 = vadd.f32 %v3702_v49, %v3605_v54 }
 0x251   : > { %6104 = vmatprep.mubr.f32.mxu0 %v14862_v28  ;;  %6196 = vmatprep.subr.mxu1 %v6195_v25  ;;  %v3830_v7 = vadd.f32 %v3829_v13, %v3701_v58  ;;  %v9431_v25 = vrot.slane %v13256_v24, %v15061_v11  ;;  %v6225_v33 = vand.u32 4294901760, %v6224_v12  ;;  %v9435_v46 = vrot.slane %v13256_v24, %v15062_v63  ;;  %v3838_v58 = vpop.f32.mrf.mxu0 }
 0x252   : > { %6304 = vmatprep.subr.mxu0 %v13044_v1  ;;  %6110 = vmatmul.mubr.f32.vlgmr.msra.gmra.mxu0 %v10835_v23  ;;  %v6231_v32 = vand.u32 4294901760, %v6230_v6  ;;  %v3611_v4 = vadd.f32 %v13172_v3, %v3498_v20  ;;  %v3832_v49 = vadd.f32 %v3831_v52, %v3703_v42  ;;  %v6237_v15 = vand.u32 4294901760, %v6236_v43 }
 0x253   : > { %6202 = vmatpush1.msra.mxu1 %v6201_v38  ;;  %6307 = vmatpush1.msra.mxu0 %v13054_v34  ;;  %v3924_v51 = vpop.f32.mrf.mxu1  ;;  %v3613_v38 = vadd.f32 %v13212_v48, %v3500_v53 }
 0x254   : > { %6208 = vmatprep.subr.mxu1 %v6207_v61  ;;  %6310 = vmatprep.subr.mxu0 %v13074_v36  ;;  %v3925_v13 = vadd.f32 %v3924_v51, %v3830_v7  ;;  %v3710_v12 = vadd.f32 %v3709_v45, %v3611_v4 }
 0x255   : > { %6214 = vmatpush1.msra.mxu1 %v6213_v59  ;;  %6313 = vmatpush1.msra.mxu0 %v13085_v22  ;;  %v3926_v54 = vpop.f32.mrf.mxu1  ;;  %v3712_v3 = vadd.f32 %v3711_v31, %v3613_v38 }
 0x256   : > { %6220 = vmatprep.subr.mxu1 %v6219_v55  ;;  %6316 = vmatprep.subr.mxu0 %v13097_v8  ;;  %v9529_v61 = vsub.f32 %v3925_v13, %v9431_v25  ;;  %v3927_v2 = vadd.f32 %v3926_v54, %v3832_v49  ;;  %v3837_v6 = vadd.f32 %v3836_v14, %v3710_v12  ;;  %v15063_v49 = vld [vmem:[#allocation17_spill] sm:$0xff]  ;;  %v15066_v12 = vld [vmem:[#allocation19_spill] sm:$0xff] }
 0x257   : > { %6226 = vmatpush1.msra.mxu1 %v6225_v33  ;;  %6319 = vmatpush1.msra.mxu0 %v13104_v35  ;;  %v3839_v48 = vadd.f32 %v3838_v58, %v3712_v3  ;;  %v15065_v54 = vld [vmem:[#allocation13_spill] sm:$0xff]  ;;  %v15067_v58 = vand.u32 4294901760, %v13044_v1  ;;  %v15070_v3 = vld [vmem:[#allocation20_spill] sm:$0xff]  ;;  %v15071_v1 = vand.u32 4294901760, %v13085_v22 }
 0x258   : > { %6232 = vmatprep.subr.mxu1 %v6231_v32  ;;  %6322 = vmatprep.subr.mxu0 %v13117_v60  ;;  %v9589_v52 = vmul.f32 %v12018_v39, %v9529_v61  ;;  %v9530_v20 = vsub.f32 %v3927_v2, %v9435_v46  ;;  %v15069_v2 = vand.u32 4294901760, %v13074_v36  ;;  %v443_v36 = vld [vmem:[#allocation6 + $0x610] sm:$0xff] }
 0x259   : > { %6238 = vmatpush1.msra.mxu1 %v6237_v15  ;;  %6271 = vmatprep.mubr.f32.mxu1 %v14862_v28  ;;  %v3931_v59 = vpop.f32.mrf.mxu1  ;;  %v15064_v15 = vld [vmem:[#allocation18_spill] sm:$0xff] }
 0x25a   : > { %6325 = vmatpush1.msra.mxu0 %v13124_v29  ;;  %6273 = vmatmul.mubr.f32.vlgmr.msra.gmra.mxu1 %v10769_v9  ;;  %v9639_v45 = vmul.f32 %v9589_v52, %v9529_v61  ;;  %v9590_v43 = vmul.f32 %v12018_v39, %v9530_v20  ;;  %v3932_v53 = vadd.f32 %v3931_v59, %v3837_v6  ;;  %v15068_v61 = vand.u32 4294901760, %v13054_v34  ;;  %v15072_v6 = vld [vmem:[#allocation24_spill] sm:$0xff]  ;;  %v15073_v34 = vld [vmem:[#allocation15_spill] sm:$0xff]  ;;  %v15075_v59 = vld [vmem:[#allocation25_spill] sm:$0xff] }
 0x25b   : > { %6328 = vmatprep.subr.mxu0 %v13140_v26  ;;  %6416 = vmatprep.subr.mxu1 %v13020_v21  ;;  %v3933_v31 = vpop.f32.mrf.mxu1 }
 0x25c   : > { %6331 = vmatpush1.msra.mxu0 %v13154_v50  ;;  %6418 = vmatpush1.msra.mxu1 %v13031_v0  ;;  %v9697_v55 = vmul.f32 1.442695, %v9639_v45  ;;  %v9640_v42 = vmul.f32 %v9590_v43, %v9530_v20  ;;  %v9554_v7 = vsub.f32 %v3932_v53, %v9431_v25  ;;  %v3934_v14 = vadd.f32 %v3933_v31, %v3839_v48  ;;  %v442_v53 = vld [vmem:[#allocation6 + $0x608] sm:$0xff] }
 0x25d   : > { %6334 = vmatprep.subr.mxu0 %v13170_v44  ;;  %6420 = vmatprep.subr.mxu1 %v13041_v19  ;;  %v15074_v48 = vand.u32 4294901760, %v13097_v8  ;;  %v15076_v45 = vand.u32 4294901760, %v13104_v35  ;;  %v15077_v43 = vand.u32 4294901760, %v13117_v60  ;;  %v13340_v8 = vand.u32 4294901760, %v443_v36 }
 0x25e   : > { %6115 = vmatprep.mubr.f32.mxu0 %v14862_v28  ;;  %6337 = vmatpush1.msra.mxu0 %v13177_v5  ;;  %10242 = vpow2.f32 %v9697_v55  ;;  %v9699_v33 = vmul.f32 1.442695, %v9640_v42  ;;  %v9614_v51 = vmul.f32 %v12018_v39, %v9554_v7  ;;  %v9555_v32 = vsub.f32 %v3934_v14, %v9435_v46  ;;  %v13326_v52 = vpop.f32.mrf.mxu0  ;;  %v15079_v55 = vld [vmem:[#allocation14_spill] sm:$0xff] }
 0x25f   : > { %6422 = vmatpush1.msra.mxu1 %v13056_v27  ;;  %6121 = vmatmul.mubr.f32.gmra.mxu0 %v10869_v30  ;;  %v15078_v35 = vand.u32 4294901760, %v13124_v29  ;;  %v418_v42 = vld [vmem:[#allocation6 + $0x548] sm:$0xff]  ;;  %v15080_v60 = vand.u32 4294901760, %v13140_v26  ;;  %v417_v29 = vld [vmem:[#allocation6 + $0x540] sm:$0xff] }
 0x260   : > { %6340 = vmatprep.subr.mxu0 %v13193_v57  ;;  %6424 = vmatprep.subr.mxu1 %v13063_v62  ;;  %10244 = vpow2.f32 %v9699_v33  ;;  %v9664_v25 = vmul.f32 %v9614_v51, %v9554_v7  ;;  %v9615_v4 = vmul.f32 %v12018_v39, %v9555_v32  ;;  %v13343_v31 = vpop.f32.mrf.mxu0  ;;  %v13351_v7 = vand.u32 4294901760, %v442_v53 }
 0x261   : > { %6343 = vmatpush1.msra.mxu0 %v13198_v56  ;;  %6426 = vmatpush1.msra.mxu1 %v13070_v37  ;;  %v15081_v51 = vand.u32 4294901760, %v13154_v50  ;;  %v13361_v26 = vand.u32 4294901760, %v418_v42  ;;  %v15083_v50 = vand.u32 4294901760, %v13177_v5 }
 0x262   : > { %6346 = vmatprep.subr.mxu0 %v13205_v16  ;;  %6428 = vmatprep.subr.mxu1 %v15063_v49  ;;  %v9747_v46 = vmul.f32 1.442695, %v9664_v25  ;;  %v9665_v13 = vmul.f32 %v9615_v4, %v9555_v32  ;;  %v15082_v32 = vand.u32 4294901760, %v13170_v44  ;;  %v13364_v25 = vsub.f32 %v443_v36, %v13340_v8 }
 0x263   : > { %6349 = vmatpush1.msra.mxu0 %v13216_v41  ;;  %6382 = vmatprep.mubr.f32.mxu0 %v14862_v28  ;;  %v15084_v44 = vand.u32 4294901760, %v13193_v57  ;;  %v15086_v57 = vand.u32 4294901760, %v13198_v56  ;;  %v15090_v56 = vand.u32 4294901760, %v13216_v41  ;;  %v318_v41 = vld [vmem:[#allocation6 + $0x228] sm:$0xff] }
 0x264   : > { %6430 = vmatpush1.msra.mxu1 %v15064_v15  ;;  %6278 = vmatprep.mubr.f32.mxu1 %v14862_v28  ;;  %10246 = vpow2.f32 %v9747_v46  ;;  %v9749_v38 = vmul.f32 1.442695, %v9665_v13  ;;  %v13376_v46 = vand.u32 4294901760, %v417_v29  ;;  %v368_v13 = vld [vmem:[#allocation6 + $0x3b8] sm:$0xff] }
 0x265   : > { %6385 = vmatmul.mubr.f32.vlgmr.msra.gmra.mxu0 %v15065_v54  ;;  %6432 = vmatprep.subr.mxu1 %v15066_v12  ;;  %v13399_v36 = vand.u32 4294901760, %v368_v13 }
 0x266   : > { %6517 = vmatprep.subr.mxu0 %v15067_v58  ;;  %6280 = vmatmul.mubr.f32.gmra.mxu1 %v10833_v40  ;;  %10248 = vpow2.f32 %v9749_v38  ;;  %v15085_v58 = vld [vmem:[#allocation16_spill] sm:$0xff] }
 0x267   : > { %6434 = vmatpush1.msra.mxu1 %v13114_v47  ;;  %6521 = vmatpush1.msra.mxu0 %v15068_v61  ;;  %v367_v61 = vld [vmem:[#allocation6 + $0x3b0] sm:$0xff]  ;;  %15089 = vst [vmem:[#allocation17_spill] sm:$0xff] %v13399_v36 }
 0x268   : > { %6436 = vmatprep.subr.mxu1 %v13129_v10  ;;  %6525 = vmatprep.subr.mxu0 %v15069_v2 }
 0x269   : > { %6390 = vmatprep.mubr.f32.mxu0 %v14862_v28  ;;  %6438 = vmatpush1.msra.mxu1 %v15070_v3 }
 0x26a   : > { %6529 = vmatpush1.msra.mxu0 %v15071_v1  ;;  %6440 = vmatprep.subr.mxu1 %v15072_v6  ;;  %v343_v1 = vld [vmem:[#allocation6 + $0x2f0] sm:$0xff] }
 0x26b   : > { %v10243_v20 = vpop.eup %10242  ;;  %6393 = vmatmul.mubr.f32.gmra.mxu0 %v15073_v34  ;;  %6533 = vmatprep.subr.mxu0 %v15074_v48  ;;  %v13353_v14 = vpop.f32.mrf.mxu0  ;;  %v13394_v48 = vsub.f32 %v418_v42, %v13361_v26 }
 0x26c   : > { %6442 = vmatpush1.msra.mxu1 %v15075_v59  ;;  %6537 = vmatpush1.msra.mxu0 %v15076_v45  ;;  %9789 = vst [vmem:[%s12168_s24 + $0x40] sm:$0xff] %v10243_v20  ;;  %v14782_v20 = vand.u32 4294901760, %v13364_v25  ;;  %v13407_v45 = vand.u32 4294901760, %v367_v61 }
 0x26d   : > { %v10245_v22 = vpop.eup %10244  ;;  %6444 = vmatprep.subr.mxu1 %v13158_v17  ;;  %6541 = vmatprep.subr.mxu0 %v15077_v43  ;;  %v13379_v38 = vpop.f32.mrf.mxu0 }
 0x26e   : > { %6446 = vmatpush1.msra.mxu1 %v13182_v18  ;;  %6479 = vmatprep.mubr.f32.mxu1 %v14862_v28  ;;  %9790 = vst [vmem:[%s12168_s24 + $0x48] sm:$0xff] %v10245_v22  ;;  %15091 = vst [vmem:[#allocation18_spill] sm:$0xff] %v13407_v45  ;;  %v342_v22 = vld [vmem:[#allocation6 + $0x2e8] sm:$0xff] }
 0x26f   : > { %6545 = vmatpush1.msra.mxu0 %v15078_v35  ;;  %6483 = vmatmul.mubr.f32.vlgmr.msra.gmra.mxu1 %v15079_v55 }
 0x270   : > { %6549 = vmatprep.subr.mxu0 %v15080_v60  ;;  %6642 = vmatprep.subr.mxu1 %v13020_v21  ;;  %v393_v21 = vld [vmem:[#allocation6 + $0x480] sm:$0xff]  ;;  %v14783_v60 = vand.u32 4294901760, %v13394_v48 }
 0x271   : > { %v10247_v33 = vpop.eup %10246  ;;  %6553 = vmatpush1.msra.mxu0 %v15081_v51  ;;  %6644 = vmatpush1.msra.mxu1 %v13031_v0  ;;  %v392_v0 = vld [vmem:[#allocation6 + $0x478] sm:$0xff]  ;;  %v13383_v5 = vand.u32 4294901760, %v393_v21  ;;  %v13434_v51 = vand.u32 4294901760, %v342_v22 }
 0x272   : > { %6557 = vmatprep.subr.mxu0 %v15082_v32  ;;  %6646 = vmatprep.subr.mxu1 %v13041_v19  ;;  %9814 = vst [vmem:[%s12168_s24 + $0x108] sm:$0xff] %v10247_v33  ;;  %v13374_v19 = vsub.f32 %v442_v53, %v13351_v7  ;;  %v13390_v2 = vand.u32 4294901760, %v392_v0  ;;  %v13410_v53 = vpop.f32.mrf.mxu0  ;;  %v317_v33 = vld [vmem:[#allocation6 + $0x220] sm:$0xff] }
 0x273   : > { %v10249_v4 = vpop.eup %10248  ;;  %6488 = vmatprep.mubr.f32.mxu1 %v14862_v28  ;;  %6561 = vmatpush1.msra.mxu0 %v15083_v50 }
 0x274   : > { %6648 = vmatpush1.msra.mxu1 %v13056_v27  ;;  %6565 = vmatprep.subr.mxu0 %v15084_v44  ;;  %9815 = vst [vmem:[%s12168_s24 + $0x110] sm:$0xff] %v10249_v4  ;;  %v13385_v27 = vpop.f32.mrf.mxu1  ;;  %15087 = vst [vmem:[#allocation30_spill] sm:$0xff] %v13390_v2  ;;  %v14781_v43 = vand.u32 4294901760, %v13374_v19  ;;  %v13424_v42 = vsub.f32 %v392_v0, %v13390_v2  ;;  %v13449_v4 = vand.u32 4294901760, %v318_v41  ;;  %v292_v0 = vld [vmem:[#allocation6 + $0x158] sm:$0xff] }
 0x275   : > { %6492 = vmatmul.mubr.f32.gmra.mxu1 %v15085_v58  ;;  %6650 = vmatprep.subr.mxu1 %v13063_v62  ;;  %v15088_v62 = vand.u32 4294901760, %v13205_v16  ;;  %v13414_v16 = vand.u32 4294901760, %v343_v1  ;;  %v268_v44 = vld [vmem:[#allocation6 + $0x98] sm:$0xff] }
 0x276   : > { %6569 = vmatpush1.msra.mxu0 %v15086_v57  ;;  %6652 = vmatpush1.msra.mxu1 %v13070_v37  ;;  %v13405_v37 = vsub.f32 %v417_v29, %v13376_v46  ;;  %v13419_v35 = vpop.f32.mrf.mxu1  ;;  %v13437_v29 = vsub.f32 %v368_v13, %v13399_v36  ;;  %v13452_v13 = vpop.f32.mrf.mxu0  ;;  %v13490_v11 = vsub.f32 %v318_v41, %v13449_v4  ;;  %v15097_v41 = vand.u32 4294901760, %v13424_v42 }
 0x277   : > { %6573 = vmatprep.subr.mxu0 %v15088_v62  ;;  %6654 = vmatprep.subr.mxu1 %v15063_v49  ;;  %15092 = vst [vmem:[#allocation19_spill] sm:$0xff] %v13414_v16  ;;  %v13417_v49 = vsub.f32 %v393_v21, %v13383_v5  ;;  %v13444_v21 = vsub.f32 %v367_v61, %v13407_v45  ;;  %v13476_v61 = vand.u32 4294901760, %v292_v0 }
 0x278   : > { %6577 = vmatpush1.msra.mxu0 %v15090_v56  ;;  %6610 = vmatprep.mubr.f32.mxu0 %v14862_v28  ;;  %v13439_v32 = vpop.f32.mrf.mxu1  ;;  %v13460_v57 = vsub.f32 %v343_v1, %v13414_v16  ;;  %v6854_v56 = vsub.f32 %v13394_v48, %v14783_v60  ;;  %v13474_v1 = vsub.f32 %v342_v22, %v13434_v51  ;;  %v13492_v58 = vpop.f32.mrf.mxu0 }
 0x279   : > { %6656 = vmatpush1.msra.mxu1 %v15064_v15  ;;  %6612 = vmatmul.mubr.f32.vlgmr.msra.gmra.mxu0 %v10769_v9  ;;  %v13429_v15 = vsub.f32 %v13364_v25, %v14782_v20  ;;  %v267_v20 = vld [vmem:[#allocation6 + $0x90] sm:$0xff]  ;;  %15094 = vst [vmem:[#allocation24_spill] sm:$0xff] %v13476_v61 }
 0x27a   : > { %6658 = vmatprep.subr.mxu1 %v15066_v12  ;;  %6737 = vmatprep.subr.mxu0 %v13340_v8  ;;  %v293_v12 = vld [vmem:[#allocation6 + $0x160] sm:$0xff]  ;;  %v13481_v50 = vpop.f32.mrf.mxu1  ;;  %v13502_v55 = vand.u32 4294901760, %v267_v20 }
 0x27b   : > { %6660 = vmatpush1.msra.mxu1 %v13114_v47  ;;  %6739 = vmatpush1.msra.mxu0 %v13351_v7  ;;  %v6848_v47 = vsub.f32 %v13374_v19, %v14781_v43  ;;  %v6843_v62 = vand.u32 4294901760, %v13429_v15  ;;  %v13468_v43 = vand.u32 4294901760, %v293_v12 }
 0x27c   : > { %6662 = vmatprep.subr.mxu1 %v13129_v10  ;;  %6741 = vmatprep.subr.mxu0 %v13361_v26  ;;  %v13456_v10 = vand.u32 4294901760, %v317_v33  ;;  %v13505_v22 = vpop.f32.mrf.mxu1 }
 0x27d   : > { %6617 = vmatprep.mubr.f32.mxu0 %v14862_v28  ;;  %6664 = vmatpush1.msra.mxu1 %v15070_v3  ;;  %v6849_v60 = vand.u32 4294901760, %v6848_v47  ;;  %v15095_v3 = vand.u32 4294901760, %v13405_v37  ;;  %v15096_v47 = vand.u32 4294901760, %v13417_v49  ;;  %v13513_v34 = vsub.f32 %v293_v12, %v13468_v43 }
 0x27e   : > { %15093 = vst [vmem:[#allocation20_spill] sm:$0xff] %v13456_v10  ;;  %6743 = vmatpush1.msra.mxu0 %v13376_v46  ;;  %6666 = vmatprep.subr.mxu1 %v15072_v6  ;;  %v13478_v6 = vand.u32 4294901760, %v268_v44 }
 0x27f   : > { %6619 = vmatmul.mubr.f32.gmra.mxu0 %v10833_v40  ;;  %6745 = vmatprep.subr.mxu0 %v13383_v5  ;;  %v6860_v63 = vsub.f32 %v13405_v37, %v15095_v3  ;;  %v6866_v15 = vsub.f32 %v13417_v49, %v15096_v47  ;;  %v13518_v47 = vsub.f32 %v292_v0, %v13476_v61  ;;  %v15098_v3 = vand.u32 4294901760, %v13437_v29 }
 0x280   : > { %6668 = vmatpush1.msra.mxu1 %v15075_v59  ;;  %6747 = vmatpush1.msra.mxu0 %v13390_v2  ;;  %v13497_v59 = vsub.f32 %v317_v33, %v13456_v10  ;;  %v6872_v33 = vsub.f32 %v13424_v42, %v15097_v41  ;;  %v13525_v54 = vsub.f32 %v268_v44, %v13478_v6  ;;  %v15099_v41 = vand.u32 4294901760, %v13444_v21 }
 0x281   : > { %6670 = vmatprep.subr.mxu1 %v13158_v17  ;;  %6749 = vmatprep.subr.mxu0 %v13399_v36  ;;  %v6855_v17 = vand.u32 4294901760, %v6854_v56  ;;  %v6861_v12 = vand.u32 4294901760, %v6860_v63  ;;  %v13532_v36 = vpop.f32.mrf.mxu0  ;;  %v13536_v56 = vsub.f32 %v267_v20, %v13502_v55  ;;  %v15100_v44 = vand.u32 4294901760, %v13460_v57 }
 0x282   : > { %6672 = vmatpush1.msra.mxu1 %v13182_v18  ;;  %6705 = vmatprep.mubr.f32.mxu1 %v14862_v28  ;;  %v6878_v18 = vsub.f32 %v13437_v29, %v15098_v3  ;;  %v6867_v3 = vand.u32 4294901760, %v6866_v15 }
 0x283   : > { %6751 = vmatpush1.msra.mxu0 %v13407_v45  ;;  %6707 = vmatmul.mubr.f32.vlgmr.msra.gmra.mxu1 %v10769_v9  ;;  %v6884_v45 = vsub.f32 %v13444_v21, %v15099_v41  ;;  %v6873_v41 = vand.u32 4294901760, %v6872_v33  ;;  %v15102_v33 = vand.u32 4294901760, %v13490_v11 }
 0x284   : > { %6753 = vmatprep.subr.mxu0 %v13414_v16  ;;  %6844 = vmatprep.subr.mxu1 %v6843_v62  ;;  %v6890_v62 = vsub.f32 %v13460_v57, %v15100_v44  ;;  %v4398_v16 = vpop.f32.mrf.mxu1  ;;  %v6879_v20 = vand.u32 4294901760, %v6878_v18 }
 0x285   : > { %6755 = vmatpush1.msra.mxu0 %v13434_v51  ;;  %6850 = vmatpush1.msra.mxu1 %v6849_v60  ;;  %v4525_v2 = vpop.f32.mrf.mxu0  ;;  %v15101_v60 = vand.u32 4294901760, %v13474_v1  ;;  %v6902_v0 = vsub.f32 %v13490_v11, %v15102_v33 }
 0x286   : > { %6757 = vmatprep.subr.mxu0 %v13449_v4  ;;  %6856 = vmatprep.subr.mxu1 %v6855_v17  ;;  %v6885_v17 = vand.u32 4294901760, %v6884_v45  ;;  %v6891_v18 = vand.u32 4294901760, %v6890_v62  ;;  %v4405_v63 = vpop.f32.mrf.mxu1  ;;  %v15104_v45 = vand.u32 4294901760, %v13513_v34 }
 0x287   : > { %6712 = vmatprep.mubr.f32.mxu1 %v14862_v28  ;;  %6759 = vmatpush1.msra.mxu0 %v13456_v10  ;;  %v6896_v15 = vsub.f32 %v13474_v1, %v15101_v60  ;;  %v4187_v10 = vadd.f32 %v13385_v27, %v13326_v52  ;;  %v15103_v60 = vand.u32 4294901760, %v13497_v59  ;;  %v4189_v52 = vadd.f32 %v13419_v35, %v13343_v31 }
 0x288   : > { %6862 = vmatpush1.msra.mxu1 %v6861_v12  ;;  %6761 = vmatprep.subr.mxu0 %v13468_v43  ;;  %v6914_v33 = vsub.f32 %v13513_v34, %v15104_v45  ;;  %v6903_v45 = vand.u32 4294901760, %v6902_v0  ;;  %v4194_v31 = vadd.f32 %v13439_v32, %v13353_v14  ;;  %v15108_v0 = vld [vmem:[#allocation27_spill] sm:$0xff] }
 0x289   : > { %6714 = vmatmul.mubr.f32.gmra.mxu1 %v10833_v40  ;;  %6868 = vmatprep.subr.mxu1 %v6867_v3  ;;  %v6908_v44 = vsub.f32 %v13497_v59, %v15103_v60  ;;  %v4299_v27 = vadd.f32 %v13410_v53, %v4187_v10  ;;  %v4527_v3 = vpop.f32.mrf.mxu0  ;;  %v6897_v62 = vand.u32 4294901760, %v6896_v15  ;;  %v15105_v60 = vand.u32 4294901760, %v13518_v47 }
 0x28a   : > { %6763 = vmatpush1.msra.mxu0 %v13476_v61  ;;  %6874 = vmatpush1.msra.mxu1 %v6873_v41  ;;  %v15106_v41 = vand.u32 4294901760, %v13525_v54  ;;  %v4301_v53 = vadd.f32 %v13452_v13, %v4189_v52  ;;  %v6915_v14 = vand.u32 4294901760, %v6914_v33  ;;  %v4307_v33 = vadd.f32 %v13492_v58, %v4194_v31 }
 0x28b   : > { %6765 = vmatprep.subr.mxu0 %v13478_v6  ;;  %6880 = vmatprep.subr.mxu1 %v6879_v20  ;;  %v6920_v12 = vsub.f32 %v13518_v47, %v15105_v60  ;;  %v4397_v35 = vadd.f32 %v13505_v22, %v4299_v27  ;;  %v6909_v10 = vand.u32 4294901760, %v6908_v44  ;;  %v15107_v20 = vand.u32 4294901760, %v13536_v56  ;;  %v4532_v22 = vpop.f32.mrf.mxu0  ;;  %v15109_v27 = vld [vmem:[#allocation28_spill] sm:$0xff] }
 0x28c   : > { %v6926_v61 = vsub.f32 %v13525_v54, %v15106_v41  ;;  %6767 = vmatpush1.msra.mxu0 %v13502_v55  ;;  %6886 = vmatpush1.msra.mxu1 %v6885_v17  ;;  %v4196_v60 = vadd.f32 %v13481_v50, %v13379_v38  ;;  %v4407_v17 = vpop.f32.mrf.mxu1  ;;  %v4399_v32 = vadd.f32 %v4398_v16, %v4301_v53 }
 0x28d   : > { %6800 = vmatprep.mubr.f32.mxu0 %v14862_v28  ;;  %6892 = vmatprep.subr.mxu1 %v6891_v18  ;;  %v6932_v15 = vsub.f32 %v13536_v56, %v15107_v20  ;;  %v4526_v13 = vadd.f32 %v4525_v2, %v4397_v35  ;;  %v9439_v18 = vrot.slane %v13256_v24, %v15108_v0  ;;  %v6921_v44 = vand.u32 4294901760, %v6920_v12 }
 0x28e   : > { %7000 = vmatprep.subr.mxu0 %v13364_v25  ;;  %6806 = vmatmul.mubr.f32.vlgmr.msra.gmra.mxu0 %v10835_v23  ;;  %v9443_v38 = vrot.slane %v13256_v24, %v15109_v27  ;;  %v6927_v50 = vand.u32 4294901760, %v6926_v61  ;;  %v4528_v16 = vadd.f32 %v4527_v3, %v4399_v32  ;;  %v4406_v12 = vadd.f32 %v4405_v63, %v4307_v33  ;;  %v4534_v24 = vpop.f32.mrf.mxu0  ;;  %v15110_v33 = vld [vmem:[#allocation30_spill] sm:$0xff] }
 0x28f   : > { %6898 = vmatpush1.msra.mxu1 %v6897_v62  ;;  %7003 = vmatpush1.msra.mxu0 %v13374_v19  ;;  %v4620_v52 = vpop.f32.mrf.mxu1  ;;  %v6933_v41 = vand.u32 4294901760, %v6932_v15  ;;  %v4309_v62 = vadd.f32 %v13532_v36, %v4196_v60 }
 0x290   : > { %6904 = vmatprep.subr.mxu1 %v6903_v45  ;;  %7006 = vmatprep.subr.mxu0 %v13394_v48  ;;  %v4621_v2 = vadd.f32 %v4620_v52, %v4526_v13  ;;  %v4533_v61 = vadd.f32 %v4532_v22, %v4406_v12  ;;  %v15114_v12 = vld [vmem:[#allocation19_spill] sm:$0xff] }
 0x291   : > { %6910 = vmatpush1.msra.mxu1 %v6909_v10  ;;  %7009 = vmatpush1.msra.mxu0 %v13405_v37  ;;  %v4622_v53 = vpop.f32.mrf.mxu1  ;;  %v4408_v58 = vadd.f32 %v4407_v17, %v4309_v62 }
 0x292   : > { %6916 = vmatprep.subr.mxu1 %v6915_v14  ;;  %7012 = vmatprep.subr.mxu0 %v13417_v49  ;;  %v9531_v45 = vsub.f32 %v4621_v2, %v9439_v18  ;;  %v4623_v35 = vadd.f32 %v4622_v53, %v4528_v16  ;;  %v15111_v16 = vld [vmem:[#allocation17_spill] sm:$0xff] }
 0x293   : > { %6922 = vmatpush1.msra.mxu1 %v6921_v44  ;;  %7015 = vmatpush1.msra.mxu0 %v13424_v42  ;;  %v4535_v36 = vadd.f32 %v4534_v24, %v4408_v58  ;;  %v15113_v53 = vld [vmem:[#allocation13_spill] sm:$0xff]  ;;  %v15115_v24 = vand.u32 4294901760, %v13364_v25  ;;  %v15118_v58 = vld [vmem:[#allocation20_spill] sm:$0xff]  ;;  %v15119_v25 = vand.u32 4294901760, %v13405_v37 }
 0x294   : > { %6928 = vmatprep.subr.mxu1 %v6927_v50  ;;  %7018 = vmatprep.subr.mxu0 %v13437_v29  ;;  %v9591_v3 = vmul.f32 %v12018_v39, %v9531_v45  ;;  %v9532_v31 = vsub.f32 %v4623_v35, %v9443_v38  ;;  %v15117_v35 = vand.u32 4294901760, %v13394_v48  ;;  %v445_v48 = vld [vmem:[#allocation6 + $0x620] sm:$0xff] }
 0x295   : > { %6934 = vmatpush1.msra.mxu1 %v6933_v41  ;;  %6967 = vmatprep.mubr.f32.mxu1 %v14862_v28  ;;  %v4627_v10 = vpop.f32.mrf.mxu1  ;;  %v15112_v41 = vld [vmem:[#allocation18_spill] sm:$0xff] }
 0x296   : > { %7021 = vmatpush1.msra.mxu0 %v13444_v21  ;;  %6969 = vmatmul.mubr.f32.vlgmr.msra.gmra.mxu1 %v10769_v9  ;;  %v9641_v63 = vmul.f32 %v9591_v3, %v9531_v45  ;;  %v9592_v20 = vmul.f32 %v12018_v39, %v9532_v31  ;;  %v4628_v15 = vadd.f32 %v4627_v10, %v4533_v61  ;;  %v15116_v45 = vand.u32 4294901760, %v13374_v19  ;;  %v15120_v19 = vld [vmem:[#allocation15_spill] sm:$0xff] }
 0x297   : > { %7024 = vmatprep.subr.mxu0 %v13460_v57  ;;  %7112 = vmatprep.subr.mxu1 %v13340_v8  ;;  %v4629_v60 = vpop.f32.mrf.mxu1  ;;  %v15123_v10 = vand.u32 4294901760, %v13424_v42  ;;  %v15125_v42 = vand.u32 4294901760, %v13444_v21  ;;  %v419_v21 = vld [vmem:[#allocation6 + $0x550] sm:$0xff] }
 0x298   : > { %7027 = vmatpush1.msra.mxu0 %v13474_v1  ;;  %7114 = vmatpush1.msra.mxu1 %v13351_v7  ;;  %v9701_v17 = vmul.f32 1.442695, %v9641_v63  ;;  %v9642_v14 = vmul.f32 %v9592_v20, %v9532_v31  ;;  %v9556_v32 = vsub.f32 %v4628_v15, %v9439_v18  ;;  %v4630_v13 = vadd.f32 %v4629_v60, %v4535_v36  ;;  %v15122_v36 = vld [vmem:[#allocation24_spill] sm:$0xff]  ;;  %v15126_v60 = vld [vmem:[#allocation14_spill] sm:$0xff] }
 0x299   : > { %7030 = vmatprep.subr.mxu0 %v13490_v11  ;;  %7116 = vmatprep.subr.mxu1 %v13361_v26  ;;  %v15121_v31 = vand.u32 4294901760, %v13417_v49  ;;  %v15124_v63 = vand.u32 4294901760, %v13437_v29  ;;  %v444_v20 = vld [vmem:[#allocation6 + $0x618] sm:$0xff]  ;;  %v13658_v49 = vand.u32 4294901760, %v445_v48  ;;  %v15127_v29 = vand.u32 4294901760, %v13460_v57 }
 0x29a   : > { %6811 = vmatprep.mubr.f32.mxu0 %v14862_v28  ;;  %7033 = vmatpush1.msra.mxu0 %v13497_v59  ;;  %10250 = vpow2.f32 %v9701_v17  ;;  %v9703_v22 = vmul.f32 1.442695, %v9642_v14  ;;  %v9616_v44 = vmul.f32 %v12018_v39, %v9556_v32  ;;  %v9557_v52 = vsub.f32 %v4630_v13, %v9443_v38  ;;  %v13644_v61 = vpop.f32.mrf.mxu0  ;;  %v420_v17 = vld [vmem:[#allocation6 + $0x558] sm:$0xff] }
 0x29b   : > { %7118 = vmatpush1.msra.mxu1 %v13376_v46  ;;  %6817 = vmatmul.mubr.f32.gmra.mxu0 %v10869_v30  ;;  %v13669_v14 = vand.u32 4294901760, %v444_v20  ;;  %v13679_v57 = vand.u32 4294901760, %v420_v17 }
 0x29c   : > { %7036 = vmatprep.subr.mxu0 %v13513_v34  ;;  %7120 = vmatprep.subr.mxu1 %v13383_v5  ;;  %10252 = vpow2.f32 %v9703_v22  ;;  %v9666_v18 = vmul.f32 %v9616_v44, %v9556_v32  ;;  %v9617_v50 = vmul.f32 %v12018_v39, %v9557_v52  ;;  %v13661_v15 = vpop.f32.mrf.mxu0  ;;  %v15128_v22 = vand.u32 4294901760, %v13474_v1 }
 0x29d   : > { %7039 = vmatpush1.msra.mxu0 %v13518_v47  ;;  %7122 = vmatpush1.msra.mxu1 %v15110_v33  ;;  %v15129_v44 = vand.u32 4294901760, %v13490_v11  ;;  %v15130_v1 = vand.u32 4294901760, %v13497_v59  ;;  %v15131_v11 = vand.u32 4294901760, %v13513_v34  ;;  %v15133_v34 = vand.u32 4294901760, %v13518_v47 }
 0x29e   : > { %7042 = vmatprep.subr.mxu0 %v13525_v54  ;;  %7124 = vmatprep.subr.mxu1 %v15111_v16  ;;  %v9751_v38 = vmul.f32 1.442695, %v9666_v18  ;;  %v9667_v2 = vmul.f32 %v9617_v50, %v9557_v52  ;;  %v13682_v52 = vsub.f32 %v445_v48, %v13658_v49  ;;  %v13694_v50 = vand.u32 4294901760, %v419_v21 }
 0x29f   : > { %7045 = vmatpush1.msra.mxu0 %v13536_v56  ;;  %7078 = vmatprep.mubr.f32.mxu0 %v14862_v28  ;;  %v15136_v47 = vand.u32 4294901760, %v13536_v56  ;;  %v320_v56 = vld [vmem:[#allocation6 + $0x238] sm:$0xff] }
 0x2a0   : > { %7126 = vmatpush1.msra.mxu1 %v15112_v41  ;;  %6974 = vmatprep.mubr.f32.mxu1 %v14862_v28  ;;  %10254 = vpow2.f32 %v9751_v38  ;;  %v9753_v62 = vmul.f32 1.442695, %v9667_v2  ;;  %v370_v38 = vld [vmem:[#allocation6 + $0x3c8] sm:$0xff] }
 0x2a1   : > { %7081 = vmatmul.mubr.f32.vlgmr.msra.gmra.mxu0 %v15113_v53  ;;  %7128 = vmatprep.subr.mxu1 %v15114_v12 }
 0x2a2   : > { %7213 = vmatprep.subr.mxu0 %v15115_v24  ;;  %6976 = vmatmul.mubr.f32.gmra.mxu1 %v10833_v40  ;;  %10256 = vpow2.f32 %v9753_v62  ;;  %v15132_v62 = vld [vmem:[#allocation16_spill] sm:$0xff]  ;;  %v369_v24 = vld [vmem:[#allocation6 + $0x3c0] sm:$0xff] }
 0x2a3   : > { %7130 = vmatpush1.msra.mxu1 %v13434_v51  ;;  %7217 = vmatpush1.msra.mxu0 %v15116_v45  ;;  %v13725_v48 = vand.u32 4294901760, %v369_v24 }
 0x2a4   : > { %7132 = vmatprep.subr.mxu1 %v13449_v4  ;;  %7221 = vmatprep.subr.mxu0 %v15117_v35  ;;  %v345_v35 = vld [vmem:[#allocation6 + $0x300] sm:$0xff] }
 0x2a5   : > { %7086 = vmatprep.mubr.f32.mxu0 %v14862_v28  ;;  %7134 = vmatpush1.msra.mxu1 %v15118_v58  ;;  %15137 = vst [vmem:[#allocation30_spill] sm:$0xff] %v13725_v48 }
 0x2a6   : > { %7225 = vmatpush1.msra.mxu0 %v15119_v25  ;;  %7136 = vmatprep.subr.mxu1 %v13468_v43  ;;  %v14797_v25 = vand.u32 4294901760, %v13682_v52 }
 0x2a7   : > { %v10251_v3 = vpop.eup %10250  ;;  %7089 = vmatmul.mubr.f32.gmra.mxu0 %v15120_v19  ;;  %7229 = vmatprep.subr.mxu0 %v15121_v31  ;;  %v13671_v32 = vpop.f32.mrf.mxu0  ;;  %v13717_v31 = vand.u32 4294901760, %v370_v38 }
 0x2a8   : > { %7138 = vmatpush1.msra.mxu1 %v15122_v36  ;;  %7233 = vmatpush1.msra.mxu0 %v15123_v10  ;;  %9791 = vst [vmem:[%s12168_s24 + $0x50] sm:$0xff] %v10251_v3  ;;  %v13712_v3 = vsub.f32 %v420_v17, %v13679_v57  ;;  %v344_v10 = vld [vmem:[#allocation6 + $0x2f8] sm:$0xff] }
 0x2a9   : > { %v10253_v37 = vpop.eup %10252  ;;  %7140 = vmatprep.subr.mxu1 %v13478_v6  ;;  %7237 = vmatprep.subr.mxu0 %v15124_v63  ;;  %v13697_v2 = vpop.f32.mrf.mxu0  ;;  %15135 = vst [vmem:[#allocation25_spill] sm:$0xff] %v13717_v31 }
 0x2aa   : > { %7142 = vmatpush1.msra.mxu1 %v13502_v55  ;;  %7175 = vmatprep.mubr.f32.mxu1 %v14862_v28  ;;  %9792 = vst [vmem:[%s12168_s24 + $0x58] sm:$0xff] %v10253_v37  ;;  %v14798_v17 = vand.u32 4294901760, %v13712_v3 }
 0x2ab   : > { %7241 = vmatpush1.msra.mxu0 %v15125_v42  ;;  %7179 = vmatmul.mubr.f32.vlgmr.msra.gmra.mxu1 %v15126_v60 }
 0x2ac   : > { %7245 = vmatprep.subr.mxu0 %v15127_v29  ;;  %7338 = vmatprep.subr.mxu1 %v13340_v8  ;;  %v395_v8 = vld [vmem:[#allocation6 + $0x490] sm:$0xff] }
 0x2ad   : > { %v10255_v13 = vpop.eup %10254  ;;  %7249 = vmatpush1.msra.mxu0 %v15128_v22  ;;  %7340 = vmatpush1.msra.mxu1 %v13351_v7  ;;  %v394_v7 = vld [vmem:[#allocation6 + $0x488] sm:$0xff]  ;;  %v13701_v59 = vand.u32 4294901760, %v395_v8  ;;  %v13728_v63 = vpop.f32.mrf.mxu0  ;;  %v319_v29 = vld [vmem:[#allocation6 + $0x230] sm:$0xff]  ;;  %v13755_v22 = vsub.f32 %v370_v38, %v13717_v31 }
 0x2ae   : > { %7253 = vmatprep.subr.mxu0 %v15129_v44  ;;  %7342 = vmatprep.subr.mxu1 %v13361_v26  ;;  %9816 = vst [vmem:[%s12168_s24 + $0x118] sm:$0xff] %v10255_v13  ;;  %v13692_v26 = vsub.f32 %v444_v20, %v13669_v14  ;;  %v13708_v45 = vand.u32 4294901760, %v394_v7  ;;  %v13752_v13 = vand.u32 4294901760, %v344_v10  ;;  %v13762_v44 = vsub.f32 %v369_v24, %v13725_v48 }
 0x2af   : > { %v10257_v18 = vpop.eup %10256  ;;  %7184 = vmatprep.mubr.f32.mxu1 %v14862_v28  ;;  %7257 = vmatpush1.msra.mxu0 %v15130_v1  ;;  %v294_v1 = vld [vmem:[#allocation6 + $0x168] sm:$0xff] }
 0x2b0   : > { %7344 = vmatpush1.msra.mxu1 %v13376_v46  ;;  %7261 = vmatprep.subr.mxu0 %v15131_v11  ;;  %9817 = vst [vmem:[%s12168_s24 + $0x120] sm:$0xff] %v10257_v18  ;;  %v13703_v46 = vpop.f32.mrf.mxu1  ;;  %v14796_v37 = vand.u32 4294901760, %v13692_v26  ;;  %v13742_v42 = vsub.f32 %v394_v7, %v13708_v45  ;;  %v270_v7 = vld [vmem:[#allocation6 + $0xa8] sm:$0xff]  ;;  %v13770_v11 = vpop.f32.mrf.mxu0 }
 0x2b1   : > { %7188 = vmatmul.mubr.f32.gmra.mxu1 %v15132_v62  ;;  %7346 = vmatprep.subr.mxu1 %v13383_v5  ;;  %v15134_v5 = vand.u32 4294901760, %v13525_v54  ;;  %v13732_v54 = vand.u32 4294901760, %v345_v35 }
 0x2b2   : > { %7265 = vmatpush1.msra.mxu0 %v15133_v34  ;;  %7348 = vmatpush1.msra.mxu1 %v15110_v33  ;;  %v13723_v33 = vsub.f32 %v419_v21, %v13694_v50  ;;  %v13737_v20 = vpop.f32.mrf.mxu1 }
 0x2b3   : > { %7269 = vmatprep.subr.mxu0 %v15134_v5  ;;  %7350 = vmatprep.subr.mxu1 %v15111_v16  ;;  %15138 = vst [vmem:[#allocation17_spill] sm:$0xff] %v13732_v54  ;;  %v13735_v16 = vsub.f32 %v395_v8, %v13701_v59  ;;  %v13767_v8 = vand.u32 4294901760, %v320_v56  ;;  %v13778_v24 = vsub.f32 %v345_v35, %v13732_v54  ;;  %v13810_v0 = vpop.f32.mrf.mxu0 }
 0x2b4   : > { %7273 = vmatpush1.msra.mxu0 %v15136_v47  ;;  %7306 = vmatprep.mubr.f32.mxu0 %v14862_v28  ;;  %v13757_v21 = vpop.f32.mrf.mxu1  ;;  %v14799_v18 = vand.u32 4294901760, %v13723_v33  ;;  %v7550_v5 = vsub.f32 %v13712_v3, %v14798_v17  ;;  %v13792_v35 = vsub.f32 %v344_v10, %v13752_v13 }
 0x2b5   : > { %7352 = vmatpush1.msra.mxu1 %v15112_v41  ;;  %7308 = vmatmul.mubr.f32.vlgmr.msra.gmra.mxu0 %v10769_v9  ;;  %v13747_v41 = vsub.f32 %v13682_v52, %v14797_v25  ;;  %v13794_v25 = vand.u32 4294901760, %v294_v1  ;;  %v13808_v27 = vsub.f32 %v320_v56, %v13767_v8  ;;  %v15142_v56 = vand.u32 4294901760, %v13742_v42 }
 0x2b6   : > { %7354 = vmatprep.subr.mxu1 %v15114_v12  ;;  %7433 = vmatprep.subr.mxu0 %v13658_v49  ;;  %v295_v12 = vld [vmem:[#allocation6 + $0x170] sm:$0xff]  ;;  %v13799_v38 = vpop.f32.mrf.mxu1 }
 0x2b7   : > { %7356 = vmatpush1.msra.mxu1 %v13434_v51  ;;  %7435 = vmatpush1.msra.mxu0 %v13669_v14  ;;  %v7544_v51 = vsub.f32 %v13692_v26, %v14796_v37  ;;  %v7539_v34 = vand.u32 4294901760, %v13747_v41  ;;  %v13786_v47 = vand.u32 4294901760, %v295_v12  ;;  %v269_v37 = vld [vmem:[#allocation6 + $0xa0] sm:$0xff]  ;;  %15140 = vst [vmem:[#allocation19_spill] sm:$0xff] %v13794_v25 }
 0x2b8   : > { %7358 = vmatprep.subr.mxu1 %v13449_v4  ;;  %7437 = vmatprep.subr.mxu0 %v13679_v57  ;;  %v13774_v4 = vand.u32 4294901760, %v319_v29  ;;  %v13820_v62 = vand.u32 4294901760, %v269_v37  ;;  %v13823_v10 = vpop.f32.mrf.mxu1 }
 0x2b9   : > { %7313 = vmatprep.mubr.f32.mxu0 %v14862_v28  ;;  %7360 = vmatpush1.msra.mxu1 %v15118_v58  ;;  %v7545_v17 = vand.u32 4294901760, %v7544_v51  ;;  %v7556_v58 = vsub.f32 %v13723_v33, %v14799_v18  ;;  %v15141_v51 = vand.u32 4294901760, %v13735_v16  ;;  %v13831_v60 = vsub.f32 %v295_v12, %v13786_v47 }
 0x2ba   : > { %15139 = vst [vmem:[#allocation18_spill] sm:$0xff] %v13774_v4  ;;  %7439 = vmatpush1.msra.mxu0 %v13694_v50  ;;  %7362 = vmatprep.subr.mxu1 %v13468_v43  ;;  %v13796_v43 = vand.u32 4294901760, %v270_v7  ;;  %v15143_v18 = vand.u32 4294901760, %v13755_v22 }
 0x2bb   : > { %7315 = vmatmul.mubr.f32.gmra.mxu0 %v10833_v40  ;;  %7441 = vmatprep.subr.mxu0 %v13701_v59  ;;  %v7562_v41 = vsub.f32 %v13735_v16, %v15141_v51  ;;  %v13836_v51 = vsub.f32 %v294_v1, %v13794_v25  ;;  %v7557_v12 = vand.u32 4294901760, %v7556_v58 }
 0x2bc   : > { %7364 = vmatpush1.msra.mxu1 %v15122_v36  ;;  %7443 = vmatpush1.msra.mxu0 %v13708_v45  ;;  %v13815_v36 = vsub.f32 %v319_v29, %v13774_v4  ;;  %v7568_v29 = vsub.f32 %v13742_v42, %v15142_v56  ;;  %v13843_v19 = vsub.f32 %v270_v7, %v13796_v43  ;;  %v15144_v56 = vand.u32 4294901760, %v13762_v44 }
 0x2bd   : > { %7366 = vmatprep.subr.mxu1 %v13478_v6  ;;  %7445 = vmatprep.subr.mxu0 %v13717_v31  ;;  %v7551_v6 = vand.u32 4294901760, %v7550_v5  ;;  %v13854_v5 = vsub.f32 %v269_v37, %v13820_v62  ;;  %v15145_v7 = vand.u32 4294901760, %v13778_v24 }
 0x2be   : > { %7368 = vmatpush1.msra.mxu1 %v13502_v55  ;;  %7401 = vmatprep.mubr.f32.mxu1 %v14862_v28  ;;  %v7574_v55 = vsub.f32 %v13755_v22, %v15143_v18  ;;  %v7580_v53 = vsub.f32 %v13762_v44, %v15144_v56  ;;  %v7563_v18 = vand.u32 4294901760, %v7562_v41  ;;  %v7569_v56 = vand.u32 4294901760, %v7568_v29 }
 0x2bf   : > { %7447 = vmatpush1.msra.mxu0 %v13725_v48  ;;  %7403 = vmatmul.mubr.f32.vlgmr.msra.gmra.mxu1 %v10769_v9  ;;  %v13850_v48 = vpop.f32.mrf.mxu0  ;;  %v15147_v29 = vand.u32 4294901760, %v13808_v27 }
 0x2c0   : > { %7449 = vmatprep.subr.mxu0 %v13732_v54  ;;  %7540 = vmatprep.subr.mxu1 %v7539_v34  ;;  %v7586_v34 = vsub.f32 %v13778_v24, %v15145_v7  ;;  %v5094_v54 = vpop.f32.mrf.mxu1  ;;  %v7575_v37 = vand.u32 4294901760, %v7574_v55 }
 0x2c1   : > { %7451 = vmatpush1.msra.mxu0 %v13752_v13  ;;  %7546 = vmatpush1.msra.mxu1 %v7545_v17  ;;  %v5221_v31 = vpop.f32.mrf.mxu0  ;;  %v15146_v17 = vand.u32 4294901760, %v13792_v35  ;;  %v7598_v1 = vsub.f32 %v13808_v27, %v15147_v29 }
 0x2c2   : > { %7453 = vmatprep.subr.mxu0 %v13767_v8  ;;  %7552 = vmatprep.subr.mxu1 %v7551_v6  ;;  %v7581_v6 = vand.u32 4294901760, %v7580_v53  ;;  %v7587_v55 = vand.u32 4294901760, %v7586_v34  ;;  %v5101_v58 = vpop.f32.mrf.mxu1  ;;  %v15149_v53 = vand.u32 4294901760, %v13831_v60 }
 0x2c3   : > { %7408 = vmatprep.mubr.f32.mxu1 %v14862_v28  ;;  %7455 = vmatpush1.msra.mxu0 %v13774_v4  ;;  %v7592_v41 = vsub.f32 %v13792_v35, %v15146_v17  ;;  %v4883_v4 = vadd.f32 %v13703_v46, %v13644_v61  ;;  %v15148_v17 = vand.u32 4294901760, %v13815_v36  ;;  %v4885_v61 = vadd.f32 %v13737_v20, %v13661_v15 }
 0x2c4   : > { %7558 = vmatpush1.msra.mxu1 %v7557_v12  ;;  %7457 = vmatprep.subr.mxu0 %v13786_v47  ;;  %v7610_v29 = vsub.f32 %v13831_v60, %v15149_v53  ;;  %v7599_v53 = vand.u32 4294901760, %v7598_v1  ;;  %v4890_v15 = vadd.f32 %v13757_v21, %v13671_v32  ;;  %v13907_v1 = vld [vmem:[#allocation8 + $0x8] sm:$0xff] }
 0x2c5   : > { %7410 = vmatmul.mubr.f32.gmra.mxu1 %v10833_v40  ;;  %7564 = vmatprep.subr.mxu1 %v7563_v18  ;;  %v7604_v7 = vsub.f32 %v13815_v36, %v15148_v17  ;;  %v4995_v46 = vadd.f32 %v13728_v63, %v4883_v4  ;;  %v5223_v18 = vpop.f32.mrf.mxu0  ;;  %v7593_v34 = vand.u32 4294901760, %v7592_v41  ;;  %v15150_v17 = vand.u32 4294901760, %v13836_v51 }
 0x2c6   : > { %7459 = vmatpush1.msra.mxu0 %v13794_v25  ;;  %7570 = vmatpush1.msra.mxu1 %v7569_v56  ;;  %v15151_v56 = vand.u32 4294901760, %v13843_v19  ;;  %v4997_v63 = vadd.f32 %v13770_v11, %v4885_v61  ;;  %v7611_v32 = vand.u32 4294901760, %v7610_v29 }
 0x2c7   : > { %7461 = vmatprep.subr.mxu0 %v13796_v43  ;;  %7576 = vmatprep.subr.mxu1 %v7575_v37  ;;  %v7616_v12 = vsub.f32 %v13836_v51, %v15150_v17  ;;  %v5093_v20 = vadd.f32 %v13823_v10, %v4995_v46  ;;  %v7605_v4 = vand.u32 4294901760, %v7604_v7  ;;  %v15152_v37 = vand.u32 4294901760, %v13854_v5  ;;  %v5228_v10 = vpop.f32.mrf.mxu0 }
 0x2c8   : > { %v7622_v25 = vsub.f32 %v13843_v19, %v15151_v56  ;;  %7463 = vmatpush1.msra.mxu0 %v13820_v62  ;;  %7582 = vmatpush1.msra.mxu1 %v7581_v6  ;;  %v4892_v17 = vadd.f32 %v13799_v38, %v13697_v2  ;;  %v5103_v6 = vpop.f32.mrf.mxu1  ;;  %v5095_v21 = vadd.f32 %v5094_v54, %v4997_v63  ;;  %v15154_v2 = vld [vmem:[#allocation29_spill] sm:$0xff] }
 0x2c9   : > { %7496 = vmatprep.mubr.f32.mxu0 %v14862_v28  ;;  %7588 = vmatprep.subr.mxu1 %v7587_v55  ;;  %v7628_v41 = vsub.f32 %v13854_v5, %v15152_v37  ;;  %v5222_v11 = vadd.f32 %v5221_v31, %v5093_v20  ;;  %v15153_v55 = vld [vmem:[#allocation26_spill] sm:$0xff]  ;;  %v7617_v61 = vand.u32 4294901760, %v7616_v12  ;;  %v9451_v38 = vrot.slane %v13907_v1, %v15154_v2  ;;  %v5230_v37 = vpop.f32.mrf.mxu0 }
 0x2ca   : > { %7696 = vmatprep.subr.mxu0 %v13682_v52  ;;  %7502 = vmatmul.mubr.f32.vlgmr.msra.gmra.mxu0 %v10835_v23  ;;  %v9447_v7 = vrot.slane %v13907_v1, %v15153_v55  ;;  %v7623_v29 = vand.u32 4294901760, %v7622_v25  ;;  %v5003_v31 = vadd.f32 %v13810_v0, %v4890_v15  ;;  %v5224_v54 = vadd.f32 %v5223_v18, %v5095_v21 }
 0x2cb   : > { %7594 = vmatpush1.msra.mxu1 %v7593_v34  ;;  %7699 = vmatpush1.msra.mxu0 %v13692_v26  ;;  %v5316_v46 = vpop.f32.mrf.mxu1  ;;  %v7629_v63 = vand.u32 4294901760, %v7628_v41  ;;  %v5005_v34 = vadd.f32 %v13850_v48, %v4892_v17 }
 0x2cc   : > { %7600 = vmatprep.subr.mxu1 %v7599_v53  ;;  %7702 = vmatprep.subr.mxu0 %v13712_v3  ;;  %v5317_v56 = vadd.f32 %v5316_v46, %v5222_v11  ;;  %v5102_v12 = vadd.f32 %v5101_v58, %v5003_v31  ;;  %v15155_v31 = vld [vmem:[#allocation25_spill] sm:$0xff] }
 0x2cd   : > { %7606 = vmatpush1.msra.mxu1 %v7605_v4  ;;  %7705 = vmatpush1.msra.mxu0 %v13723_v33  ;;  %v5318_v20 = vpop.f32.mrf.mxu1  ;;  %v5104_v0 = vadd.f32 %v5103_v6, %v5005_v34  ;;  %v15157_v34 = vld [vmem:[#allocation13_spill] sm:$0xff] }
 0x2ce   : > { %7612 = vmatprep.subr.mxu1 %v7611_v32  ;;  %7708 = vmatprep.subr.mxu0 %v13735_v16  ;;  %v9533_v53 = vsub.f32 %v5317_v56, %v9447_v7  ;;  %v5319_v2 = vadd.f32 %v5318_v20, %v5224_v54  ;;  %v5229_v25 = vadd.f32 %v5228_v10, %v5102_v12  ;;  %v15156_v56 = vld [vmem:[#allocation30_spill] sm:$0xff]  ;;  %v15158_v20 = vld [vmem:[#allocation17_spill] sm:$0xff]  ;;  %v15159_v12 = vand.u32 4294901760, %v13682_v52 }
 0x2cf   : > { %7618 = vmatpush1.msra.mxu1 %v7617_v61  ;;  %7711 = vmatpush1.msra.mxu0 %v13742_v42  ;;  %v5231_v48 = vadd.f32 %v5230_v37, %v5104_v0  ;;  %v15160_v37 = vand.u32 4294901760, %v13692_v26  ;;  %v15162_v0 = vld [vmem:[#allocation18_spill] sm:$0xff]  ;;  %v15163_v52 = vand.u32 4294901760, %v13723_v33  ;;  %v15164_v26 = vld [vmem:[#allocation15_spill] sm:$0xff] }
 0x2d0   : > { %7624 = vmatprep.subr.mxu1 %v7623_v29  ;;  %7714 = vmatprep.subr.mxu0 %v13755_v22  ;;  %v9593_v18 = vmul.f32 %v12018_v39, %v9533_v53  ;;  %v9534_v15 = vsub.f32 %v5319_v2, %v9451_v38 }
 0x2d1   : > { %7630 = vmatpush1.msra.mxu1 %v7629_v63  ;;  %7663 = vmatprep.mubr.f32.mxu1 %v14862_v28  ;;  %v5323_v4 = vpop.f32.mrf.mxu1 }
 0x2d2   : > { %7717 = vmatpush1.msra.mxu0 %v13762_v44  ;;  %7665 = vmatmul.mubr.f32.vlgmr.msra.gmra.mxu1 %v10769_v9  ;;  %v9643_v58 = vmul.f32 %v9593_v18, %v9533_v53  ;;  %v9594_v41 = vmul.f32 %v12018_v39, %v9534_v15  ;;  %v5324_v17 = vadd.f32 %v5323_v4, %v5229_v25  ;;  %v15161_v53 = vand.u32 4294901760, %v13712_v3  ;;  %v447_v3 = vld [vmem:[#allocation6 + $0x630] sm:$0xff] }
 0x2d3   : > { %7720 = vmatprep.subr.mxu0 %v13778_v24  ;;  %7808 = vmatprep.subr.mxu1 %v13658_v49  ;;  %v5325_v6 = vpop.f32.mrf.mxu1  ;;  %v15167_v4 = vand.u32 4294901760, %v13742_v42  ;;  %v15169_v42 = vand.u32 4294901760, %v13762_v44  ;;  %v421_v44 = vld [vmem:[#allocation6 + $0x560] sm:$0xff] }
 0x2d4   : > { %7723 = vmatpush1.msra.mxu0 %v13792_v35  ;;  %7810 = vmatpush1.msra.mxu1 %v13669_v14  ;;  %v9705_v32 = vmul.f32 1.442695, %v9643_v58  ;;  %v9644_v21 = vmul.f32 %v9594_v41, %v9534_v15  ;;  %v9558_v11 = vsub.f32 %v5324_v17, %v9447_v7  ;;  %v5326_v10 = vadd.f32 %v5325_v6, %v5231_v48  ;;  %v15166_v48 = vld [vmem:[#allocation19_spill] sm:$0xff]  ;;  %v15170_v6 = vld [vmem:[#allocation14_spill] sm:$0xff] }
 0x2d5   : > { %7726 = vmatprep.subr.mxu0 %v13808_v27  ;;  %7812 = vmatprep.subr.mxu1 %v13679_v57  ;;  %v15165_v15 = vand.u32 4294901760, %v13735_v16  ;;  %v15168_v58 = vand.u32 4294901760, %v13755_v22  ;;  %v446_v41 = vld [vmem:[#allocation6 + $0x628] sm:$0xff]  ;;  %v13978_v16 = vand.u32 4294901760, %v447_v3  ;;  %v15171_v22 = vand.u32 4294901760, %v13778_v24 }
 0x2d6   : > { %7507 = vmatprep.mubr.f32.mxu0 %v14862_v28  ;;  %7729 = vmatpush1.msra.mxu0 %v13815_v36  ;;  %10258 = vpow2.f32 %v9705_v32  ;;  %v9707_v61 = vmul.f32 1.442695, %v9644_v21  ;;  %v9618_v46 = vmul.f32 %v12018_v39, %v9558_v11  ;;  %v9559_v2 = vsub.f32 %v5326_v10, %v9451_v38  ;;  %v13964_v25 = vpop.f32.mrf.mxu0  ;;  %v422_v32 = vld [vmem:[#allocation6 + $0x568] sm:$0xff] }
 0x2d7   : > { %7814 = vmatpush1.msra.mxu1 %v13694_v50  ;;  %7513 = vmatmul.mubr.f32.gmra.mxu0 %v10869_v30  ;;  %v13989_v21 = vand.u32 4294901760, %v446_v41  ;;  %v13999_v24 = vand.u32 4294901760, %v422_v32 }
 0x2d8   : > { %7732 = vmatprep.subr.mxu0 %v13831_v60  ;;  %7816 = vmatprep.subr.mxu1 %v13701_v59  ;;  %10260 = vpow2.f32 %v9707_v61  ;;  %v9668_v7 = vmul.f32 %v9618_v46, %v9558_v11  ;;  %v9619_v29 = vmul.f32 %v12018_v39, %v9559_v2  ;;  %v13981_v17 = vpop.f32.mrf.mxu0  ;;  %v15172_v61 = vand.u32 4294901760, %v13792_v35 }
 0x2d9   : > { %7735 = vmatpush1.msra.mxu0 %v13836_v51  ;;  %7818 = vmatpush1.msra.mxu1 %v13708_v45  ;;  %v15173_v46 = vand.u32 4294901760, %v13808_v27  ;;  %v15174_v35 = vand.u32 4294901760, %v13815_v36  ;;  %v15175_v27 = vand.u32 4294901760, %v13831_v60  ;;  %v15177_v60 = vand.u32 4294901760, %v13836_v51 }
 0x2da   : > { %7738 = vmatprep.subr.mxu0 %v13843_v19  ;;  %7820 = vmatprep.subr.mxu1 %v15155_v31  ;;  %v9755_v38 = vmul.f32 1.442695, %v9668_v7  ;;  %v9669_v54 = vmul.f32 %v9619_v29, %v9559_v2  ;;  %v14002_v2 = vsub.f32 %v447_v3, %v13978_v16  ;;  %v14014_v29 = vand.u32 4294901760, %v421_v44 }
 0x2db   : > { %7741 = vmatpush1.msra.mxu0 %v13854_v5  ;;  %7774 = vmatprep.mubr.f32.mxu0 %v14862_v28  ;;  %v15181_v51 = vand.u32 4294901760, %v13854_v5  ;;  %v322_v5 = vld [vmem:[#allocation6 + $0x248] sm:$0xff] }
 0x2dc   : > { %7822 = vmatpush1.msra.mxu1 %v15156_v56  ;;  %7670 = vmatprep.mubr.f32.mxu1 %v14862_v28  ;;  %10262 = vpow2.f32 %v9755_v38  ;;  %v9757_v63 = vmul.f32 1.442695, %v9669_v54  ;;  %v372_v38 = vld [vmem:[#allocation6 + $0x3d8] sm:$0xff] }
 0x2dd   : > { %7777 = vmatmul.mubr.f32.vlgmr.msra.gmra.mxu0 %v15157_v34  ;;  %7824 = vmatprep.subr.mxu1 %v15158_v20 }
 0x2de   : > { %7909 = vmatprep.subr.mxu0 %v15159_v12  ;;  %7672 = vmatmul.mubr.f32.gmra.mxu1 %v10833_v40  ;;  %10264 = vpow2.f32 %v9757_v63  ;;  %v15176_v63 = vld [vmem:[#allocation16_spill] sm:$0xff] }
 0x2df   : > { %7826 = vmatpush1.msra.mxu1 %v13752_v13  ;;  %7913 = vmatpush1.msra.mxu0 %v15160_v37  ;;  %v371_v12 = vld [vmem:[#allocation6 + $0x3d0] sm:$0xff] }
 0x2e0   : > { %7828 = vmatprep.subr.mxu1 %v13767_v8  ;;  %7917 = vmatprep.subr.mxu0 %v15161_v53  ;;  %v347_v53 = vld [vmem:[#allocation6 + $0x310] sm:$0xff]  ;;  %v14045_v3 = vand.u32 4294901760, %v371_v12 }
 0x2e1   : > { %7782 = vmatprep.mubr.f32.mxu0 %v14862_v28  ;;  %7830 = vmatpush1.msra.mxu1 %v15162_v0 }
 0x2e2   : > { %7921 = vmatpush1.msra.mxu0 %v15163_v52  ;;  %7832 = vmatprep.subr.mxu1 %v13786_v47  ;;  %v14811_v52 = vand.u32 4294901760, %v14002_v2  ;;  %15182 = vst [vmem:[#allocation25_spill] sm:$0xff] %v14045_v3 }
 0x2e3   : > { %v10259_v18 = vpop.eup %10258  ;;  %7785 = vmatmul.mubr.f32.gmra.mxu0 %v15164_v26  ;;  %7925 = vmatprep.subr.mxu0 %v15165_v15  ;;  %v13991_v11 = vpop.f32.mrf.mxu0  ;;  %v14037_v15 = vand.u32 4294901760, %v372_v38 }
 0x2e4   : > { %7834 = vmatpush1.msra.mxu1 %v15166_v48  ;;  %7929 = vmatpush1.msra.mxu0 %v15167_v4  ;;  %9793 = vst [vmem:[%s12168_s24 + $0x60] sm:$0xff] %v10259_v18  ;;  %v14032_v18 = vsub.f32 %v422_v32, %v13999_v24  ;;  %v346_v4 = vld [vmem:[#allocation6 + $0x308] sm:$0xff] }
 0x2e5   : > { %v10261_v33 = vpop.eup %10260  ;;  %7836 = vmatprep.subr.mxu1 %v13796_v43  ;;  %7933 = vmatprep.subr.mxu0 %v15168_v58  ;;  %v14017_v54 = vpop.f32.mrf.mxu0  ;;  %15180 = vst [vmem:[#allocation24_spill] sm:$0xff] %v14037_v15 }
 0x2e6   : > { %7838 = vmatpush1.msra.mxu1 %v13820_v62  ;;  %7871 = vmatprep.mubr.f32.mxu1 %v14862_v28  ;;  %9794 = vst [vmem:[%s12168_s24 + $0x68] sm:$0xff] %v10261_v33  ;;  %v14812_v32 = vand.u32 4294901760, %v14032_v18 }
 0x2e7   : > { %7937 = vmatpush1.msra.mxu0 %v15169_v42  ;;  %7875 = vmatmul.mubr.f32.vlgmr.msra.gmra.mxu1 %v15170_v6 }
 0x2e8   : > { %7941 = vmatprep.subr.mxu0 %v15171_v22  ;;  %8034 = vmatprep.subr.mxu1 %v13658_v49  ;;  %v397_v49 = vld [vmem:[#allocation6 + $0x4a0] sm:$0xff] }
 0x2e9   : > { %v10263_v10 = vpop.eup %10262  ;;  %7945 = vmatpush1.msra.mxu0 %v15172_v61  ;;  %8036 = vmatpush1.msra.mxu1 %v13669_v14  ;;  %v396_v14 = vld [vmem:[#allocation6 + $0x498] sm:$0xff]  ;;  %v14021_v36 = vand.u32 4294901760, %v397_v49  ;;  %v14048_v58 = vpop.f32.mrf.mxu0  ;;  %v321_v22 = vld [vmem:[#allocation6 + $0x240] sm:$0xff]  ;;  %v14075_v61 = vsub.f32 %v372_v38, %v14037_v15 }
 0x2ea   : > { %7949 = vmatprep.subr.mxu0 %v15173_v46  ;;  %8038 = vmatprep.subr.mxu1 %v13679_v57  ;;  %9818 = vst [vmem:[%s12168_s24 + $0x128] sm:$0xff] %v10263_v10  ;;  %v14012_v57 = vsub.f32 %v446_v41, %v13989_v21  ;;  %v14028_v37 = vand.u32 4294901760, %v396_v14  ;;  %v14072_v10 = vand.u32 4294901760, %v346_v4  ;;  %v14082_v46 = vsub.f32 %v371_v12, %v14045_v3 }
 0x2eb   : > { %v10265_v7 = vpop.eup %10264  ;;  %7880 = vmatprep.mubr.f32.mxu1 %v14862_v28  ;;  %7953 = vmatpush1.msra.mxu0 %v15174_v35  ;;  %v296_v35 = vld [vmem:[#allocation6 + $0x178] sm:$0xff] }
 0x2ec   : > { %8040 = vmatpush1.msra.mxu1 %v13694_v50  ;;  %7957 = vmatprep.subr.mxu0 %v15175_v27  ;;  %9819 = vst [vmem:[%s12168_s24 + $0x130] sm:$0xff] %v10265_v7  ;;  %v14023_v50 = vpop.f32.mrf.mxu1  ;;  %15178 = vst [vmem:[#allocation20_spill] sm:$0xff] %v14028_v37  ;;  %v14810_v33 = vand.u32 4294901760, %v14012_v57  ;;  %v14062_v42 = vsub.f32 %v396_v14, %v14028_v37  ;;  %v272_v14 = vld [vmem:[#allocation6 + $0xb8] sm:$0xff]  ;;  %v14090_v27 = vpop.f32.mrf.mxu0 }
 0x2ed   : > { %7884 = vmatmul.mubr.f32.gmra.mxu1 %v15176_v63  ;;  %8042 = vmatprep.subr.mxu1 %v13701_v59  ;;  %v15179_v59 = vand.u32 4294901760, %v13843_v19  ;;  %v14052_v19 = vand.u32 4294901760, %v347_v53 }
 0x2ee   : > { %7961 = vmatpush1.msra.mxu0 %v15177_v60  ;;  %8044 = vmatpush1.msra.mxu1 %v13708_v45  ;;  %v14043_v45 = vsub.f32 %v421_v44, %v14014_v29  ;;  %v14057_v41 = vpop.f32.mrf.mxu1 }
 0x2ef   : > { %7965 = vmatprep.subr.mxu0 %v15179_v59  ;;  %8046 = vmatprep.subr.mxu1 %v15155_v31  ;;  %15183 = vst [vmem:[#allocation30_spill] sm:$0xff] %v14052_v19  ;;  %v14055_v31 = vsub.f32 %v397_v49, %v14021_v36  ;;  %v14087_v49 = vand.u32 4294901760, %v322_v5  ;;  %v14098_v12 = vsub.f32 %v347_v53, %v14052_v19  ;;  %v14130_v63 = vpop.f32.mrf.mxu0 }
 0x2f0   : > { %7969 = vmatpush1.msra.mxu0 %v15181_v51  ;;  %8002 = vmatprep.mubr.f32.mxu0 %v14862_v28  ;;  %v14077_v44 = vpop.f32.mrf.mxu1  ;;  %v14813_v7 = vand.u32 4294901760, %v14043_v45  ;;  %v8246_v59 = vsub.f32 %v14032_v18, %v14812_v32  ;;  %v14112_v53 = vsub.f32 %v346_v4, %v14072_v10 }
 0x2f1   : > { %8048 = vmatpush1.msra.mxu1 %v15156_v56  ;;  %8004 = vmatmul.mubr.f32.vlgmr.msra.gmra.mxu0 %v10769_v9  ;;  %v14067_v56 = vsub.f32 %v14002_v2, %v14811_v52  ;;  %v14114_v52 = vand.u32 4294901760, %v296_v35  ;;  %v14128_v55 = vsub.f32 %v322_v5, %v14087_v49  ;;  %v15187_v5 = vand.u32 4294901760, %v14062_v42 }
 0x2f2   : > { %8050 = vmatprep.subr.mxu1 %v15158_v20  ;;  %8129 = vmatprep.subr.mxu0 %v13978_v16  ;;  %v297_v20 = vld [vmem:[#allocation6 + $0x180] sm:$0xff]  ;;  %v14119_v38 = vpop.f32.mrf.mxu1 }
 0x2f3   : > { %8052 = vmatpush1.msra.mxu1 %v13752_v13  ;;  %8131 = vmatpush1.msra.mxu0 %v13989_v21  ;;  %v8240_v13 = vsub.f32 %v14012_v57, %v14810_v33  ;;  %v8235_v60 = vand.u32 4294901760, %v14067_v56  ;;  %v14106_v51 = vand.u32 4294901760, %v297_v20  ;;  %v271_v33 = vld [vmem:[#allocation6 + $0xb0] sm:$0xff]  ;;  %15185 = vst [vmem:[#allocation18_spill] sm:$0xff] %v14114_v52 }
 0x2f4   : > { %8054 = vmatprep.subr.mxu1 %v13767_v8  ;;  %8133 = vmatprep.subr.mxu0 %v13999_v24  ;;  %v14094_v8 = vand.u32 4294901760, %v321_v22  ;;  %v14140_v6 = vand.u32 4294901760, %v271_v33  ;;  %v14143_v4 = vpop.f32.mrf.mxu1 }
 0x2f5   : > { %8009 = vmatprep.mubr.f32.mxu0 %v14862_v28  ;;  %8056 = vmatpush1.msra.mxu1 %v15162_v0  ;;  %v8241_v32 = vand.u32 4294901760, %v8240_v13  ;;  %v8252_v0 = vsub.f32 %v14043_v45, %v14813_v7  ;;  %v15186_v13 = vand.u32 4294901760, %v14055_v31  ;;  %v14151_v26 = vsub.f32 %v297_v20, %v14106_v51 }
 0x2f6   : > { %15184 = vst [vmem:[#allocation17_spill] sm:$0xff] %v14094_v8  ;;  %8135 = vmatpush1.msra.mxu0 %v14014_v29  ;;  %8058 = vmatprep.subr.mxu1 %v13786_v47  ;;  %v14116_v47 = vand.u32 4294901760, %v272_v14  ;;  %v15188_v7 = vand.u32 4294901760, %v14075_v61 }
 0x2f7   : > { %8011 = vmatmul.mubr.f32.gmra.mxu0 %v10833_v40  ;;  %8137 = vmatprep.subr.mxu0 %v14021_v36  ;;  %v8258_v56 = vsub.f32 %v14055_v31, %v15186_v13  ;;  %v14156_v13 = vsub.f32 %v296_v35, %v14114_v52  ;;  %v8253_v20 = vand.u32 4294901760, %v8252_v0 }
 0x2f8   : > { %8060 = vmatpush1.msra.mxu1 %v15166_v48  ;;  %8139 = vmatpush1.msra.mxu0 %v14028_v37  ;;  %v14135_v48 = vsub.f32 %v321_v22, %v14094_v8  ;;  %v8264_v22 = vsub.f32 %v14062_v42, %v15187_v5  ;;  %v14163_v34 = vsub.f32 %v272_v14, %v14116_v47  ;;  %v15189_v5 = vand.u32 4294901760, %v14082_v46 }
 0x2f9   : > { %8062 = vmatprep.subr.mxu1 %v13796_v43  ;;  %8141 = vmatprep.subr.mxu0 %v14037_v15  ;;  %v8247_v43 = vand.u32 4294901760, %v8246_v59  ;;  %v14170_v15 = vpop.f32.mrf.mxu0  ;;  %v14174_v59 = vsub.f32 %v271_v33, %v14140_v6  ;;  %v15190_v14 = vand.u32 4294901760, %v14098_v12 }
 0x2fa   : > { %8064 = vmatpush1.msra.mxu1 %v13820_v62  ;;  %8097 = vmatprep.mubr.f32.mxu1 %v14862_v28  ;;  %v8270_v62 = vsub.f32 %v14075_v61, %v15188_v7  ;;  %v8259_v7 = vand.u32 4294901760, %v8258_v56 }
 0x2fb   : > { %8143 = vmatpush1.msra.mxu0 %v14045_v3  ;;  %8099 = vmatmul.mubr.f32.vlgmr.msra.gmra.mxu1 %v10769_v9  ;;  %v8276_v3 = vsub.f32 %v14082_v46, %v15189_v5  ;;  %v8265_v5 = vand.u32 4294901760, %v8264_v22  ;;  %v15192_v22 = vand.u32 4294901760, %v14128_v55 }
 0x2fc   : > { %8145 = vmatprep.subr.mxu0 %v14052_v19  ;;  %8236 = vmatprep.subr.mxu1 %v8235_v60  ;;  %v8282_v60 = vsub.f32 %v14098_v12, %v15190_v14  ;;  %v5790_v19 = vpop.f32.mrf.mxu1  ;;  %v8271_v33 = vand.u32 4294901760, %v8270_v62 }
 0x2fd   : > { %8147 = vmatpush1.msra.mxu0 %v14072_v10  ;;  %8242 = vmatpush1.msra.mxu1 %v8241_v32  ;;  %v5917_v37 = vpop.f32.mrf.mxu0  ;;  %v15191_v32 = vand.u32 4294901760, %v14112_v53  ;;  %v8294_v35 = vsub.f32 %v14128_v55, %v15192_v22 }
 0x2fe   : > { %8149 = vmatprep.subr.mxu0 %v14087_v49  ;;  %8248 = vmatprep.subr.mxu1 %v8247_v43  ;;  %v8277_v43 = vand.u32 4294901760, %v8276_v3  ;;  %v8283_v62 = vand.u32 4294901760, %v8282_v60  ;;  %v5797_v0 = vpop.f32.mrf.mxu1  ;;  %v15194_v3 = vand.u32 4294901760, %v14151_v26 }
 0x2ff   : > { %8104 = vmatprep.mubr.f32.mxu1 %v14862_v28  ;;  %8151 = vmatpush1.msra.mxu0 %v14094_v8  ;;  %v8288_v56 = vsub.f32 %v14112_v53, %v15191_v32  ;;  %v5579_v8 = vadd.f32 %v14023_v50, %v13964_v25  ;;  %v15193_v32 = vand.u32 4294901760, %v14135_v48  ;;  %v5581_v25 = vadd.f32 %v14057_v41, %v13981_v17 }
 0x300   : > { %8254 = vmatpush1.msra.mxu1 %v8253_v20  ;;  %8153 = vmatprep.subr.mxu0 %v14106_v51  ;;  %v8306_v22 = vsub.f32 %v14151_v26, %v15194_v3  ;;  %v8295_v3 = vand.u32 4294901760, %v8294_v35  ;;  %v5586_v17 = vadd.f32 %v14077_v44, %v13991_v11  ;;  %v15198_v35 = vld [vmem:[#allocation21_spill] sm:$0xff] }
 0x301   : > { %8106 = vmatmul.mubr.f32.gmra.mxu1 %v10833_v40  ;;  %8260 = vmatprep.subr.mxu1 %v8259_v7  ;;  %v8300_v14 = vsub.f32 %v14135_v48, %v15193_v32  ;;  %v5691_v50 = vadd.f32 %v14048_v58, %v5579_v8  ;;  %v5919_v7 = vpop.f32.mrf.mxu0  ;;  %v8289_v60 = vand.u32 4294901760, %v8288_v56  ;;  %v15195_v32 = vand.u32 4294901760, %v14156_v13 }
 0x302   : > { %8155 = vmatpush1.msra.mxu0 %v14114_v52  ;;  %8266 = vmatpush1.msra.mxu1 %v8265_v5  ;;  %v15196_v5 = vand.u32 4294901760, %v14163_v34  ;;  %v5693_v58 = vadd.f32 %v14090_v27, %v5581_v25  ;;  %v8307_v11 = vand.u32 4294901760, %v8306_v22  ;;  %v5699_v22 = vadd.f32 %v14130_v63, %v5586_v17 }
 0x303   : > { %8157 = vmatprep.subr.mxu0 %v14116_v47  ;;  %8272 = vmatprep.subr.mxu1 %v8271_v33  ;;  %v8312_v20 = vsub.f32 %v14156_v13, %v15195_v32  ;;  %v5789_v41 = vadd.f32 %v14143_v4, %v5691_v50  ;;  %v8301_v8 = vand.u32 4294901760, %v8300_v14  ;;  %v15197_v33 = vand.u32 4294901760, %v14174_v59  ;;  %v5924_v4 = vpop.f32.mrf.mxu0  ;;  %v15199_v50 = vld [vmem:[#allocation31_spill] sm:$0xff] }
 0x304   : > { %v8318_v52 = vsub.f32 %v14163_v34, %v15196_v5  ;;  %8159 = vmatpush1.msra.mxu0 %v14140_v6  ;;  %8278 = vmatpush1.msra.mxu1 %v8277_v43  ;;  %v5588_v32 = vadd.f32 %v14119_v38, %v14017_v54  ;;  %v5799_v43 = vpop.f32.mrf.mxu1  ;;  %v5791_v44 = vadd.f32 %v5790_v19, %v5693_v58 }
 0x305   : > { %8192 = vmatprep.mubr.f32.mxu0 %v14862_v28  ;;  %8284 = vmatprep.subr.mxu1 %v8283_v62  ;;  %v8324_v56 = vsub.f32 %v14174_v59, %v15197_v33  ;;  %v5918_v27 = vadd.f32 %v5917_v37, %v5789_v41  ;;  %v9455_v62 = vrot.slane %v13907_v1, %v15198_v35  ;;  %v8313_v14 = vand.u32 4294901760, %v8312_v20 }
 0x306   : > { %8392 = vmatprep.subr.mxu0 %v14002_v2  ;;  %8198 = vmatmul.mubr.f32.vlgmr.msra.gmra.mxu0 %v10835_v23  ;;  %v9459_v54 = vrot.slane %v13907_v1, %v15199_v50  ;;  %v8319_v38 = vand.u32 4294901760, %v8318_v52  ;;  %v5920_v19 = vadd.f32 %v5919_v7, %v5791_v44  ;;  %v5798_v20 = vadd.f32 %v5797_v0, %v5699_v22  ;;  %v5926_v1 = vpop.f32.mrf.mxu0  ;;  %v15200_v22 = vld [vmem:[#allocation20_spill] sm:$0xff] }
 0x307   : > { %8290 = vmatpush1.msra.mxu1 %v8289_v60  ;;  %8395 = vmatpush1.msra.mxu0 %v14012_v57  ;;  %v6012_v25 = vpop.f32.mrf.mxu1  ;;  %v8325_v5 = vand.u32 4294901760, %v8324_v56  ;;  %v5701_v60 = vadd.f32 %v14170_v15, %v5588_v32 }
 0x308   : > { %8296 = vmatprep.subr.mxu1 %v8295_v3  ;;  %8398 = vmatprep.subr.mxu0 %v14032_v18  ;;  %v6013_v37 = vadd.f32 %v6012_v25, %v5918_v27  ;;  %v5925_v52 = vadd.f32 %v5924_v4, %v5798_v20  ;;  %v15204_v20 = vld [vmem:[#allocation30_spill] sm:$0xff] }
 0x309   : > { %8302 = vmatpush1.msra.mxu1 %v8301_v8  ;;  %8401 = vmatpush1.msra.mxu0 %v14043_v45  ;;  %v6014_v58 = vpop.f32.mrf.mxu1  ;;  %v5800_v63 = vadd.f32 %v5799_v43, %v5701_v60 }
 0x30a   : > { %8308 = vmatprep.subr.mxu1 %v8307_v11  ;;  %8404 = vmatprep.subr.mxu0 %v14055_v31  ;;  %v9535_v3 = vsub.f32 %v6013_v37, %v9455_v62  ;;  %v6015_v41 = vadd.f32 %v6014_v58, %v5920_v19  ;;  %v15201_v19 = vld [vmem:[#allocation24_spill] sm:$0xff]  ;;  %v15203_v58 = vld [vmem:[#allocation13_spill] sm:$0xff] }
 0x30b   : > { %8314 = vmatpush1.msra.mxu1 %v8313_v14  ;;  %8407 = vmatpush1.msra.mxu0 %v14062_v42  ;;  %v5927_v15 = vadd.f32 %v5926_v1, %v5800_v63  ;;  %v15205_v1 = vand.u32 4294901760, %v14002_v2  ;;  %v15208_v63 = vld [vmem:[#allocation17_spill] sm:$0xff]  ;;  %v15209_v2 = vand.u32 4294901760, %v14043_v45  ;;  %v15214_v45 = vand.u32 4294901760, %v14075_v61 }
 0x30c   : > { %8320 = vmatprep.subr.mxu1 %v8319_v38  ;;  %8410 = vmatprep.subr.mxu0 %v14075_v61  ;;  %v9595_v7 = vmul.f32 %v12018_v39, %v9535_v3  ;;  %v9536_v17 = vsub.f32 %v6015_v41, %v9459_v54  ;;  %v15207_v41 = vand.u32 4294901760, %v14032_v18  ;;  %v15212_v18 = vld [vmem:[#allocation18_spill] sm:$0xff] }
 0x30d   : > { %8326 = vmatpush1.msra.mxu1 %v8325_v5  ;;  %8359 = vmatprep.mubr.f32.mxu1 %v14862_v28  ;;  %v6019_v8 = vpop.f32.mrf.mxu1  ;;  %v15202_v5 = vld [vmem:[#allocation25_spill] sm:$0xff] }
 0x30e   : > { %8413 = vmatpush1.msra.mxu0 %v14082_v46  ;;  %8361 = vmatmul.mubr.f32.vlgmr.msra.gmra.mxu1 %v10769_v9  ;;  %v9645_v0 = vmul.f32 %v9595_v7, %v9535_v3  ;;  %v9596_v33 = vmul.f32 %v12018_v39, %v9536_v17  ;;  %v6020_v56 = vadd.f32 %v6019_v8, %v5925_v52  ;;  %v15206_v3 = vand.u32 4294901760, %v14012_v57  ;;  %v15210_v57 = vld [vmem:[#allocation15_spill] sm:$0xff] }
 0x30f   : > { %8416 = vmatprep.subr.mxu0 %v14098_v12  ;;  %8504 = vmatprep.subr.mxu1 %v13978_v16  ;;  %v6021_v32 = vpop.f32.mrf.mxu1 }
 0x310   : > { %8419 = vmatpush1.msra.mxu0 %v14112_v53  ;;  %8506 = vmatpush1.msra.mxu1 %v13989_v21  ;;  %v9709_v43 = vmul.f32 1.442695, %v9645_v0  ;;  %v9646_v11 = vmul.f32 %v9596_v33, %v9536_v17  ;;  %v9560_v44 = vsub.f32 %v6020_v56, %v9455_v62  ;;  %v6022_v27 = vadd.f32 %v6021_v32, %v5927_v15  ;;  %v448_v0 = vld [vmem:[#allocation6 + $0x638] sm:$0xff]  ;;  %v423_v56 = vld [vmem:[#allocation6 + $0x570] sm:$0xff] }
 0x311   : > { %8422 = vmatprep.subr.mxu0 %v14128_v55  ;;  %8508 = vmatprep.subr.mxu1 %v13999_v24  ;;  %v15211_v17 = vand.u32 4294901760, %v14055_v31  ;;  %v15213_v15 = vand.u32 4294901760, %v14062_v42  ;;  %v15215_v33 = vand.u32 4294901760, %v14082_v46  ;;  %v15216_v42 = vld [vmem:[#allocation14_spill] sm:$0xff]  ;;  %v15217_v32 = vand.u32 4294901760, %v14098_v12 }
 0x312   : > { %8203 = vmatprep.mubr.f32.mxu0 %v14862_v28  ;;  %8425 = vmatpush1.msra.mxu0 %v14135_v48  ;;  %10266 = vpow2.f32 %v9709_v43  ;;  %v9711_v4 = vmul.f32 1.442695, %v9646_v11  ;;  %v9620_v14 = vmul.f32 %v12018_v39, %v9560_v44  ;;  %v9561_v25 = vsub.f32 %v6022_v27, %v9459_v54  ;;  %v14282_v52 = vpop.f32.mrf.mxu0  ;;  %v398_v27 = vld [vmem:[#allocation6 + $0x4a8] sm:$0xff] }
 0x313   : > { %8510 = vmatpush1.msra.mxu1 %v14014_v29  ;;  %8209 = vmatmul.mubr.f32.gmra.mxu0 %v10869_v30  ;;  %v14305_v61 = vand.u32 4294901760, %v448_v0  ;;  %v15219_v46 = vand.u32 4294901760, %v14128_v55  ;;  %v14315_v12 = vand.u32 4294901760, %v423_v56 }
 0x314   : > { %8428 = vmatprep.subr.mxu0 %v14151_v26  ;;  %8512 = vmatprep.subr.mxu1 %v14021_v36  ;;  %10268 = vpow2.f32 %v9711_v4  ;;  %v9670_v62 = vmul.f32 %v9620_v14, %v9560_v44  ;;  %v9621_v38 = vmul.f32 %v12018_v39, %v9561_v25  ;;  %v14297_v31 = vpop.f32.mrf.mxu0  ;;  %v15218_v44 = vand.u32 4294901760, %v14112_v53  ;;  %v15222_v14 = vld [vmem:[#allocation16_spill] sm:$0xff] }
 0x315   : > { %8431 = vmatpush1.msra.mxu0 %v14156_v13  ;;  %8514 = vmatpush1.msra.mxu1 %v15200_v22  ;;  %v15220_v4 = vand.u32 4294901760, %v14135_v48  ;;  %v15221_v53 = vand.u32 4294901760, %v14151_v26  ;;  %v14325_v55 = vsub.f32 %v448_v0, %v14305_v61  ;;  %v348_v26 = vld [vmem:[#allocation6 + $0x318] sm:$0xff] }
 0x316   : > { %8434 = vmatprep.subr.mxu0 %v14163_v34  ;;  %8516 = vmatprep.subr.mxu1 %v15201_v19  ;;  %v9759_v54 = vmul.f32 1.442695, %v9670_v62  ;;  %v9671_v37 = vmul.f32 %v9621_v38, %v9561_v25  ;;  %v14332_v25 = vand.u32 4294901760, %v398_v27  ;;  %v14340_v62 = vsub.f32 %v423_v56, %v14315_v12 }
 0x317   : > { %8437 = vmatpush1.msra.mxu0 %v14174_v59  ;;  %8470 = vmatprep.mubr.f32.mxu0 %v14862_v28  ;;  %v15224_v38 = vand.u32 4294901760, %v14163_v34  ;;  %v14357_v34 = vand.u32 4294901760, %v348_v26 }
 0x318   : > { %8518 = vmatpush1.msra.mxu1 %v15202_v5  ;;  %8366 = vmatprep.mubr.f32.mxu1 %v14862_v28  ;;  %10270 = vpow2.f32 %v9759_v54  ;;  %v9761_v60 = vmul.f32 1.442695, %v9671_v37  ;;  %v323_v37 = vld [vmem:[#allocation6 + $0x250] sm:$0xff] }
 0x319   : > { %8473 = vmatmul.mubr.f32.vlgmr.msra.gmra.mxu0 %v15203_v58  ;;  %8520 = vmatprep.subr.mxu1 %v15204_v20 }
 0x31a   : > { %8605 = vmatprep.subr.mxu0 %v15205_v1  ;;  %8368 = vmatmul.mubr.f32.gmra.mxu1 %v10833_v40  ;;  %10272 = vpow2.f32 %v9761_v60  ;;  %v14334_v48 = vpop.f32.mrf.mxu1 }
 0x31b   : > { %8522 = vmatpush1.msra.mxu1 %v14072_v10  ;;  %8609 = vmatpush1.msra.mxu0 %v15206_v3 }
 0x31c   : > { %8524 = vmatprep.subr.mxu1 %v14087_v49  ;;  %8613 = vmatprep.subr.mxu0 %v15207_v41  ;;  %v14362_v60 = vpop.f32.mrf.mxu1  ;;  %v14380_v41 = vand.u32 4294901760, %v323_v37 }
 0x31d   : > { %8478 = vmatprep.mubr.f32.mxu0 %v14862_v28  ;;  %8526 = vmatpush1.msra.mxu1 %v15208_v63 }
 0x31e   : > { %8617 = vmatpush1.msra.mxu0 %v15209_v2  ;;  %8528 = vmatprep.subr.mxu1 %v14106_v51  ;;  %v273_v2 = vld [vmem:[#allocation6 + $0xc0] sm:$0xff]  ;;  %v14408_v0 = vsub.f32 %v323_v37, %v14380_v41  ;;  %v6275_v37 = vadd.f32 %v14334_v48, %v14282_v52  ;;  %v14462_v48 = vld [vmem:[#allocation8 + $0x10] sm:$0xff] }
 0x31f   : > { %v10267_v7 = vpop.eup %10266  ;;  %8481 = vmatmul.mubr.f32.gmra.mxu0 %v15210_v57  ;;  %8621 = vmatprep.subr.mxu0 %v15211_v17  ;;  %v14307_v43 = vpop.f32.mrf.mxu0  ;;  %v14390_v17 = vsub.f32 %v348_v26, %v14357_v34 }
 0x320   : > { %8530 = vmatpush1.msra.mxu1 %v15212_v18  ;;  %8625 = vmatpush1.msra.mxu0 %v15213_v15  ;;  %9795 = vst [vmem:[%s12168_s24 + $0x70] sm:$0xff] %v10267_v7 }
 0x321   : > { %v10269_v8 = vpop.eup %10268  ;;  %8532 = vmatprep.subr.mxu1 %v14116_v47  ;;  %8629 = vmatprep.subr.mxu0 %v15214_v45 }
 0x322   : > { %8534 = vmatpush1.msra.mxu1 %v14140_v6  ;;  %8567 = vmatprep.mubr.f32.mxu1 %v14862_v28  ;;  %9796 = vst [vmem:[%s12168_s24 + $0x78] sm:$0xff] %v10269_v8 }
 0x323   : > { %8633 = vmatpush1.msra.mxu0 %v15215_v33  ;;  %8571 = vmatmul.mubr.f32.vlgmr.msra.gmra.mxu1 %v15216_v42 }
 0x324   : > { %8637 = vmatprep.subr.mxu0 %v15217_v32  ;;  %8730 = vmatprep.subr.mxu1 %v13978_v16  ;;  %v14417_v32 = vand.u32 4294901760, %v14390_v17 }
 0x325   : > { %v10271_v11 = vpop.eup %10270  ;;  %8641 = vmatpush1.msra.mxu0 %v15218_v44  ;;  %8732 = vmatpush1.msra.mxu1 %v13989_v21  ;;  %v373_v21 = vld [vmem:[#allocation6 + $0x3e0] sm:$0xff] }
 0x326   : > { %8645 = vmatprep.subr.mxu0 %v15219_v46  ;;  %8734 = vmatprep.subr.mxu1 %v13999_v24  ;;  %9820 = vst [vmem:[%s12168_s24 + $0x138] sm:$0xff] %v10271_v11  ;;  %v14328_v24 = vpop.f32.mrf.mxu0  ;;  %v14345_v54 = vand.u32 4294901760, %v373_v21  ;;  %v14374_v3 = vpop.f32.mrf.mxu1 }
 0x327   : > { %v10273_v16 = vpop.eup %10272  ;;  %8576 = vmatprep.mubr.f32.mxu1 %v14862_v28  ;;  %8649 = vmatpush1.msra.mxu0 %v15220_v4  ;;  %v8949_v4 = vsub.f32 %v14390_v17, %v14417_v32 }
 0x328   : > { %8736 = vmatpush1.msra.mxu1 %v14014_v29  ;;  %8653 = vmatprep.subr.mxu0 %v15221_v53  ;;  %9821 = vst [vmem:[%s12168_s24 + $0x140] sm:$0xff] %v10273_v16  ;;  %v15223_v29 = vand.u32 4294901760, %v14156_v13  ;;  %v14351_v13 = vand.u32 4294901760, %v14325_v55  ;;  %v14372_v1 = vsub.f32 %v373_v21, %v14345_v54  ;;  %v6283_v45 = vpop.f32.mrf.mxu1 }
 0x329   : > { %8580 = vmatmul.mubr.f32.gmra.mxu1 %v15222_v14  ;;  %8738 = vmatprep.subr.mxu1 %v14021_v36  ;;  %v15225_v36 = vand.u32 4294901760, %v14174_v59  ;;  %v14367_v59 = vand.u32 4294901760, %v14340_v62 }
 0x32a   : > { %8657 = vmatpush1.msra.mxu0 %v15223_v29  ;;  %8740 = vmatpush1.msra.mxu1 %v15200_v22  ;;  %v14353_v22 = vpop.f32.mrf.mxu0  ;;  %v14403_v8 = vand.u32 4294901760, %v14372_v1 }
 0x32b   : > { %8661 = vmatprep.subr.mxu0 %v15224_v38  ;;  %8742 = vmatprep.subr.mxu1 %v15201_v19  ;;  %v14360_v19 = vsub.f32 %v398_v27, %v14332_v25 }
 0x32c   : > { %8665 = vmatpush1.msra.mxu0 %v15225_v36  ;;  %8698 = vmatprep.mubr.f32.mxu0 %v14862_v28  ;;  %v14382_v7 = vpop.f32.mrf.mxu0 }
 0x32d   : > { %8744 = vmatpush1.msra.mxu1 %v15202_v5  ;;  %8700 = vmatmul.mubr.f32.vlgmr.msra.gmra.mxu0 %v10769_v9  ;;  %v298_v5 = vld [vmem:[#allocation6 + $0x188] sm:$0xff] }
 0x32e   : > { %8746 = vmatprep.subr.mxu1 %v15204_v20  ;;  %10018 = vmatprep.subr.mxu0 %v14305_v61  ;;  %v8921_v20 = vsub.f32 %v14325_v55, %v14351_v13  ;;  %v14396_v15 = vand.u32 4294901760, %v298_v5  ;;  %v14410_v33 = vpop.f32.mrf.mxu0 }
 0x32f   : > { %8748 = vmatpush1.msra.mxu1 %v14072_v10  ;;  %10019 = vmatpush3.msra.mxu0 %v14305_v61  ;;  %v14387_v10 = vand.u32 4294901760, %v14360_v19  ;;  %v6484_v11 = vpop.f32.mrf.mxu1 }
 0x330   : > { %8750 = vmatprep.subr.mxu1 %v14087_v49  ;;  %10020 = vmatprep.subr.mxu0 %v14315_v12  ;;  %v8928_v49 = vsub.f32 %v14340_v62, %v14367_v59  ;;  %v14422_v44 = vsub.f32 %v298_v5, %v14396_v15  ;;  %v6396_v27 = vpop.f32.mrf.mxu0  ;;  %v8950_v5 = vand.u32 4294901760, %v8949_v4 }
 0x331   : > { %8705 = vmatprep.mubr.f32.mxu0 %v14862_v28  ;;  %8752 = vmatpush1.msra.mxu1 %v15208_v63  ;;  %v14400_v63 = vand.u32 4294901760, %v273_v2  ;;  %v8935_v56 = vsub.f32 %v14360_v19, %v14387_v10  ;;  %v6486_v53 = vpop.f32.mrf.mxu1 }
 0x332   : > { %10021 = vmatpush3.msra.mxu0 %v14315_v12  ;;  %8754 = vmatprep.subr.mxu1 %v14106_v51  ;;  %v8922_v51 = vand.u32 4294901760, %v8921_v20  ;;  %v14440_v21 = vand.u32 4294901760, %v14422_v44 }
 0x333   : > { %8707 = vmatmul.mubr.f32.gmra.mxu0 %v10833_v40  ;;  %10022 = vmatprep.subr.mxu0 %v14332_v25  ;;  %v14429_v46 = vsub.f32 %v273_v2, %v14400_v63  ;;  %v8936_v16 = vand.u32 4294901760, %v8935_v56  ;;  %v6277_v2 = vadd.f32 %v14362_v60, %v14297_v31 }
 0x334   : > { %8756 = vmatpush1.msra.mxu1 %v15212_v18  ;;  %10023 = vmatpush3.msra.mxu0 %v14332_v25  ;;  %v8929_v18 = vand.u32 4294901760, %v8928_v49  ;;  %v8963_v20 = vsub.f32 %v14422_v44, %v14440_v21  ;;  %v6387_v49 = vadd.f32 %v14353_v22, %v6275_v37  ;;  %v6284_v22 = vadd.f32 %v6283_v45, %v14328_v24  ;;  %v15226_v37 = vld [vmem:[#allocation22_spill] sm:$0xff] }
 0x335   : > { %8758 = vmatprep.subr.mxu1 %v14116_v47  ;;  %10024 = vmatprep.subr.mxu0 %v14345_v54  ;;  %v8942_v47 = vsub.f32 %v14372_v1, %v14403_v8  ;;  %v14445_v38 = vand.u32 4294901760, %v14429_v46  ;;  %v6389_v31 = vadd.f32 %v14382_v7, %v6277_v2 }
 0x336   : > { %8760 = vmatpush1.msra.mxu1 %v14140_v6  ;;  %8793 = vmatprep.mubr.f32.mxu1 %v14862_v28  ;;  %v14433_v6 = vand.u32 4294901760, %v14408_v0  ;;  %v6485_v60 = vadd.f32 %v6484_v11, %v6387_v49 }
 0x337   : > { %10025 = vmatpush3.msra.mxu0 %v14345_v54  ;;  %8795 = vmatmul.mubr.f32.vlgmr.msra.gmra.mxu1 %v10769_v9  ;;  %v8943_v26 = vand.u32 4294901760, %v8942_v47  ;;  %v8970_v52 = vsub.f32 %v14429_v46, %v14445_v38  ;;  %v6487_v4 = vadd.f32 %v6486_v53, %v6389_v31  ;;  %v6397_v53 = vadd.f32 %v6396_v27, %v6284_v22 }
 0x338   : > { %10026 = vmatprep.subr.mxu0 %v14357_v34  ;;  %10037 = vmatprep.subr.mxu1 %v8922_v51  ;;  %v8956_v36 = vsub.f32 %v14408_v0, %v14433_v6 }
 0x339   : > { %10027 = vmatpush3.msra.mxu0 %v14357_v34  ;;  %10038 = vmatpush3.msra.mxu1 %v8922_v51  ;;  %v6613_v29 = vpop.f32.mrf.mxu0  ;;  %v8971_v24 = vand.u32 4294901760, %v8970_v52 }
 0x33a   : > { %10028 = vmatprep.subr.mxu0 %v14380_v41  ;;  %10039 = vmatprep.subr.mxu1 %v8929_v18  ;;  %v8957_v56 = vand.u32 4294901760, %v8956_v36 }
 0x33b   : > { %8800 = vmatprep.mubr.f32.mxu1 %v14862_v28  ;;  %10029 = vmatpush3.msra.mxu0 %v14380_v41  ;;  %v6493_v28 = vpop.f32.mrf.mxu1  ;;  %v6615_v51 = vpop.f32.mrf.mxu0 }
 0x33c   : > { %10040 = vmatpush3.msra.mxu1 %v8929_v18  ;;  %10030 = vmatprep.subr.mxu0 %v14396_v15  ;;  %v6282_v18 = vadd.f32 %v14374_v3, %v14307_v43  ;;  %v9463_v43 = vrot.slane %v14462_v48, %v15226_v37  ;;  %v6616_v45 = vadd.f32 %v6615_v51, %v6487_v4 }
 0x33d   : > { %8802 = vmatmul.mubr.f32.gmra.mxu1 %v10833_v40  ;;  %10041 = vmatprep.subr.mxu1 %v8936_v16  ;;  %v6495_v47 = vpop.f32.mrf.mxu1 }
 0x33e   : > { %10031 = vmatpush3.msra.mxu0 %v14396_v15  ;;  %10042 = vmatpush3.msra.mxu1 %v8936_v16  ;;  %v8964_v16 = vand.u32 4294901760, %v8963_v20  ;;  %v6496_v49 = vadd.f32 %v6495_v47, %v6397_v53  ;;  %v15228_v53 = vld [vmem:[#allocation27_spill] sm:$0xff] }
 0x33f   : > { %10032 = vmatprep.subr.mxu0 %v14400_v63  ;;  %10043 = vmatprep.subr.mxu1 %v8943_v26  ;;  %v6620_v36 = vpop.f32.mrf.mxu0 }
 0x340   : > { %10033 = vmatpush3.msra.mxu0 %v14400_v63  ;;  %10044 = vmatpush3.msra.mxu1 %v8943_v26  ;;  %v6614_v26 = vadd.f32 %v6613_v29, %v6485_v60 }
 0x341   : > { %10034 = vmatprep.mubr.f32.mxu0 %v10835_v23  ;;  %10045 = vmatprep.subr.mxu1 %v8950_v5  ;;  %v15227_v23 = vld [vmem:[#allocation23_spill] sm:$0xff] }
 0x342   : > { %10056 = vmatprep.subr.mxu0 %v14325_v55  ;;  %10035 = vmatmul.mubr.f32.vlgmr.msra.gmra.mxu0 %v10869_v30  ;;  %v9467_v7 = vrot.slane %v14462_v48, %v15227_v23  ;;  %v6395_v30 = vadd.f32 %v14410_v33, %v6282_v18 }
 0x343   : > { %10046 = vmatpush3.msra.mxu1 %v8950_v5  ;;  %10057 = vmatpush3.msra.mxu0 %v14325_v55  ;;  %v6708_v3 = vpop.f32.mrf.mxu1  ;;  %v6622_v5 = vpop.f32.mrf.mxu0 }
 0x344   : > { %10047 = vmatprep.subr.mxu1 %v8957_v56  ;;  %10058 = vmatprep.subr.mxu0 %v14340_v62  ;;  %v6709_v11 = vadd.f32 %v6708_v3, %v6614_v26  ;;  %v6494_v55 = vadd.f32 %v6493_v28, %v6395_v30  ;;  %v6623_v27 = vadd.f32 %v6622_v5, %v6496_v49  ;;  %v15229_v49 = vld [vmem:[#allocation28_spill] sm:$0xff] }
 0x345   : > { %10048 = vmatpush3.msra.mxu1 %v8957_v56  ;;  %10059 = vmatpush3.msra.mxu0 %v14340_v62  ;;  %v6710_v29 = vpop.f32.mrf.mxu1 }
 0x346   : > { %10049 = vmatprep.subr.mxu1 %v8964_v16  ;;  %10060 = vmatprep.subr.mxu0 %v14360_v19  ;;  %v9537_v20 = vsub.f32 %v6709_v11, %v9463_v43  ;;  %v6711_v2 = vadd.f32 %v6710_v29, %v6616_v45  ;;  %v6621_v33 = vadd.f32 %v6620_v36, %v6494_v55 }
 0x347   : > { %10050 = vmatpush3.msra.mxu1 %v8964_v16  ;;  %10061 = vmatpush3.msra.mxu0 %v14360_v19 }
 0x348   : > { %10051 = vmatprep.subr.mxu1 %v8971_v24  ;;  %10062 = vmatprep.subr.mxu0 %v14372_v1  ;;  %v9597_v51 = vmul.f32 %v12018_v39, %v9537_v20  ;;  %v9538_v62 = vsub.f32 %v6711_v2, %v9467_v7 }
 0x349   : > { %10052 = vmatpush3.msra.mxu1 %v8971_v24  ;;  %10053 = vmatprep.mubr.f32.mxu1 %v10769_v9  ;;  %v6715_v52 = vpop.f32.mrf.mxu1 }
 0x34a   : > { %10063 = vmatpush3.msra.mxu0 %v14372_v1  ;;  %10054 = vmatmul.mubr.f32.vlgmr.msra.gmra.mxu1 %v10833_v40  ;;  %v9647_v28 = vmul.f32 %v9597_v51, %v9537_v20  ;;  %v9598_v19 = vmul.f32 %v12018_v39, %v9538_v62  ;;  %v6716_v56 = vadd.f32 %v6715_v52, %v6621_v33 }
 0x34b   : > { %10064 = vmatprep.subr.mxu0 %v14390_v17  ;;  %10075 = vmatprep.subr.mxu1 %v14305_v61  ;;  %v6717_v18 = vpop.f32.mrf.mxu1  ;;  %v9475_v33 = vrot.slane %v14462_v48, %v15229_v49 }
 0x34c   : > { %10065 = vmatpush3.msra.mxu0 %v14390_v17  ;;  %10076 = vmatpush3.msra.mxu1 %v14305_v61  ;;  %v9713_v31 = vmul.f32 1.442695, %v9647_v28  ;;  %v9648_v60 = vmul.f32 %v9598_v19, %v9538_v62  ;;  %v9562_v22 = vsub.f32 %v6716_v56, %v9463_v43  ;;  %v6718_v47 = vadd.f32 %v6717_v18, %v6623_v27 }
 0x34d   : > { %10066 = vmatprep.subr.mxu0 %v14408_v0  ;;  %10077 = vmatprep.subr.mxu1 %v14315_v12 }
 0x34e   : > { %10067 = vmatpush3.msra.mxu0 %v14408_v0  ;;  %10078 = vmatpush3.msra.mxu1 %v14315_v12  ;;  %10274 = vpow2.f32 %v9713_v31  ;;  %v9715_v1 = vmul.f32 1.442695, %v9648_v60  ;;  %v9622_v16 = vmul.f32 %v12018_v39, %v9562_v22  ;;  %v9563_v4 = vsub.f32 %v6718_v47, %v9467_v7 }
 0x34f   : > { %10068 = vmatprep.subr.mxu0 %v14422_v44  ;;  %10079 = vmatprep.subr.mxu1 %v14332_v25 }
 0x350   : > { %10069 = vmatpush3.msra.mxu0 %v14422_v44  ;;  %10080 = vmatpush3.msra.mxu1 %v14332_v25  ;;  %10276 = vpow2.f32 %v9715_v1  ;;  %v9672_v17 = vmul.f32 %v9622_v16, %v9562_v22  ;;  %v9623_v26 = vmul.f32 %v12018_v39, %v9563_v4 }
 0x351   : > { %10070 = vmatprep.subr.mxu0 %v14429_v46  ;;  %10081 = vmatprep.subr.mxu1 %v14345_v54 }
 0x352   : > { %10071 = vmatpush3.msra.mxu0 %v14429_v46  ;;  %10072 = vmatprep.mubr.f32.mxu0 %v15203_v58  ;;  %v9763_v0 = vmul.f32 1.442695, %v9672_v17  ;;  %v9673_v36 = vmul.f32 %v9623_v26, %v9563_v4 }
 0x353   : > { %10082 = vmatpush3.msra.mxu1 %v14345_v54  ;;  %10073 = vmatmul.mubr.f32.vlgmr.msra.gmra.mxu0 %v15210_v57  ;;  %v6807_v57 = vpop.f32.mrf.mxu0 }
 0x354   : > { %10083 = vmatprep.subr.mxu1 %v14357_v34  ;;  %10094 = vmatprep.subr.mxu0 %v14351_v13  ;;  %10278 = vpow2.f32 %v9763_v0  ;;  %v9765_v44 = vmul.f32 1.442695, %v9673_v36 }
 0x355   : > { %10084 = vmatpush3.msra.mxu1 %v14357_v34  ;;  %10095 = vmatpush3.msra.mxu0 %v14351_v13 }
 0x356   : > { %10085 = vmatprep.subr.mxu1 %v14380_v41  ;;  %10096 = vmatprep.subr.mxu0 %v14367_v59  ;;  %10280 = vpow2.f32 %v9765_v44 }
 0x357   : > { %10086 = vmatpush3.msra.mxu1 %v14380_v41  ;;  %10097 = vmatpush3.msra.mxu0 %v14367_v59 }
 0x358   : > { %10087 = vmatprep.subr.mxu1 %v14396_v15  ;;  %10098 = vmatprep.subr.mxu0 %v14387_v10 }
 0x359   : > { %10088 = vmatpush3.msra.mxu1 %v14396_v15  ;;  %10099 = vmatpush3.msra.mxu0 %v14387_v10 }
 0x35a   : > { %10089 = vmatprep.subr.mxu1 %v14400_v63  ;;  %10100 = vmatprep.subr.mxu0 %v14403_v8 }
 0x35b   : > { %v10275_v58 = vpop.eup %10274  ;;  %10090 = vmatpush3.msra.mxu1 %v14400_v63  ;;  %10091 = vmatprep.mubr.f32.mxu1 %v15216_v42  ;;  %v6809_v42 = vpop.f32.mrf.mxu0 }
 0x35c   : > { %10101 = vmatpush3.msra.mxu0 %v14403_v8  ;;  %10092 = vmatmul.mubr.f32.vlgmr.msra.gmra.mxu1 %v15222_v14  ;;  %9797 = vst [vmem:[%s12168_s24 + $0x80] sm:$0xff] %v10275_v58 }
 0x35d   : > { %v10277_v13 = vpop.eup %10276  ;;  %10102 = vmatprep.subr.mxu0 %v14417_v32  ;;  %10113 = vmatprep.subr.mxu1 %v14305_v61  ;;  %v6818_v59 = vpop.f32.mrf.mxu0 }
 0x35e   : > { %10103 = vmatpush3.msra.mxu0 %v14417_v32  ;;  %10114 = vmatpush3.msra.mxu1 %v14305_v61  ;;  %9798 = vst [vmem:[%s12168_s24 + $0x88] sm:$0xff] %v10277_v13 }
 0x35f   : > { %10104 = vmatprep.subr.mxu0 %v14433_v6  ;;  %10115 = vmatprep.subr.mxu1 %v14315_v12  ;;  %v6820_v10 = vpop.f32.mrf.mxu0 }
 0x360   : > { %10105 = vmatpush3.msra.mxu0 %v14433_v6  ;;  %10116 = vmatpush3.msra.mxu1 %v14315_v12  ;;  %v6970_v12 = vpop.f32.mrf.mxu1 }
 0x361   : > { %v10279_v14 = vpop.eup %10278  ;;  %10106 = vmatprep.subr.mxu0 %v14440_v21  ;;  %10117 = vmatprep.subr.mxu1 %v14332_v25  ;;  %v7082_v8 = vpop.f32.mrf.mxu0 }
 0x362   : > { %10107 = vmatpush3.msra.mxu0 %v14440_v21  ;;  %10118 = vmatpush3.msra.mxu1 %v14332_v25  ;;  %9822 = vst [vmem:[%s12168_s24 + $0x148] sm:$0xff] %v10279_v14  ;;  %v6972_v25 = vpop.f32.mrf.mxu1 }
 0x363   : > { %v10281_v61 = vpop.eup %10280  ;;  %10108 = vmatprep.subr.mxu0 %v14445_v38  ;;  %10119 = vmatprep.subr.mxu1 %v14345_v54  ;;  %v7084_v32 = vpop.f32.mrf.mxu0  ;;  %v6973_v43 = vadd.f32 %v6972_v25, %v6809_v42 }
 0x364   : > { %10109 = vmatpush3.msra.mxu0 %v14445_v38  ;;  %10110 = vmatprep.mubr.f32.mxu0 %v10769_v9  ;;  %9823 = vst [vmem:[%s12168_s24 + $0x150] sm:$0xff] %v10281_v61  ;;  %v6971_v38 = vadd.f32 %v6970_v12, %v6807_v57 }
 0x365   : > { %10120 = vmatpush3.msra.mxu1 %v14345_v54  ;;  %10111 = vmatmul.mubr.f32.vlgmr.msra.gmra.mxu0 %v10833_v40  ;;  %v6977_v54 = vpop.f32.mrf.mxu1  ;;  %v7085_v7 = vadd.f32 %v7084_v32, %v6973_v43 }
 0x366   : > { %10121 = vmatprep.subr.mxu1 %v14357_v34  ;;  %10129 = vmatprep.mubr.f32.mxu1 %v10769_v9  ;;  %v7083_v3 = vadd.f32 %v7082_v8, %v6971_v38 }
 0x367   : > { %10122 = vmatpush3.msra.mxu1 %v14357_v34  ;;  %v6979_v9 = vpop.f32.mrf.mxu1  ;;  %v7090_v34 = vpop.f32.mrf.mxu0 }
 0x368   : > { %10123 = vmatprep.subr.mxu1 %v14380_v41  ;;  %v6980_v45 = vadd.f32 %v6979_v9, %v6820_v10 }
 0x369   : > { %10124 = vmatpush3.msra.mxu1 %v14380_v41  ;;  %v7092_v6 = vpop.f32.mrf.mxu0 }
 0x36a   : > { %10125 = vmatprep.subr.mxu1 %v14396_v15  ;;  %v7093_v62 = vadd.f32 %v7092_v6, %v6980_v45 }
 0x36b   : > { %10126 = vmatpush3.msra.mxu1 %v14396_v15  ;;  %v7180_v46 = vpop.f32.mrf.mxu1  ;;  %v6978_v15 = vadd.f32 %v6977_v54, %v6818_v59 }
 0x36c   : > { %10127 = vmatprep.subr.mxu1 %v14400_v63  ;;  %v7181_v24 = vadd.f32 %v7180_v46, %v7083_v3 }
 0x36d   : > { %10128 = vmatpush3.msra.mxu1 %v14400_v63  ;;  %v7182_v21 = vpop.f32.mrf.mxu1  ;;  %v7091_v5 = vadd.f32 %v7090_v34, %v6978_v15 }
 0x36e   : > { %10130 = vmatmul.mubr.f32.vlgmr.msra.gmra.mxu1 %v10833_v40  ;;  %v7183_v63 = vadd.f32 %v7182_v21, %v7085_v7  ;;  %v9471_v40 = vrot.slane %v14462_v48, %v15228_v53 }
 0x371   : > { %v7189_v37 = vpop.f32.mrf.mxu1 }
 0x372   : > { %v7190_v27 = vadd.f32 %v7189_v37, %v7091_v5 }
 0x373   : > { %v7191_v30 = vpop.f32.mrf.mxu1 }
 0x374   : > { %v7192_v56 = vadd.f32 %v7191_v30, %v7093_v62 }
 0x375   : > { %v7309_v41 = vpop.f32.mrf.mxu0 }
 0x376   : > { %v7310_v11 = vadd.f32 %v7309_v41, %v7181_v24 }
 0x377   : > { %v7311_v23 = vpop.f32.mrf.mxu0 }
 0x378   : > { %v7312_v20 = vadd.f32 %v7311_v23, %v7183_v63 }
 0x37b   : > { %v7316_v29 = vpop.f32.mrf.mxu0 }
 0x37c   : > { %v7317_v18 = vadd.f32 %v7316_v29, %v7190_v27 }
 0x37d   : > { %v7318_v19 = vpop.f32.mrf.mxu0 }
 0x37e   : > { %v7319_v47 = vadd.f32 %v7318_v19, %v7192_v56  ;;  %v15231_v56 = vld [vmem:[#allocation29_spill] sm:$0xff] }
 0x37f   : > { %v7404_v55 = vpop.f32.mrf.mxu1 }
 0x380   : > { %v7405_v2 = vadd.f32 %v7404_v55, %v7310_v11 }
 0x381   : > { %v7406_v51 = vpop.f32.mrf.mxu1 }
 0x382   : > { %v9539_v52 = vsub.f32 %v7405_v2, %v9471_v40  ;;  %v7407_v28 = vadd.f32 %v7406_v51, %v7312_v20 }
 0x384   : > { %v9599_v31 = vmul.f32 %v12018_v39, %v9539_v52  ;;  %v9540_v60 = vsub.f32 %v7407_v28, %v9475_v33 }
 0x385   : > { %v7411_v22 = vpop.f32.mrf.mxu1 }
 0x386   : > { %v9649_v1 = vmul.f32 %v9599_v31, %v9539_v52  ;;  %v9600_v16 = vmul.f32 %v12018_v39, %v9540_v60  ;;  %v7412_v4 = vadd.f32 %v7411_v22, %v7317_v18  ;;  %v9483_v18 = vrot.slane %v14462_v48, %v15231_v56 }
 0x387   : > { %v7413_v17 = vpop.f32.mrf.mxu1 }
 0x388   : > { %v9717_v26 = vmul.f32 1.442695, %v9649_v1  ;;  %v9650_v0 = vmul.f32 %v9600_v16, %v9540_v60  ;;  %v9564_v36 = vsub.f32 %v7412_v4, %v9471_v40  ;;  %v7414_v44 = vadd.f32 %v7413_v17, %v7319_v47 }
 0x38a   : > { %10282 = vpow2.f32 %v9717_v26  ;;  %v9719_v58 = vmul.f32 1.442695, %v9650_v0  ;;  %v9624_v57 = vmul.f32 %v12018_v39, %v9564_v36  ;;  %v9565_v13 = vsub.f32 %v7414_v44, %v9475_v33  ;;  %v7503_v25 = vpop.f32.mrf.mxu0  ;;  %v15230_v33 = vld [vmem:[#allocation26_spill] sm:$0xff] }
 0x38b   : > { %v9479_v51 = vrot.slane %v14462_v48, %v15230_v33 }
 0x38c   : > { %10284 = vpow2.f32 %v9719_v58  ;;  %v9674_v42 = vmul.f32 %v9624_v57, %v9564_v36  ;;  %v9625_v14 = vmul.f32 %v12018_v39, %v9565_v13  ;;  %v7505_v54 = vpop.f32.mrf.mxu0 }
 0x38e   : > { %v9767_v59 = vmul.f32 1.442695, %v9674_v42  ;;  %v9675_v61 = vmul.f32 %v9625_v14, %v9565_v13 }
 0x390   : > { %10286 = vpow2.f32 %v9767_v59  ;;  %v9769_v12 = vmul.f32 1.442695, %v9675_v61 }
 0x392   : > { %10288 = vpow2.f32 %v9769_v12  ;;  %v7666_v46 = vpop.f32.mrf.mxu1 }
 0x393   : > { %v7667_v30 = vadd.f32 %v7666_v46, %v7503_v25 }
 0x394   : > { %v7668_v21 = vpop.f32.mrf.mxu1 }
 0x395   : > { %v7669_v63 = vadd.f32 %v7668_v21, %v7505_v54 }
 0x397   : > { %v10283_v10 = vpop.eup %10282  ;;  %v7514_v9 = vpop.f32.mrf.mxu0 }
 0x398   : > { %9799 = vst [vmem:[%s12168_s24 + $0x90] sm:$0xff] %v10283_v10 }
 0x399   : > { %v10285_v8 = vpop.eup %10284  ;;  %v7516_v6 = vpop.f32.mrf.mxu0 }
 0x39a   : > { %9800 = vst [vmem:[%s12168_s24 + $0x98] sm:$0xff] %v10285_v8 }
 0x39d   : > { %v10287_v32 = vpop.eup %10286  ;;  %v7778_v41 = vpop.f32.mrf.mxu0 }
 0x39e   : > { %9824 = vst [vmem:[%s12168_s24 + $0x158] sm:$0xff] %v10287_v32  ;;  %v7673_v38 = vpop.f32.mrf.mxu1  ;;  %v7779_v11 = vadd.f32 %v7778_v41, %v7667_v30 }
 0x39f   : > { %v10289_v34 = vpop.eup %10288  ;;  %v7780_v37 = vpop.f32.mrf.mxu0  ;;  %v7674_v40 = vadd.f32 %v7673_v38, %v7514_v9 }
 0x3a0   : > { %9825 = vst [vmem:[%s12168_s24 + $0x160] sm:$0xff] %v10289_v34  ;;  %v7675_v43 = vpop.f32.mrf.mxu1  ;;  %v7781_v29 = vadd.f32 %v7780_v37, %v7669_v63 }
 0x3a1   : > { %v7676_v20 = vadd.f32 %v7675_v43, %v7516_v6 }
 0x3a3   : > { %v7786_v3 = vpop.f32.mrf.mxu0 }
 0x3a4   : > { %v7787_v52 = vadd.f32 %v7786_v3, %v7674_v40 }
 0x3a5   : > { %v7788_v15 = vpop.f32.mrf.mxu0 }
 0x3a6   : > { %v7789_v60 = vadd.f32 %v7788_v15, %v7676_v20 }
 0x3a7   : > { %v7876_v23 = vpop.f32.mrf.mxu1 }
 0x3a8   : > { %v7877_v55 = vadd.f32 %v7876_v23, %v7779_v11 }
 0x3a9   : > { %v7878_v7 = vpop.f32.mrf.mxu1 }
 0x3aa   : > { %v7879_v2 = vadd.f32 %v7878_v7, %v7781_v29 }
 0x3ad   : > { %v7885_v45 = vpop.f32.mrf.mxu1 }
 0x3ae   : > { %v7886_v22 = vadd.f32 %v7885_v45, %v7787_v52 }
 0x3af   : > { %v7887_v5 = vpop.f32.mrf.mxu1 }
 0x3b0   : > { %v7888_v4 = vadd.f32 %v7887_v5, %v7789_v60 }
 0x3b1   : > { %v8005_v24 = vpop.f32.mrf.mxu0 }
 0x3b2   : > { %v8006_v49 = vadd.f32 %v8005_v24, %v7877_v55 }
 0x3b3   : > { %v8007_v53 = vpop.f32.mrf.mxu0 }
 0x3b4   : > { %v8008_v28 = vadd.f32 %v8007_v53, %v7879_v2 }
 0x3b7   : > { %v8012_v62 = vpop.f32.mrf.mxu0 }
 0x3b8   : > { %v8013_v17 = vadd.f32 %v8012_v62, %v7886_v22 }
 0x3b9   : > { %v8014_v16 = vpop.f32.mrf.mxu0 }
 0x3ba   : > { %v8015_v44 = vadd.f32 %v8014_v16, %v7888_v4  ;;  %v9491_v16 = vrot.slane %v14462_v48, %v15199_v50 }
 0x3bb   : > { %v8100_v27 = vpop.f32.mrf.mxu1 }
 0x3bc   : > { %v8101_v19 = vadd.f32 %v8100_v27, %v8006_v49 }
 0x3bd   : > { %v8102_v31 = vpop.f32.mrf.mxu1 }
 0x3be   : > { %v9541_v47 = vsub.f32 %v8101_v19, %v9479_v51  ;;  %v8103_v1 = vadd.f32 %v8102_v31, %v8008_v28 }
 0x3c0   : > { %v9601_v26 = vmul.f32 %v12018_v39, %v9541_v47  ;;  %v9542_v0 = vsub.f32 %v8103_v1, %v9483_v18 }
 0x3c1   : > { %v8107_v36 = vpop.f32.mrf.mxu1 }
 0x3c2   : > { %v9651_v58 = vmul.f32 %v9601_v26, %v9541_v47  ;;  %v9602_v57 = vmul.f32 %v12018_v39, %v9542_v0  ;;  %v8108_v13 = vadd.f32 %v8107_v36, %v8013_v17 }
 0x3c3   : > { %v8109_v42 = vpop.f32.mrf.mxu1 }
 0x3c4   : > { %v9721_v14 = vmul.f32 1.442695, %v9651_v58  ;;  %v9652_v59 = vmul.f32 %v9602_v57, %v9542_v0  ;;  %v9566_v61 = vsub.f32 %v8108_v13, %v9479_v51  ;;  %v8110_v12 = vadd.f32 %v8109_v42, %v8015_v44 }
 0x3c6   : > { %10290 = vpow2.f32 %v9721_v14  ;;  %v9723_v10 = vmul.f32 1.442695, %v9652_v59  ;;  %v9626_v25 = vmul.f32 %v12018_v39, %v9566_v61  ;;  %v9567_v8 = vsub.f32 %v8110_v12, %v9483_v18  ;;  %v8199_v21 = vpop.f32.mrf.mxu0 }
 0x3c7   : > { %v9487_v18 = vrot.slane %v14462_v48, %v15198_v35 }
 0x3c8   : > { %10292 = vpow2.f32 %v9723_v10  ;;  %v9676_v54 = vmul.f32 %v9626_v25, %v9566_v61  ;;  %v9627_v32 = vmul.f32 %v12018_v39, %v9567_v8  ;;  %v8201_v38 = vpop.f32.mrf.mxu0 }
 0x3ca   : > { %v9771_v9 = vmul.f32 1.442695, %v9676_v54  ;;  %v9677_v34 = vmul.f32 %v9627_v32, %v9567_v8 }
 0x3cc   : > { %10294 = vpow2.f32 %v9771_v9  ;;  %v9773_v46 = vmul.f32 1.442695, %v9677_v34 }
 0x3ce   : > { %10296 = vpow2.f32 %v9773_v46  ;;  %v8362_v23 = vpop.f32.mrf.mxu1 }
 0x3cf   : > { %v8363_v5 = vadd.f32 %v8362_v23, %v8199_v21 }
 0x3d0   : > { %v8364_v7 = vpop.f32.mrf.mxu1 }
 0x3d1   : > { %v8365_v2 = vadd.f32 %v8364_v7, %v8201_v38 }
 0x3d3   : > { %v10291_v6 = vpop.eup %10290  ;;  %v8210_v43 = vpop.f32.mrf.mxu0 }
 0x3d4   : > { %9801 = vst [vmem:[%s12168_s24 + $0xa0] sm:$0xff] %v10291_v6 }
 0x3d5   : > { %v10293_v41 = vpop.eup %10292  ;;  %v8212_v15 = vpop.f32.mrf.mxu0 }
 0x3d6   : > { %9802 = vst [vmem:[%s12168_s24 + $0xa8] sm:$0xff] %v10293_v41 }
 0x3d9   : > { %v10295_v37 = vpop.eup %10294  ;;  %v8474_v24 = vpop.f32.mrf.mxu0 }
 0x3da   : > { %9826 = vst [vmem:[%s12168_s24 + $0x168] sm:$0xff] %v10295_v37  ;;  %v8369_v30 = vpop.f32.mrf.mxu1  ;;  %v8475_v49 = vadd.f32 %v8474_v24, %v8363_v5 }
 0x3db   : > { %v10297_v3 = vpop.eup %10296  ;;  %v8476_v45 = vpop.f32.mrf.mxu0  ;;  %v8370_v51 = vadd.f32 %v8369_v30, %v8210_v43 }
 0x3dc   : > { %9827 = vst [vmem:[%s12168_s24 + $0x170] sm:$0xff] %v10297_v3  ;;  %v8371_v63 = vpop.f32.mrf.mxu1  ;;  %v8477_v62 = vadd.f32 %v8476_v45, %v8365_v2 }
 0x3dd   : > { %v8372_v28 = vadd.f32 %v8371_v63, %v8212_v15 }
 0x3df   : > { %v8482_v11 = vpop.f32.mrf.mxu0 }
 0x3e0   : > { %v8483_v22 = vadd.f32 %v8482_v11, %v8370_v51 }
 0x3e1   : > { %v8484_v40 = vpop.f32.mrf.mxu0 }
 0x3e2   : > { %v8485_v17 = vadd.f32 %v8484_v40, %v8372_v28 }
 0x3e3   : > { %v8572_v53 = vpop.f32.mrf.mxu1 }
 0x3e4   : > { %v8573_v27 = vadd.f32 %v8572_v53, %v8475_v49 }
 0x3e5   : > { %v8574_v29 = vpop.f32.mrf.mxu1 }
 0x3e6   : > { %v8575_v19 = vadd.f32 %v8574_v29, %v8477_v62  ;;  %v9950_v62 = vld [vmem:[#allocation8 + $0x18] ss:$0 sm:$0xff] }
 0x3e9   : > { %v8581_v20 = vpop.f32.mrf.mxu1 }
 0x3ea   : > { %v8582_v26 = vadd.f32 %v8581_v20, %v8483_v22 }
 0x3eb   : > { %v8583_v52 = vpop.f32.mrf.mxu1 }
 0x3ec   : > { %v8584_v58 = vadd.f32 %v8583_v52, %v8485_v17 }
 0x3ed   : > { %v8701_v55 = vpop.f32.mrf.mxu0 }
 0x3ee   : > { %v8702_v56 = vadd.f32 %v8701_v55, %v8573_v27 }
 0x3ef   : > { %v8703_v33 = vpop.f32.mrf.mxu0 }
 0x3f0   : > { %v8704_v47 = vadd.f32 %v8703_v33, %v8575_v19 }
 0x3f3   : > { %v8708_v31 = vpop.f32.mrf.mxu0 }
 0x3f4   : > { %v8709_v57 = vadd.f32 %v8708_v31, %v8582_v26 }
 0x3f5   : > { %v8710_v44 = vpop.f32.mrf.mxu0 }
 0x3f6   : > { %v8711_v14 = vadd.f32 %v8710_v44, %v8584_v58 }
 0x3f7   : > { %v8796_v60 = vpop.f32.mrf.mxu1 }
 0x3f8   : > { %v8797_v1 = vadd.f32 %v8796_v60, %v8702_v56 }
 0x3f9   : > { %v8798_v4 = vpop.f32.mrf.mxu1 }
 0x3fa   : > { %v9543_v0 = vsub.f32 %v8797_v1, %v9487_v18  ;;  %v8799_v36 = vadd.f32 %v8798_v4, %v8704_v47 }
 0x3fc   : > { %v9603_v13 = vmul.f32 %v12018_v39, %v9543_v0  ;;  %v9544_v42 = vsub.f32 %v8799_v36, %v9491_v16 }
 0x3fd   : > { %v8803_v35 = vpop.f32.mrf.mxu1 }
 0x3fe   : > { %v9653_v59 = vmul.f32 %v9603_v13, %v9543_v0  ;;  %v9604_v61 = vmul.f32 %v12018_v39, %v9544_v42  ;;  %v8804_v12 = vadd.f32 %v8803_v35, %v8709_v57 }
 0x3ff   : > { %v8805_v10 = vpop.f32.mrf.mxu1 }
 0x400   : > { %v9725_v25 = vmul.f32 1.442695, %v9653_v59  ;;  %v9654_v50 = vmul.f32 %v9604_v61, %v9544_v42  ;;  %v9568_v48 = vsub.f32 %v8804_v12, %v9487_v18  ;;  %v8806_v8 = vadd.f32 %v8805_v10, %v8711_v14 }
 0x402   : > { %10298 = vpow2.f32 %v9725_v25  ;;  %v9727_v54 = vmul.f32 1.442695, %v9654_v50  ;;  %v9628_v32 = vmul.f32 %v12018_v39, %v9568_v48  ;;  %v9569_v9 = vsub.f32 %v8806_v8, %v9491_v16  ;;  %v10036_v23 = vpop.f32.mrf.mxu0 }
 0x404   : > { %10300 = vpow2.f32 %v9727_v54  ;;  %v9678_v34 = vmul.f32 %v9628_v32, %v9568_v48  ;;  %v9629_v46 = vmul.f32 %v12018_v39, %v9569_v9  ;;  %v8887_v15 = vpop.f32.mrf.mxu0 }
 0x406   : > { %v9775_v6 = vmul.f32 1.442695, %v9678_v34  ;;  %v9679_v21 = vmul.f32 %v9629_v46, %v9569_v9 }
 0x408   : > { %10302 = vpow2.f32 %v9775_v6  ;;  %v9777_v41 = vmul.f32 1.442695, %v9679_v21 }
 0x40a   : > { %10304 = vpow2.f32 %v9777_v41  ;;  %v10055_v7 = vpop.f32.mrf.mxu1 }
 0x40b   : > { %v9015_v11 = vadd.f32 %v10055_v7, %v10036_v23 }
 0x40c   : > { %v9008_v30 = vpop.f32.mrf.mxu1 }
 0x40d   : > { %v9009_v40 = vadd.f32 %v9008_v30, %v8887_v15 }
 0x40f   : > { %v10299_v38 = vpop.eup %10298 }
 0x410   : > { %9803 = vst [vmem:[%s12168_s24 + $0xb0] sm:$0xff] %v10299_v38 }
 0x411   : > { %v10301_v37 = vpop.eup %10300 }
 0x412   : > { %9804 = vst [vmem:[%s12168_s24 + $0xb8] sm:$0xff] %v10301_v37 }
 0x413   : > { %v10074_v24 = vpop.f32.mrf.mxu0 }
 0x414   : > { %v9110_v29 = vadd.f32 %v10074_v24, %v9015_v11 }
 0x415   : > { %v10303_v43 = vpop.eup %10302  ;;  %v9102_v45 = vpop.f32.mrf.mxu0 }
 0x416   : > { %9828 = vst [vmem:[%s12168_s24 + $0x178] sm:$0xff] %v10303_v43  ;;  %v9103_v5 = vadd.f32 %v9102_v45, %v9009_v40 }
 0x417   : > { %v10305_v3 = vpop.eup %10304 }
 0x418   : > { %9829 = vst [vmem:[%s12168_s24 + $0x180] sm:$0xff] %v10305_v3 }
 0x41c   : > { %v10093_v63 = vpop.f32.mrf.mxu1 }
 0x41d   : > { %v9199_v20 = vadd.f32 %v10093_v63, %v9110_v29 }
 0x41e   : > { %v9190_v55 = vpop.f32.mrf.mxu1 }
 0x41f   : > { %v9191_v49 = vadd.f32 %v9190_v55, %v9103_v5 }
 0x425   : > { %v10112_v53 = vpop.f32.mrf.mxu0 }
 0x426   : > { %v9300_v33 = vadd.f32 %v10112_v53, %v9199_v20 }
 0x427   : > { %v9293_v2 = vpop.f32.mrf.mxu0 }
 0x428   : > { %v9294_v27 = vadd.f32 %v9293_v2, %v9191_v49 }
 0x42e   : > { %v10131_v51 = vpop.f32.mrf.mxu1 }
 0x42f   : > { %v9385_v52 = vadd.f32 %v10131_v51, %v9300_v33 }
 0x430   : > { %v9378_v28 = vpop.f32.mrf.mxu1 }
 0x431   : > { %v9570_v19 = vsub.f32 %v9385_v52, %v9950_v62  ;;  %v9379_v56 = vadd.f32 %v9378_v28, %v9294_v27 }
 0x433   : > { %v9630_v18 = vmul.f32 %v12018_v39, %v9570_v19  ;;  %v9545_v31 = vsub.f32 %v9379_v56, %v9950_v62 }
 0x435   : > { %v9680_v60 = vmul.f32 %v9630_v18, %v9570_v19  ;;  %v9605_v22 = vmul.f32 %v12018_v39, %v9545_v31 }
 0x437   : > { %v9779_v47 = vmul.f32 1.442695, %v9680_v60  ;;  %v9655_v1 = vmul.f32 %v9605_v22, %v9545_v31 }
 0x439   : > { %10306 = vpow2.f32 %v9779_v47  ;;  %v9729_v16 = vmul.f32 1.442695, %v9655_v1 }
 0x43b   : > { %10308 = vpow2.f32 %v9729_v16 }
 0x446   : > { %v10307_v4 = vpop.eup %10306 }
 0x447   : > { %9830 = vst [vmem:[%s12168_s24 + $0x188] sm:$0xff] %v10307_v4 }
 0x448   : > { %v10309_v39 = vpop.eup %10308 }
 0x449   : > { %9805 = vst [vmem:[%s12168_s24 + $0xc0] sm:$0xff] %v10309_v39 }
 0x44a   : > { %10405 = shalt.err (!%p10402_p0)
}
 0x44b   : > { %s10406_s28 = scalar_lea.hbm %s14601_s14, 6400  ;;  %s10410_s10 = scalar_lea.hbm %s14652_s4, 12800 }
 0x44c   : > { %p10407_p5 = scmp.ne.s32.totalorder %s14601_s14, %s10406_s28  ;;  %p10411_p4 = scmp.lt.s32.totalorder %s14601_s14, %s14652_s4 }
 0x44d   : > { %p10412_p6 = scmp.lt.s32.totalorder %s10410_s10, %s10406_s28 }
 0x44e   : > { %p10408_p3 = pnand %p10407_p5, %p15232_p11 }
 0x44f   : > { %p10413_p8 = por %p10412_p6, %p10411_p4 }
 0x450   : > { %p10409_p10 = pneg %p10408_p3 }
 0x452   : > { %p10414_p9 = pnand %p10413_p8, %p10409_p10 }
 0x454   : > { %10417 = shalt.err (!%p10414_p9)
}
 0x455   : > { %s10472_s22 = smov 3200   ;;  %s10473_s24 = smov 200  }
 0x456   : > { %10144 = dma.vmem_to_hbm [thread:$0]  (%p15232_p11), %s14603_s6, 6400, %s14601_s14, %s9832_s15, %s10472_s22, %s10472_s22, %s10473_s24  }
 0x457 PF: > { %s9861_s30 = sand.u32 1, %s10448_s17   ;;  %p15233_p1 = scmp.ne.s32.totalorder %s14827_s23, 0 }
 0x458   : > { %p15234_p2 = scmp.ge.s32.totalorder %s10460_s20, 2  ;;  %s9862_s7 = scalar_lea.sflag [#allocation5], %s9861_s30 }
 0x45a   : > { %p10158_p12 = pnand %p15234_p2, %p15233_p1 }
 0x45c   : > { %p10159_p7 = pneg %p10158_p12 }
 0x45e   : > { %10443 = dma.done.wait (%p10159_p7), %s9862_s7, 6400  }
 0x45f   : > { %10445 = vsyncadd (%p10159_p7), %s9862_s7, 4294960896  ;;  %p20_p13 = scmp.ge.s32.totalorder %s10574_s13, 4   ;;  %s15235_s17 = smov %s10452_s18 }
 0x460   : > { %s15236_s18 = smov %s10456_s19  ;;  %s15237_s19 = smov %s10590_s21 }
 0x461   : > { %s15238_s20 = smov %s10574_s13  ;;  %22 = sbr.rel (!%p20_p13) target bundleno = 9 (0x9), region = 89 }
 0x466   :  { %9867 = vsyncpa [#allocation4], 1 }
 0x467   :  { %9869 = vsyncpa [#allocation4 + $0x1], 1 }
 0x468   :  { %9870 = vsyncpa [#allocation7], 1 }
 0x469   :  { %9871 = vsyncpa [#allocation5], 1 }
 0x46a   :  { %9873 = vsyncpa [#allocation5 + $0x1], 1 }

</bundles_post_ra>
